<compile_context>
chip_gen: v7x
topology: tpu7x:2x2x1
jax: 0.10.0
libtpu: 0.0.40
codegen_flags: <defaults>
</compile_context>

<pallas_src>
import numpy as np
import jax
import jax.numpy as jnp
from jax.experimental import pallas as pl
from jax.experimental.pallas import tpu as pltpu


# ---------------------------------------------------------------------------
# Pallas kernels
# ---------------------------------------------------------------------------
def _conv_relu_pool_kernel(xe_ref, xo_ref, w_ref, b_ref, o_ref):
    """Fused 3x3 conv (pad 1) + bias + ReLU + 2x2 max-pool for a batch tile.

    xe_ref: (tb, Hh+1, (W+2)*Cin) bf16  even-parity padded image rows
    xo_ref: (tb, Hh+1, (W+2)*Cin) bf16  odd-parity padded image rows
    w_ref : (3, (W+2)*Cin, W*Cout) f32  block-banded row-conv matrices (one
                                        per kernel row dy); output lanes are
                                        ordered (x-parity, pooled-x, cout).
    b_ref : (1, Wh*Cout) f32            bias tiled over pooled-x lanes.
    o_ref : (tb, Hh, Wh*Cout)           pooled activations, lanes (w, cout).
    """
    w0 = w_ref[0]
    w1 = w_ref[1]
    w2 = w_ref[2]
    bias = b_ref[...]
    tb, hh, half = o_ref.shape

    def row_conv(top, mid, bot):
        # One matmul per kernel row applies all three dx taps at once.
        return (jnp.dot(top, w0, preferred_element_type=jnp.float32)
                + jnp.dot(mid, w1, preferred_element_type=jnp.float32)
                + jnp.dot(bot, w2, preferred_element_type=jnp.float32))

    for b in range(tb):  # static unroll over the (small) batch tile
        # Widen to f32 in-register: clean sublane slices + f32 accumulation.
        xe = xe_ref[b].astype(jnp.float32)          # padded rows 0,2,...,H
        xo = xo_ref[b].astype(jnp.float32)          # padded rows 1,3,...,H+1
        even = row_conv(xe[:hh], xo[:hh], xe[1:])   # conv rows 2*yh
        odd = row_conv(xo[:hh], xe[1:], xo[1:])     # conv rows 2*yh+1
        m = jnp.maximum(even, odd)                  # y-pool
        m = jnp.maximum(m[:, :half], m[:, half:])   # x-pool: contiguous halves
        # bias add / ReLU commute with the max.
        o_ref[b] = jnp.maximum(m + bias, 0.0).astype(o_ref.dtype)


def _matmul_bias_kernel(x_ref, w_ref, b_ref, o_ref):
    """o = x @ w + b (final Linear, no activation)."""
    acc = jnp.dot(x_ref[...], w_ref[...], preferred_element_type=jnp.float32)
    o_ref[...] = (acc + b_ref[...]).astype(o_ref.dtype)


# ---------------------------------------------------------------------------
# Tiling helpers
# ---------------------------------------------------------------------------
def _batch_tile(b, target=8):
    """Images per grid step; >=2 grid steps whenever B >= 2 (v7x's 2 TCs)."""
    return max(1, min(target, -(-b // 2)))


def _row_tile(m, target=1024):
    """8-aligned row tile for the FC; >=2 grid steps whenever M > 8."""
    if m <= 8:
        return m
    half = -(-m // 2)
    return min(target, ((half + 7) // 8) * 8)


# ---------------------------------------------------------------------------
# Wrappers
# ---------------------------------------------------------------------------
def conv3x3_relu_pool(x_nhwc, w3, bias_t):
    """3x3 conv (stride 1, pad 1) + ReLU + 2x2 max-pool in one pallas_call.

    x_nhwc: (B, H, W, Cin) bf16 with H, W even.
    w3:     (3, (W+2)*Cin, W*Cout) f32  from prepare_params().
    bias_t: (1, (W//2)*Cout) f32.
    Returns (B, H//2, (W//2)*Cout) bf16, lanes ordered (w, cout) — i.e. a
    per-row flattened NHWC activation.
    """
    B, H, W, Cin = x_nhwc.shape
    Hh = H // 2
    Lin = (W + 2) * Cin
    Cout = w3.shape[2] // W
    half = (W // 2) * Cout

    # Cheap XLA glue (no duplication): spatial zero-pad + row-parity split.
    xp = jnp.pad(x_nhwc, ((0, 0), (1, 1), (1, 1), (0, 0)))
    xe = xp[:, 0::2].reshape(B, Hh + 1, Lin)
    xo = xp[:, 1::2].reshape(B, Hh + 1, Lin)

    tb = _batch_tile(B)
    return pl.pallas_call(
        _conv_relu_pool_kernel,
        out_shape=jax.ShapeDtypeStruct((B, Hh, half), jnp.bfloat16),
        grid=(pl.cdiv(B, tb),),
        in_specs=[
            pl.BlockSpec((tb, Hh + 1, Lin), lambda i: (i, 0, 0)),
            pl.BlockSpec((tb, Hh + 1, Lin), lambda i: (i, 0, 0)),
            pl.BlockSpec(w3.shape, lambda i: (0, 0, 0)),
            pl.BlockSpec((1, half), lambda i: (0, 0)),
        ],
        out_specs=pl.BlockSpec((tb, Hh, half), lambda i: (i, 0, 0)),
        compiler_params=pltpu.CompilerParams(
            dimension_semantics=("parallel",)),
    )(xe, xo, w3, bias_t)


def linear(x, w, b):
    """x: (M, K) bf16, w: (K, N) bf16, b: (N,) f32 -> (M, N) f32, tiled on M."""
    M, K = x.shape
    N = w.shape[1]
    tm = _row_tile(M)
    return pl.pallas_call(
        _matmul_bias_kernel,
        out_shape=jax.ShapeDtypeStruct((M, N), jnp.float32),
        grid=(pl.cdiv(M, tm),),
        in_specs=[
            pl.BlockSpec((tm, K), lambda i: (i, 0)),
            pl.BlockSpec((K, N), lambda i: (0, 0)),
            pl.BlockSpec((1, N), lambda i: (0, 0)),
        ],
        out_specs=pl.BlockSpec((tm, N), lambda i: (i, 0)),
        compiler_params=pltpu.CompilerParams(
            dimension_semantics=("parallel",)),
    )(x, w, b.reshape(1, N))


# ---------------------------------------------------------------------------
# Params & full forward
# ---------------------------------------------------------------------------
def init_params(key):
    k1, k2, k3, k4, k5, k6 = jax.random.split(key, 6)
    return {
        "w1": 0.1 * jax.random.normal(k1, (16, 1, 3, 3), jnp.float32),
        "b1": 0.1 * jax.random.normal(k2, (16,), jnp.float32),
        "w2": 0.1 * jax.random.normal(k3, (32, 16, 3, 3), jnp.float32),
        "b2": 0.1 * jax.random.normal(k4, (32,), jnp.float32),
        "w_fc": 0.05 * jax.random.normal(k5, (10, 32 * 7 * 7), jnp.float32),
        "b_fc": 0.05 * jax.random.normal(k6, (10,), jnp.float32),
    }


def _row_conv_mats(w_oihw, W):
    """Three block-banded matrices ((W+2)*Cin, W*Cout), one per kernel row dy.

    mats[dy] applied to a padded image row (lanes ordered (x_padded, cin))
    yields that kernel-row's contribution to the conv output for every x,
    with output lanes ordered (x-parity px, pooled-x xh, cout) so the 2x2
    x-pool is a max of two contiguous lane halves.
    """
    w = np.asarray(w_oihw, np.float32)            # (Cout, Cin, 3, 3)
    Cout, Cin = w.shape[0], w.shape[1]
    Wh = W // 2
    Lin, Lout = (W + 2) * Cin, W * Cout
    mats = np.zeros((3, Lin, Lout), np.float32)
    for dy in range(3):
        for x in range(W):
            xh, px = divmod(x, 2)
            o0 = px * (Wh * Cout) + xh * Cout
            for dx in range(3):
                i0 = (x + dx) * Cin
                mats[dy, i0:i0 + Cin, o0:o0 + Cout] = w[:, :, dy, dx].T
    return jnp.asarray(mats)


def prepare_params(params):
    """Precompute kernel-ready weight layouts once (outside the hot path)."""
    # FC row permutation: PyTorch flattens (C,H,W); conv2's kernel output
    # flattens (H,W,C).  perm[h*224 + w*32 + c] = c*49 + h*7 + w.
    c = np.arange(32)
    h = np.arange(7)
    w = np.arange(7)
    perm = (c[None, None, :] * 49 + h[:, None, None] * 7
            + w[None, :, None]).reshape(-1)
    w_fc_hwc = np.asarray(params["w_fc"], np.float32)[:, perm]    # (10, 1568)

    return {
        "wc1": _row_conv_mats(params["w1"], 28),                  # (3, 30, 448)
        "b1t": jnp.asarray(
            np.tile(np.asarray(params["b1"], np.float32), 14)).reshape(1, 224),
        "wc2": _row_conv_mats(params["w2"], 14),                  # (3, 256, 448)
        "b2t": jnp.asarray(
            np.tile(np.asarray(params["b2"], np.float32), 7)).reshape(1, 224),
        "w_fc_t": jnp.asarray(w_fc_hwc.T).astype(jnp.bfloat16),   # (1568, 10)
        "b_fc": params["b_fc"].astype(jnp.float32),
    }


def cnn_forward(x_nchw, p):
    """Matches PyTorch CNN.forward: returns (logits, input)."""
    B = x_nchw.shape[0]
    x = jnp.transpose(x_nchw, (0, 2, 3, 1)).astype(jnp.bfloat16)   # NHWC (B,28,28,1)

    h1 = conv3x3_relu_pool(x, p["wc1"], p["b1t"])                  # (B,14,224)
    h2 = conv3x3_relu_pool(h1.reshape(B, 14, 14, 16),
                           p["wc2"], p["b2t"])                     # (B, 7,224)

    feat = h2.reshape(B, 32 * 7 * 7)   # already in (h, w, c) order; w_fc permuted
    logits = linear(feat, p["w_fc_t"], p["b_fc"])                  # (B, 10) f32
    return logits, x_nchw


def _reference_forward(x_nchw, params):
    """Pure-JAX f32 reference matching the PyTorch module (for validation)."""
    def conv_relu_pool(x, w, b):
        y = jax.lax.conv_general_dilated(
            x, w, window_strides=(1, 1), padding=((1, 1), (1, 1)),
            dimension_numbers=("NCHW", "OIHW", "NCHW"))
        y = jax.nn.relu(y + b[None, :, None, None])
        return jax.lax.reduce_window(y, -jnp.inf, jax.lax.max,
                                     (1, 1, 2, 2), (1, 1, 2, 2), "VALID")
    h = conv_relu_pool(x_nchw, params["w1"], params["b1"])
    h = conv_relu_pool(h, params["w2"], params["b2"])
    feat = h.reshape(h.shape[0], -1)
    return feat @ params["w_fc"].T + params["b_fc"]


if __name__ == "__main__":
    key = jax.random.PRNGKey(0)
    pkey, xkey = jax.random.split(key)
    params = init_params(pkey)
    prepared = prepare_params(params)   # weight layouts computed once

    # MNIST-shaped input (the Linear(32*7*7, 10) layer fixes spatial = 28x28).
    x = jax.random.normal(xkey, (2, 1, 28, 28), jnp.float32)

    fwd = jax.jit(cnn_forward)
    logits, x_out = fwd(x, prepared)
    jax.block_until_ready((logits, x_out))

    assert logits.shape == (2, 10), logits.shape
    assert x_out.shape == (2, 1, 28, 28), x_out.shape
    assert bool(jnp.all(jnp.isfinite(logits)))

    # Loose tolerance: activations travel HBM as bf16 (f32 accumulation).
    ref = _reference_forward(x, params)
    err = float(jnp.max(jnp.abs(logits - ref)))
    assert err < 0.25, f"max |logits - ref| = {err}"

    print("KERNEL_OK")
</pallas_src>

<mosaic_0001>
module attributes {stable_mosaic.version = 11 : i64} {
  func.func @_conv_relu_pool_kernel(%arg0: i32, %arg1: memref<1x15x30xbf16, #tpu.memory_space<vmem>>, %arg2: memref<1x15x30xbf16, #tpu.memory_space<vmem>>, %arg3: memref<3x30x448xf32, #tpu.memory_space<vmem>>, %arg4: memref<1x224xf32, #tpu.memory_space<vmem>>, %arg5: memref<1x14x224xbf16, #tpu.memory_space<vmem>>) attributes {dimension_semantics = [#tpu.dimension_semantics<parallel>], iteration_bounds = array<i64: 2>, scalar_prefetch = 0 : i64, scratch_operands = 0 : i64, tpu.core_type = #tpu.core_type<tc>, window_params = [{transform_indices = @transform_0, window_bounds = array<i64: 1, 15, 30>}, {transform_indices = @transform_1, window_bounds = array<i64: 1, 15, 30>}, {pipeline_mode = #tpu.pipeline_mode<synchronous>, transform_indices = @transform_2, window_bounds = array<i64: 3, 30, 448>}, {pipeline_mode = #tpu.pipeline_mode<synchronous>, transform_indices = @transform_3, window_bounds = array<i64: 1, 224>}, {transform_indices = @transform_4, window_bounds = array<i64: 1, 14, 224>}]} {
    %c0 = arith.constant 0 : index
    %c0_0 = arith.constant 0 : index
    %c0_1 = arith.constant 0 : index
    %0 = vector.load %arg3[%c0, %c0_0, %c0_1] : memref<3x30x448xf32, #tpu.memory_space<vmem>>, vector<1x30x448xf32>
    %1 = vector.shape_cast %0 : vector<1x30x448xf32> to vector<30x448xf32>
    %c1 = arith.constant 1 : index
    %c0_2 = arith.constant 0 : index
    %c0_3 = arith.constant 0 : index
    %2 = vector.load %arg3[%c1, %c0_2, %c0_3] : memref<3x30x448xf32, #tpu.memory_space<vmem>>, vector<1x30x448xf32>
    %3 = vector.shape_cast %2 : vector<1x30x448xf32> to vector<30x448xf32>
    %c2 = arith.constant 2 : index
    %c0_4 = arith.constant 0 : index
    %c0_5 = arith.constant 0 : index
    %4 = vector.load %arg3[%c2, %c0_4, %c0_5] : memref<3x30x448xf32, #tpu.memory_space<vmem>>, vector<1x30x448xf32>
    %5 = vector.shape_cast %4 : vector<1x30x448xf32> to vector<30x448xf32>
    %c0_6 = arith.constant 0 : index
    %c0_7 = arith.constant 0 : index
    %6 = vector.load %arg4[%c0_6, %c0_7] : memref<1x224xf32, #tpu.memory_space<vmem>>, vector<1x224xf32>
    %c0_8 = arith.constant 0 : index
    %c0_9 = arith.constant 0 : index
    %c0_10 = arith.constant 0 : index
    %7 = vector.load %arg1[%c0_8, %c0_9, %c0_10] : memref<1x15x30xbf16, #tpu.memory_space<vmem>>, vector<1x15x30xbf16>
    %8 = vector.shape_cast %7 : vector<1x15x30xbf16> to vector<15x30xbf16>
    %9 = arith.extf %8 : vector<15x30xbf16> to vector<15x30xf32>
    %c0_11 = arith.constant 0 : index
    %c0_12 = arith.constant 0 : index
    %c0_13 = arith.constant 0 : index
    %10 = vector.load %arg2[%c0_11, %c0_12, %c0_13] : memref<1x15x30xbf16, #tpu.memory_space<vmem>>, vector<1x15x30xbf16>
    %11 = vector.shape_cast %10 : vector<1x15x30xbf16> to vector<15x30xbf16>
    %12 = arith.extf %11 : vector<15x30xbf16> to vector<15x30xf32>
    %13 = vector.extract_strided_slice %9 {offsets = [0, 0], sizes = [14, 30], strides = [1, 1]} : vector<15x30xf32> to vector<14x30xf32>
    %14 = vector.extract_strided_slice %12 {offsets = [0, 0], sizes = [14, 30], strides = [1, 1]} : vector<15x30xf32> to vector<14x30xf32>
    %15 = vector.extract_strided_slice %9 {offsets = [1, 0], sizes = [14, 30], strides = [1, 1]} : vector<15x30xf32> to vector<14x30xf32>
    %cst = arith.constant dense<0.000000e+00> : vector<14x448xf32>
    %16 = tpu.matmul %13, %1, %cst {dimension_numbers = #tpu.dot_dimension_numbers<[1], [0], [0], [1], [0, 0, 1, 1], [], []>} : vector<14x30xf32>, vector<30x448xf32>, vector<14x448xf32> -> vector<14x448xf32>
    %cst_14 = arith.constant dense<0.000000e+00> : vector<14x448xf32>
    %17 = tpu.matmul %14, %3, %cst_14 {dimension_numbers = #tpu.dot_dimension_numbers<[1], [0], [0], [1], [0, 0, 1, 1], [], []>} : vector<14x30xf32>, vector<30x448xf32>, vector<14x448xf32> -> vector<14x448xf32>
    %18 = arith.addf %16, %17 : vector<14x448xf32>
    %cst_15 = arith.constant dense<0.000000e+00> : vector<14x448xf32>
    %19 = tpu.matmul %15, %5, %cst_15 {dimension_numbers = #tpu.dot_dimension_numbers<[1], [0], [0], [1], [0, 0, 1, 1], [], []>} : vector<14x30xf32>, vector<30x448xf32>, vector<14x448xf32> -> vector<14x448xf32>
    %20 = arith.addf %18, %19 : vector<14x448xf32>
    %21 = vector.extract_strided_slice %12 {offsets = [0, 0], sizes = [14, 30], strides = [1, 1]} : vector<15x30xf32> to vector<14x30xf32>
    %22 = vector.extract_strided_slice %9 {offsets = [1, 0], sizes = [14, 30], strides = [1, 1]} : vector<15x30xf32> to vector<14x30xf32>
    %23 = vector.extract_strided_slice %12 {offsets = [1, 0], sizes = [14, 30], strides = [1, 1]} : vector<15x30xf32> to vector<14x30xf32>
    %cst_16 = arith.constant dense<0.000000e+00> : vector<14x448xf32>
    %24 = tpu.matmul %21, %1, %cst_16 {dimension_numbers = #tpu.dot_dimension_numbers<[1], [0], [0], [1], [0, 0, 1, 1], [], []>} : vector<14x30xf32>, vector<30x448xf32>, vector<14x448xf32> -> vector<14x448xf32>
    %cst_17 = arith.constant dense<0.000000e+00> : vector<14x448xf32>
    %25 = tpu.matmul %22, %3, %cst_17 {dimension_numbers = #tpu.dot_dimension_numbers<[1], [0], [0], [1], [0, 0, 1, 1], [], []>} : vector<14x30xf32>, vector<30x448xf32>, vector<14x448xf32> -> vector<14x448xf32>
    %26 = arith.addf %24, %25 : vector<14x448xf32>
    %cst_18 = arith.constant dense<0.000000e+00> : vector<14x448xf32>
    %27 = tpu.matmul %23, %5, %cst_18 {dimension_numbers = #tpu.dot_dimension_numbers<[1], [0], [0], [1], [0, 0, 1, 1], [], []>} : vector<14x30xf32>, vector<30x448xf32>, vector<14x448xf32> -> vector<14x448xf32>
    %28 = arith.addf %26, %27 : vector<14x448xf32>
    %29 = arith.maximumf %20, %28 : vector<14x448xf32>
    %30 = vector.extract_strided_slice %29 {offsets = [0, 0], sizes = [14, 224], strides = [1, 1]} : vector<14x448xf32> to vector<14x224xf32>
    %31 = vector.extract_strided_slice %29 {offsets = [0, 224], sizes = [14, 224], strides = [1, 1]} : vector<14x448xf32> to vector<14x224xf32>
    %32 = arith.maximumf %30, %31 : vector<14x224xf32>
    %33 = vector.broadcast %6 : vector<1x224xf32> to vector<14x224xf32>
    %34 = arith.addf %32, %33 : vector<14x224xf32>
    %cst_19 = arith.constant 0.000000e+00 : f32
    %35 = vector.broadcast %cst_19 : f32 to vector<14x224xf32>
    %36 = arith.maximumf %34, %35 : vector<14x224xf32>
    %37 = arith.truncf %36 : vector<14x224xf32> to vector<14x224xbf16>
    %c0_20 = arith.constant 0 : index
    %c0_21 = arith.constant 0 : index
    %c0_22 = arith.constant 0 : index
    %38 = vector.load %arg5[%c0_20, %c0_21, %c0_22] : memref<1x14x224xbf16, #tpu.memory_space<vmem>>, vector<1x14x224xbf16>
    %39 = vector.shape_cast %38 : vector<1x14x224xbf16> to vector<14x224xbf16>
    %40 = vector.shape_cast %37 : vector<14x224xbf16> to vector<1x14x224xbf16>
    tpu.vector_store %arg5[%c0_20, %c0_21, %c0_22], %40 {strides = array<i32>} : memref<1x14x224xbf16, #tpu.memory_space<vmem>>, vector<1x14x224xbf16>,
    return
  }
  func.func @transform_0(%arg0: i32) -> (i32, i32, i32) {
    %c0_i32 = arith.constant 0 : i32
    %c0_i32_0 = arith.constant 0 : i32
    %c0_i32_1 = arith.constant 0 : i32
    return %arg0, %c0_i32, %c0_i32_0 : i32, i32, i32
  }
  func.func @transform_1(%arg0: i32) -> (i32, i32, i32) {
    %c0_i32 = arith.constant 0 : i32
    %c0_i32_0 = arith.constant 0 : i32
    %c0_i32_1 = arith.constant 0 : i32
    return %arg0, %c0_i32, %c0_i32_0 : i32, i32, i32
  }
  func.func @transform_2(%arg0: i32) -> (i32, i32, i32) {
    %c0_i32 = arith.constant 0 : i32
    %c0_i32_0 = arith.constant 0 : i32
    %c0_i32_1 = arith.constant 0 : i32
    %c0_i32_2 = arith.constant 0 : i32
    return %c0_i32, %c0_i32_0, %c0_i32_1 : i32, i32, i32
  }
  func.func @transform_3(%arg0: i32) -> (i32, i32) {
    %c0_i32 = arith.constant 0 : i32
    %c0_i32_0 = arith.constant 0 : i32
    %c0_i32_1 = arith.constant 0 : i32
    return %c0_i32, %c0_i32_0 : i32, i32
  }
  func.func @transform_4(%arg0: i32) -> (i32, i32, i32) {
    %c0_i32 = arith.constant 0 : i32
    %c0_i32_0 = arith.constant 0 : i32
    %c0_i32_1 = arith.constant 0 : i32
    return %arg0, %c0_i32, %c0_i32_0 : i32, i32, i32
  }
}

module attributes {stable_mosaic.version = 11 : i64} {
  func.func @_conv_relu_pool_kernel(%arg0: i32, %arg1: memref<1x8x256xbf16, #tpu.memory_space<vmem>>, %arg2: memref<1x8x256xbf16, #tpu.memory_space<vmem>>, %arg3: memref<3x256x448xf32, #tpu.memory_space<vmem>>, %arg4: memref<1x224xf32, #tpu.memory_space<vmem>>, %arg5: memref<1x7x224xbf16, #tpu.memory_space<vmem>>) attributes {dimension_semantics = [#tpu.dimension_semantics<parallel>], iteration_bounds = array<i64: 2>, scalar_prefetch = 0 : i64, scratch_operands = 0 : i64, tpu.core_type = #tpu.core_type<tc>, window_params = [{transform_indices = @transform_0, window_bounds = array<i64: 1, 8, 256>}, {transform_indices = @transform_1, window_bounds = array<i64: 1, 8, 256>}, {pipeline_mode = #tpu.pipeline_mode<synchronous>, transform_indices = @transform_2, window_bounds = array<i64: 3, 256, 448>}, {pipeline_mode = #tpu.pipeline_mode<synchronous>, transform_indices = @transform_3, window_bounds = array<i64: 1, 224>}, {transform_indices = @transform_4, window_bounds = array<i64: 1, 7, 224>}]} {
    %c0 = arith.constant 0 : index
    %c0_0 = arith.constant 0 : index
    %c0_1 = arith.constant 0 : index
    %0 = vector.load %arg3[%c0, %c0_0, %c0_1] : memref<3x256x448xf32, #tpu.memory_space<vmem>>, vector<1x256x448xf32>
    %1 = vector.shape_cast %0 : vector<1x256x448xf32> to vector<256x448xf32>
    %c1 = arith.constant 1 : index
    %c0_2 = arith.constant 0 : index
    %c0_3 = arith.constant 0 : index
    %2 = vector.load %arg3[%c1, %c0_2, %c0_3] : memref<3x256x448xf32, #tpu.memory_space<vmem>>, vector<1x256x448xf32>
    %3 = vector.shape_cast %2 : vector<1x256x448xf32> to vector<256x448xf32>
    %c2 = arith.constant 2 : index
    %c0_4 = arith.constant 0 : index
    %c0_5 = arith.constant 0 : index
    %4 = vector.load %arg3[%c2, %c0_4, %c0_5] : memref<3x256x448xf32, #tpu.memory_space<vmem>>, vector<1x256x448xf32>
    %5 = vector.shape_cast %4 : vector<1x256x448xf32> to vector<256x448xf32>
    %c0_6 = arith.constant 0 : index
    %c0_7 = arith.constant 0 : index
    %6 = vector.load %arg4[%c0_6, %c0_7] : memref<1x224xf32, #tpu.memory_space<vmem>>, vector<1x224xf32>
    %c0_8 = arith.constant 0 : index
    %c0_9 = arith.constant 0 : index
    %c0_10 = arith.constant 0 : index
    %7 = vector.load %arg1[%c0_8, %c0_9, %c0_10] : memref<1x8x256xbf16, #tpu.memory_space<vmem>>, vector<1x8x256xbf16>
    %8 = vector.shape_cast %7 : vector<1x8x256xbf16> to vector<8x256xbf16>
    %9 = arith.extf %8 : vector<8x256xbf16> to vector<8x256xf32>
    %c0_11 = arith.constant 0 : index
    %c0_12 = arith.constant 0 : index
    %c0_13 = arith.constant 0 : index
    %10 = vector.load %arg2[%c0_11, %c0_12, %c0_13] : memref<1x8x256xbf16, #tpu.memory_space<vmem>>, vector<1x8x256xbf16>
    %11 = vector.shape_cast %10 : vector<1x8x256xbf16> to vector<8x256xbf16>
    %12 = arith.extf %11 : vector<8x256xbf16> to vector<8x256xf32>
    %13 = vector.extract_strided_slice %9 {offsets = [0, 0], sizes = [7, 256], strides = [1, 1]} : vector<8x256xf32> to vector<7x256xf32>
    %14 = vector.extract_strided_slice %12 {offsets = [0, 0], sizes = [7, 256], strides = [1, 1]} : vector<8x256xf32> to vector<7x256xf32>
    %15 = vector.extract_strided_slice %9 {offsets = [1, 0], sizes = [7, 256], strides = [1, 1]} : vector<8x256xf32> to vector<7x256xf32>
    %cst = arith.constant dense<0.000000e+00> : vector<7x448xf32>
    %16 = tpu.matmul %13, %1, %cst {dimension_numbers = #tpu.dot_dimension_numbers<[1], [0], [0], [1], [0, 0, 1, 1], [], []>} : vector<7x256xf32>, vector<256x448xf32>, vector<7x448xf32> -> vector<7x448xf32>
    %cst_14 = arith.constant dense<0.000000e+00> : vector<7x448xf32>
    %17 = tpu.matmul %14, %3, %cst_14 {dimension_numbers = #tpu.dot_dimension_numbers<[1], [0], [0], [1], [0, 0, 1, 1], [], []>} : vector<7x256xf32>, vector<256x448xf32>, vector<7x448xf32> -> vector<7x448xf32>
    %18 = arith.addf %16, %17 : vector<7x448xf32>
    %cst_15 = arith.constant dense<0.000000e+00> : vector<7x448xf32>
    %19 = tpu.matmul %15, %5, %cst_15 {dimension_numbers = #tpu.dot_dimension_numbers<[1], [0], [0], [1], [0, 0, 1, 1], [], []>} : vector<7x256xf32>, vector<256x448xf32>, vector<7x448xf32> -> vector<7x448xf32>
    %20 = arith.addf %18, %19 : vector<7x448xf32>
    %21 = vector.extract_strided_slice %12 {offsets = [0, 0], sizes = [7, 256], strides = [1, 1]} : vector<8x256xf32> to vector<7x256xf32>
    %22 = vector.extract_strided_slice %9 {offsets = [1, 0], sizes = [7, 256], strides = [1, 1]} : vector<8x256xf32> to vector<7x256xf32>
    %23 = vector.extract_strided_slice %12 {offsets = [1, 0], sizes = [7, 256], strides = [1, 1]} : vector<8x256xf32> to vector<7x256xf32>
    %cst_16 = arith.constant dense<0.000000e+00> : vector<7x448xf32>
    %24 = tpu.matmul %21, %1, %cst_16 {dimension_numbers = #tpu.dot_dimension_numbers<[1], [0], [0], [1], [0, 0, 1, 1], [], []>} : vector<7x256xf32>, vector<256x448xf32>, vector<7x448xf32> -> vector<7x448xf32>
    %cst_17 = arith.constant dense<0.000000e+00> : vector<7x448xf32>
    %25 = tpu.matmul %22, %3, %cst_17 {dimension_numbers = #tpu.dot_dimension_numbers<[1], [0], [0], [1], [0, 0, 1, 1], [], []>} : vector<7x256xf32>, vector<256x448xf32>, vector<7x448xf32> -> vector<7x448xf32>
    %26 = arith.addf %24, %25 : vector<7x448xf32>
    %cst_18 = arith.constant dense<0.000000e+00> : vector<7x448xf32>
    %27 = tpu.matmul %23, %5, %cst_18 {dimension_numbers = #tpu.dot_dimension_numbers<[1], [0], [0], [1], [0, 0, 1, 1], [], []>} : vector<7x256xf32>, vector<256x448xf32>, vector<7x448xf32> -> vector<7x448xf32>
    %28 = arith.addf %26, %27 : vector<7x448xf32>
    %29 = arith.maximumf %20, %28 : vector<7x448xf32>
    %30 = vector.extract_strided_slice %29 {offsets = [0, 0], sizes = [7, 224], strides = [1, 1]} : vector<7x448xf32> to vector<7x224xf32>
    %31 = vector.extract_strided_slice %29 {offsets = [0, 224], sizes = [7, 224], strides = [1, 1]} : vector<7x448xf32> to vector<7x224xf32>
    %32 = arith.maximumf %30, %31 : vector<7x224xf32>
    %33 = vector.broadcast %6 : vector<1x224xf32> to vector<7x224xf32>
    %34 = arith.addf %32, %33 : vector<7x224xf32>
    %cst_19 = arith.constant 0.000000e+00 : f32
    %35 = vector.broadcast %cst_19 : f32 to vector<7x224xf32>
    %36 = arith.maximumf %34, %35 : vector<7x224xf32>
    %37 = arith.truncf %36 : vector<7x224xf32> to vector<7x224xbf16>
    %c0_20 = arith.constant 0 : index
    %c0_21 = arith.constant 0 : index
    %c0_22 = arith.constant 0 : index
    %38 = vector.load %arg5[%c0_20, %c0_21, %c0_22] : memref<1x7x224xbf16, #tpu.memory_space<vmem>>, vector<1x7x224xbf16>
    %39 = vector.shape_cast %38 : vector<1x7x224xbf16> to vector<7x224xbf16>
    %40 = vector.shape_cast %37 : vector<7x224xbf16> to vector<1x7x224xbf16>
    tpu.vector_store %arg5[%c0_20, %c0_21, %c0_22], %40 {strides = array<i32>} : memref<1x7x224xbf16, #tpu.memory_space<vmem>>, vector<1x7x224xbf16>,
    return
  }
  func.func @transform_0(%arg0: i32) -> (i32, i32, i32) {
    %c0_i32 = arith.constant 0 : i32
    %c0_i32_0 = arith.constant 0 : i32
    %c0_i32_1 = arith.constant 0 : i32
    return %arg0, %c0_i32, %c0_i32_0 : i32, i32, i32
  }
  func.func @transform_1(%arg0: i32) -> (i32, i32, i32) {
    %c0_i32 = arith.constant 0 : i32
    %c0_i32_0 = arith.constant 0 : i32
    %c0_i32_1 = arith.constant 0 : i32
    return %arg0, %c0_i32, %c0_i32_0 : i32, i32, i32
  }
  func.func @transform_2(%arg0: i32) -> (i32, i32, i32) {
    %c0_i32 = arith.constant 0 : i32
    %c0_i32_0 = arith.constant 0 : i32
    %c0_i32_1 = arith.constant 0 : i32
    %c0_i32_2 = arith.constant 0 : i32
    return %c0_i32, %c0_i32_0, %c0_i32_1 : i32, i32, i32
  }
  func.func @transform_3(%arg0: i32) -> (i32, i32) {
    %c0_i32 = arith.constant 0 : i32
    %c0_i32_0 = arith.constant 0 : i32
    %c0_i32_1 = arith.constant 0 : i32
    return %c0_i32, %c0_i32_0 : i32, i32
  }
  func.func @transform_4(%arg0: i32) -> (i32, i32, i32) {
    %c0_i32 = arith.constant 0 : i32
    %c0_i32_0 = arith.constant 0 : i32
    %c0_i32_1 = arith.constant 0 : i32
    return %arg0, %c0_i32, %c0_i32_0 : i32, i32, i32
  }
}

module attributes {stable_mosaic.version = 11 : i64} {
  func.func @_matmul_bias_kernel(%arg0: i32, %arg1: memref<2x1568xbf16, #tpu.memory_space<vmem>>, %arg2: memref<1568x10xbf16, #tpu.memory_space<vmem>>, %arg3: memref<1x10xf32, #tpu.memory_space<vmem>>, %arg4: memref<2x10xf32, #tpu.memory_space<vmem>>) attributes {dimension_semantics = [#tpu.dimension_semantics<parallel>], iteration_bounds = array<i64: 1>, scalar_prefetch = 0 : i64, scratch_operands = 0 : i64, tpu.core_type = #tpu.core_type<tc>, window_params = [{transform_indices = @transform_0, window_bounds = array<i64: 2, 1568>}, {pipeline_mode = #tpu.pipeline_mode<synchronous>, transform_indices = @transform_1, window_bounds = array<i64: 1568, 10>}, {pipeline_mode = #tpu.pipeline_mode<synchronous>, transform_indices = @transform_2, window_bounds = array<i64: 1, 10>}, {transform_indices = @transform_3, window_bounds = array<i64: 2, 10>}]} {
    %c0 = arith.constant 0 : index
    %c0_0 = arith.constant 0 : index
    %0 = vector.load %arg1[%c0, %c0_0] : memref<2x1568xbf16, #tpu.memory_space<vmem>>, vector<2x1568xbf16>
    %c0_1 = arith.constant 0 : index
    %c0_2 = arith.constant 0 : index
    %1 = vector.load %arg2[%c0_1, %c0_2] : memref<1568x10xbf16, #tpu.memory_space<vmem>>, vector<1568x10xbf16>
    %cst = arith.constant dense<0.000000e+00> : vector<2x10xf32>
    %2 = tpu.matmul %0, %1, %cst {dimension_numbers = #tpu.dot_dimension_numbers<[1], [0], [0], [1], [0, 0, 1, 1], [], []>} : vector<2x1568xbf16>, vector<1568x10xbf16>, vector<2x10xf32> -> vector<2x10xf32>
    %c0_3 = arith.constant 0 : index
    %c0_4 = arith.constant 0 : index
    %3 = vector.load %arg3[%c0_3, %c0_4] : memref<1x10xf32, #tpu.memory_space<vmem>>, vector<1x10xf32>
    %4 = vector.broadcast %3 : vector<1x10xf32> to vector<2x10xf32>
    %5 = arith.addf %2, %4 : vector<2x10xf32>
    %c0_5 = arith.constant 0 : index
    %c0_6 = arith.constant 0 : index
    %6 = vector.load %arg4[%c0_5, %c0_6] : memref<2x10xf32, #tpu.memory_space<vmem>>, vector<2x10xf32>
    tpu.vector_store %arg4[%c0_5, %c0_6], %5 {strides = array<i32>} : memref<2x10xf32, #tpu.memory_space<vmem>>, vector<2x10xf32>,
    return
  }
  func.func @transform_0(%arg0: i32) -> (i32, i32) {
    %c0_i32 = arith.constant 0 : i32
    %c0_i32_0 = arith.constant 0 : i32
    return %arg0, %c0_i32 : i32, i32
  }
  func.func @transform_1(%arg0: i32) -> (i32, i32) {
    %c0_i32 = arith.constant 0 : i32
    %c0_i32_0 = arith.constant 0 : i32
    %c0_i32_1 = arith.constant 0 : i32
    return %c0_i32, %c0_i32_0 : i32, i32
  }
  func.func @transform_2(%arg0: i32) -> (i32, i32) {
    %c0_i32 = arith.constant 0 : i32
    %c0_i32_0 = arith.constant 0 : i32
    %c0_i32_1 = arith.constant 0 : i32
    return %c0_i32, %c0_i32_0 : i32, i32
  }
  func.func @transform_3(%arg0: i32) -> (i32, i32) {
    %c0_i32 = arith.constant 0 : i32
    %c0_i32_0 = arith.constant 0 : i32
    return %arg0, %c0_i32 : i32, i32
  }
}

</mosaic_0001>

<bundles_post_ra>
// kernel: cnn_forward.3
= control target key start
LH: loop header
LB: loop body
LE: loop exit
PB: predicated region body
PF: predicated region fallthrough
CT: control target
= control target key end

     0   :  { %9 = vsyncpa [#allocation3], 0  ;;  %s2159_s0 = inlined_call_operand.vmem [shape: bf16[2,15,30], index: 0, kind: input, shape index: {}]   ;;  %s2160_s1 = inlined_call_operand.vmem [shape: bf16[2,15,30], index: 1, kind: input, shape index: {}]   ;;  %s2161_s2 = inlined_call_operand.hbm [shape: f32[3,30,448], index: 2, kind: input, shape index: {}]   ;;  %s2162_s3 = inlined_call_operand.hbm [shape: f32[1,224], index: 3, kind: input, shape index: {}]   ;;  %s2163_s4 = inlined_call_operand.vmem [shape: bf16[2,14,224], index: 4, kind: output, shape index: {}]  }
   0x1   :  { %10 = vsyncpa [#allocation5], 0  ;;  %s1847_s15 = smov 0  }
   0x2 LB: > { %s1853_s16 = sadd.s32 4294967295, %s1813_s15   ;;  %p1479_p0 = scmp.ge.s32.totalorder %s1813_s15, 1  ;;  %s1813_s15 = sphi %s1847_s15, %s16_s15  }
   0x3   : > { %p141_p1 = scmp.lt.s32.totalorder %s1813_s15, 3  ;;  %s1815_s17 = smov [#allocation2]  }
   0x4   : > { %s153_s18 = sshll.u32 %s1815_s17, 4  ;;  %p2164_p3 = scmp.eq.s32.totalorder %s1853_s16, 0  ;;  %s154_s18 = int_to_ptr.vmem [resolvable:$true] %s153_s18 }
   0x5   : > { %p1857_p2 = pnand %p1479_p0, %p141_p1  ;;  %s1816_s20 = smov [#allocation4]  }
   0x6   : > { %s167_s21 = sshll.u32 %s1816_s20, 4  ;;  %s1743_s25 = scalar_lea.hbm %s2161_s2, 6144  ;;  %s1870_s21 = int_to_ptr.vmem [resolvable:$true] %s167_s21 }
   0x7   : > { %s2166_s19 = scalar_select %p1857_p2, 1, 0 }
   0x8   : > { %p1717_p4 = pneg %p1857_p2  ;;  %p1744_p6 = scmp.ne.s32.totalorder %s2161_s2, %s1743_s25 }
   0x9   : > { %p1750_p10 = scmp.lt.u32.totalorder %s1743_s25, %s2161_s2 }
   0xa   : > { %p1866_p5 = pnand %p2164_p3, %p1717_p4 }
   0xc   : > { %p1745_p7 = pneg %p1866_p5 }
   0xe   : > { %p1746_p8 = pnand %p1745_p7, %p1744_p6 }
  0x10   : > { %p1747_p9 = pneg %p1746_p8 }
  0x12   : > { %p1752_p11 = pnand %p1750_p10, %p1747_p9 }
  0x14   : > { %1755 = shalt.err (!%p1752_p11)
}
  0x15   : > { %s1756_s30 = scalar_lea.vmem %s154_s18, 6144  ;;  %p1764_p1 = scmp.lt.s32.totalorder %s154_s18, %s154_s18 }
  0x16   : > { %p1757_p12 = scmp.ne.s32.totalorder %s154_s18, %s1756_s30  ;;  %p1765_p4 = scmp.lt.s32.totalorder %s1756_s30, %s1756_s30 }
  0x18   : > { %p1759_p13 = pnand %p1757_p12, %p1745_p7  ;;  %p1766_p3 = por %p1765_p4, %p1764_p1 }
  0x1a   : > { %p1760_p0 = pneg %p1759_p13 }
  0x1c   : > { %p1767_p2 = pnand %p1766_p3, %p1760_p0 }
  0x1e   : > { %1770 = shalt.err (!%p1767_p2)
}
  0x1f   : > { %s1817_s5 = smov 512   ;;  %s1818_s6 = smov 32  }
  0x20   : > { %1720 = dma.hbm_to_vmem [thread:$0]  (!%p1866_p5), %s2161_s2, 6144, %s154_s18, [#allocation3], %s1817_s5, %s1817_s5, %s1818_s6  }
  0x21   : > { %s1771_s11 = scalar_lea.hbm %s2162_s3, 32 }
  0x22   : > { %p1772_p6 = scmp.ne.s32.totalorder %s2162_s3, %s1771_s11  ;;  %p1778_p8 = scmp.lt.u32.totalorder %s1771_s11, %s2162_s3 }
  0x24   : > { %p1774_p2 = pnand %p1772_p6, %p1745_p7 }
  0x26   : > { %p1775_p3 = pneg %p1774_p2 }
  0x28   : > { %p1780_p9 = pnand %p1778_p8, %p1775_p3 }
  0x2a   : > { %1783 = shalt.err (!%p1780_p9)
}
  0x2b   : > { %s1784_s18 = scalar_lea.vmem %s1870_s21, 32  ;;  %p1792_p13 = scmp.lt.s32.totalorder %s1870_s21, %s1870_s21 }
  0x2c   : > { %p1785_p10 = scmp.ne.s32.totalorder %s1870_s21, %s1784_s18  ;;  %p1793_p0 = scmp.lt.s32.totalorder %s1784_s18, %s1784_s18 }
  0x2e   : > { %p1787_p11 = pnand %p1785_p10, %p1745_p7  ;;  %p1794_p1 = por %p1793_p0, %p1792_p13 }
  0x30   : > { %p1788_p12 = pneg %p1787_p11 }
  0x32   : > { %p1795_p4 = pnand %p1794_p1, %p1788_p12 }
  0x34   : > { %1798 = shalt.err (!%p1795_p4)
}
  0x35   : > { %1723 = dma.hbm_to_vmem [thread:$0]  (!%p1866_p5), %s2162_s3, 32, %s1870_s21, [#allocation5]  }
  0x36   : > { %p2168_p6 = scmp.ne.s32.totalorder %s2166_s19, 0 }
  0x37   : > { %p2169_p2 = scmp.eq.s32.totalorder (!%p2168_p6), %s1853_s16, 0 }
  0x38   : > { %196 = sbr.rel (%p2168_p6) target bundleno = 468 (0x1d4), region = 36 }
  0x3f   : > { %1804 = dma.done.wait (%p2169_p2), [#allocation3], 6144   ;;  %p2170_p7 = pmov %p2169_p2 }
  0x40   : > { %p2171_p3 = pmov %p2169_p2 }
  0x41   : > { %1806 = vsyncadd (%p2170_p7), [#allocation3], 4294961152 }
  0x42   : > { %1808 = dma.done.wait (%p2171_p3), [#allocation5], 32   ;;  %p2172_p8 = pmov %p2169_p2 }
  0x43   : > { %p231_p9 = scmp.lt.s32.totalorder %s1853_s16, 1  ;;  %v1819_v0 = vmov 0.0   ;;  %vm312_vm0 = vcmask 1045504   ;;  %vm1820_vm1 = vmmov 1   ;;  %v264_v2 = vld [vmem:[#allocation2 + $0x88] sm:$0xff]  ;;  %v266_v4 = vld [vmem:[#allocation2 + $0x98] sm:$0xff] }
  0x44   : > { %1810 = vsyncadd (%p2172_p8), [#allocation5], 4294967264  ;;  %389 = vmatprep.mubr.f32.mxu0 %v1819_v0  ;;  %466 = vmatprep.mubr.f32.mxu1 %v1819_v0  ;;  %v268_v3 = vld [vmem:[#allocation2 + $0xa8] sm:$0xff]  ;;  %v270_v6 = vld [vmem:[#allocation2 + $0xb8] sm:$0xff]  ;;  %vm305_vm3 = vcmask 244736   ;;  %vm651_vm4 = vcmask 1046528  }
  0x45   : > { %s2176_s16 = smov (!%p231_p9, %s1853_s16), 1  ;;  %vm1935_vm2 = vmpackc.low %vm312_vm0, %vm1820_vm1  ;;  %v1940_v5 = vpack.c.bf16 %v268_v3, %v264_v2  ;;  %v263_v7 = vld [vmem:[#allocation2 + $0x80] sm:$0xff]  ;;  %v1942_v9 = vpack.c.bf16 %v270_v6, %v266_v4  ;;  %v265_v11 = vld [vmem:[#allocation2 + $0x90] sm:$0xff]  ;;  %s1821_s28 = smov 32   ;;  %vm1336_vm5 = vcmask 261120   ;;  %vm1380_vm6 = vcmask 1043456  }
  0x46   : > { %s1544_s19 = sshll.u32 %s2176_s16, 3  ;;  %v267_v8 = vld [vmem:[#allocation2 + $0xa0] sm:$0xff]  ;;  %v269_v12 = vld [vmem:[#allocation2 + $0xb0] sm:$0xff]  ;;  %v272_v13 = vld [vmem:[#allocation2 + $0xc8] sm:$0xff]  ;;  %s1546_s29 = sshll.u32 %s2176_s16, 4  ;;  %vm1381_vm7 = vcmask 785412  }
  0x47   : > { %v1944_v10 = vpack.c.bf16 %v267_v8, %v263_v7  ;;  %s240_s24 = scalar_lea.vmem %s2160_s1, %s1544_s19  ;;  %1558 = vmatprep.subr.bf16.mxu0 %v1940_v5  ;;  %v1952_v14 = vpack.c.bf16 %v269_v12, %v265_v11  ;;  %v276_v15 = vld [vmem:[#allocation2 + $0xe8] sm:$0x3f]  ;;  %v274_v16 = vld [vmem:[#allocation2 + $0xd8] sm:$0xff]  ;;  %1568 = vmatprep.subr.bf16.mxu1 %v1942_v9  ;;  %v271_v20 = vld [vmem:[#allocation2 + $0xc0] sm:$0xff]  ;;  %s235_s27 = scalar_lea.vmem %s2159_s0, %s1544_s19  ;;  %vm1384_vm9 = vcmask 1042432   ;;  %vm1385_vm10 = vcmask 784388  }
  0x48   : > { %v278_v17 = vld [vmem:[#allocation2 + $0xf8] sm:$0x3f]  ;;  %v1956_v18 = vpack.c.bf16 %v276_v15, %v272_v13  ;;  %v275_v21 = vld [vmem:[#allocation2 + $0xe0] sm:$0x3f]  ;;  %v273_v22 = vld [vmem:[#allocation2 + $0xd0] sm:$0xff]  ;;  %s245_s6 = scalar_lea.vmem %s2163_s4, %s1546_s29 }
  0x49   : > { %1560 = vmatpush1.bf16.msra.mxu0 %v1944_v10  ;;  %v1958_v19 = vpack.c.bf16 %v278_v17, %v274_v16  ;;  %1570 = vmatpush1.bf16.msra.mxu1 %v1952_v14  ;;  %v1961_v23 = vpack.c.bf16 %v275_v21, %v271_v20  ;;  %v277_v24 = vld [vmem:[#allocation2 + $0xf0] sm:$0x3f]  ;;  %v1554_v25 = vld [vmem:[%s240_s24] sm:$0xff]   ;;  %v247_v27 = vld [vmem:[#allocation2 + $0x8] sm:$0xff] }
  0x4a   : > { %1563 = vmatprep.subr.msk.bf16.mxu0 %vm1935_vm2, %v1956_v18  ;;  %v1969_v26 = vpack.c.bf16 %v277_v24, %v273_v22  ;;  %v251_v28 = vld [vmem:[#allocation2 + $0x28] sm:$0xff]  ;;  %v249_v29 = vld [vmem:[#allocation2 + $0x18] sm:$0xff]  ;;  %v1971_v30 = vunpack.c.l.bf16 %v1554_v25  ;;  %v246_v33 = vld [vmem:[#allocation2] sm:$0xff]  ;;  %v1998_v48 = vunpack.c.h.bf16 %v1554_v25 }
  0x4b   : > { %1573 = vmatprep.subr.msk.bf16.mxu1 %vm1935_vm2, %v1958_v19  ;;  %v1973_v31 = vpack.c.bf16 %v251_v28, %v247_v27  ;;  %v253_v32 = vld [vmem:[#allocation2 + $0x38] sm:$0xff]  ;;  %v250_v34 = vld [vmem:[#allocation2 + $0x20] sm:$0xff]  ;;  %v248_v37 = vld [vmem:[#allocation2 + $0x10] sm:$0xff] }
  0x4c   : > { %v1978_v35 = vpack.c.bf16 %v253_v32, %v249_v29  ;;  %v1980_v36 = vpack.c.bf16 %v250_v34, %v246_v33  ;;  %v252_v38 = vld [vmem:[#allocation2 + $0x30] sm:$0xff]  ;;  %v255_v39 = vld [vmem:[#allocation2 + $0x48] sm:$0xff]  ;;  %v257_v42 = vld [vmem:[#allocation2 + $0x58] sm:$0xff] }
  0x4d   : > { %1566 = vmatpush1.bf16.msk.msra.mxu0 %vm1935_vm2, %v1961_v23  ;;  %1576 = vmatpush1.bf16.msk.msra.mxu1 %vm1935_vm2, %v1969_v26  ;;  %v1991_v40 = vpack.c.bf16 %v252_v38, %v248_v37  ;;  %v259_v41 = vld [vmem:[#allocation2 + $0x68] sm:$0x3f]  ;;  %v261_v43 = vld [vmem:[#allocation2 + $0x78] sm:$0x3f]  ;;  %v254_v45 = vld [vmem:[#allocation2 + $0x40] sm:$0xff] }
  0x4e   : > { %1578 = vmatprep.subr.bf16.mxu0 %v1973_v31  ;;  %1588 = vmatprep.subr.bf16.mxu1 %v1978_v35  ;;  %v1994_v44 = vpack.c.bf16 %v259_v41, %v255_v39  ;;  %v258_v46 = vld [vmem:[#allocation2 + $0x60] sm:$0x3f]  ;;  %v256_v47 = vld [vmem:[#allocation2 + $0x50] sm:$0xff]  ;;  %v2000_v49 = vpack.c.bf16 %v261_v43, %v257_v42  ;;  %v281_v51 = vld [vmem:[#allocation2 + $0x108] sm:$0xff] }
  0x4f   : > { %v260_v50 = vld [vmem:[#allocation2 + $0x70] sm:$0x3f]  ;;  %v285_v52 = vld [vmem:[#allocation2 + $0x128] sm:$0xff]  ;;  %v1550_v53 = vld [vmem:[%s235_s27] sm:$0xff]   ;;  %v2005_v54 = vpack.c.bf16 %v258_v46, %v254_v45  ;;  %v1350_v46 = vlaneseq }
  0x50   : > { %1494 = vmatmul.mubr.msk.f32.vlgmr.msra.gmra.mrb[0].mxu0 %vm305_vm3, %v1971_v30  ;;  %1498 = vmatmul.mubr.msk.f32.vlgmr.msra.gmra.mrb[0].mxu1 %vm305_vm3, %v1971_v30  ;;  %v283_v55 = vld [vmem:[#allocation2 + $0x118] sm:$0xff]  ;;  %v2009_v57 = vpack.c.bf16 %v260_v50, %v256_v47  ;;  %v280_v58 = vld [vmem:[#allocation2 + $0x100] sm:$0xff]  ;;  %v2015_v60 = vpack.c.bf16 %v285_v52, %v281_v51  ;;  %v282_v61 = vld [vmem:[#allocation2 + $0x110] sm:$0xff]  ;;  %v1551_v63 = vunpack.c.l.bf16 %v1550_v53  ;;  %v1552_v7 = vunpack.c.h.bf16 %v1550_v53 }
  0x51   : > { %1580 = vmatpush1.bf16.msra.mxu0 %v1980_v36  ;;  %v287_v56 = vld [vmem:[#allocation2 + $0x138] sm:$0xff]  ;;  %1590 = vmatpush1.bf16.msra.mxu1 %v1991_v40  ;;  %v284_v59 = vld [vmem:[#allocation2 + $0x120] sm:$0xff]  ;;  %v286_v62 = vld [vmem:[#allocation2 + $0x130] sm:$0xff]  ;;  %v1351_v47 = vshrl.u32 %v1350_v46, 7 }
  0x52   : > { %395 = vmatprep.mubr.f32.mxu0 %v1819_v0  ;;  %472 = vmatprep.mubr.f32.mxu1 %v1819_v0  ;;  %v2022_v2 = vpack.c.bf16 %v287_v56, %v283_v55  ;;  %v289_v3 = vld [vmem:[#allocation2 + $0x148] sm:$0xff]  ;;  %v2029_v6 = vpack.c.bf16 %v284_v59, %v280_v58  ;;  %v291_v8 = vld [vmem:[#allocation2 + $0x158] sm:$0xff]  ;;  %v2035_v12 = vpack.c.bf16 %v286_v62, %v282_v61  ;;  %v288_v13 = vld [vmem:[#allocation2 + $0x140] sm:$0xff]  ;;  %v653_v22 = vrot.slane %v1552_v7, 1 }
  0x53   : > { %1583 = vmatprep.subr.msk.bf16.mxu0 %vm1935_vm2, %v1994_v44  ;;  %1593 = vmatprep.subr.msk.bf16.mxu1 %vm1935_vm2, %v2000_v49  ;;  %v293_v4 = vld [vmem:[#allocation2 + $0x168] sm:$0x3f]  ;;  %v295_v11 = vld [vmem:[#allocation2 + $0x178] sm:$0x3f]  ;;  %v292_v15 = vld [vmem:[#allocation2 + $0x160] sm:$0x3f] }
  0x54   : > { %1495 = vmatmul.mubr.msk.f32.gmra.mrb[2].mxu0 %vm305_vm3, %v1998_v48  ;;  %1499 = vmatmul.mubr.msk.f32.gmra.mrb[2].mxu1 %vm305_vm3, %v1998_v48  ;;  %v2039_v16 = vpack.c.bf16 %v293_v4, %v289_v3  ;;  %v290_v17 = vld [vmem:[#allocation2 + $0x150] sm:$0xff]  ;;  %v2043_v21 = vpack.c.bf16 %v295_v11, %v291_v8  ;;  %v1604_v24 = vpack.c.bf16 %v292_v15, %v288_v13  ;;  %v652_v25 = vrot.slane %v1551_v63, 1  ;;  %vm1382_vm8 = vmor %vm1381_vm7, %vm1380_vm6 }
  0x55   : > { %1586 = vmatpush1.bf16.msk.msra.mxu0 %vm1935_vm2, %v2005_v54  ;;  %1596 = vmatpush1.bf16.msk.msra.mxu1 %vm1935_vm2, %v2009_v57  ;;  %v294_v20 = vld [vmem:[#allocation2 + $0x170] sm:$0x3f]  ;;  %v1352_v51 = vsub.s32 0, %v1351_v47  ;;  %vm1386_vm11 = vmor %vm1385_vm10, %vm1384_vm9 }
  0x56   : > { %561 = vmatprep.mubr.f32.mxu0 %v1819_v0  ;;  %638 = vmatprep.mubr.f32.mxu1 %v1819_v0  ;;  %v1614_v27 = vpack.c.bf16 %v294_v20, %v290_v17  ;;  %v654_v28 = vsel %vm651_vm4, %v652_v25, %v653_v22 }
  0x57   : > { %1598 = vmatprep.subr.bf16.mxu0 %v2015_v60  ;;  %1608 = vmatprep.subr.bf16.mxu1 %v2022_v2 }
  0x58   : > { %1502 = vmatmul.mubr.msk.f32.vlgmr.msra.gmra.mrb[0].mxu0 %vm305_vm3, %v1551_v63  ;;  %1506 = vmatmul.mubr.msk.f32.vlgmr.msra.gmra.mrb[0].mxu1 %vm305_vm3, %v1551_v63 }
  0x59   : > { %1600 = vmatpush1.bf16.msra.mxu0 %v2029_v6  ;;  %1610 = vmatpush1.bf16.msra.mxu1 %v2035_v12 }
  0x5a   : > { %567 = vmatprep.mubr.f32.mxu0 %v1819_v0  ;;  %644 = vmatprep.mubr.f32.mxu1 %v1819_v0 }
  0x5b   : > { %1603 = vmatprep.subr.msk.bf16.mxu0 %vm1935_vm2, %v2039_v16  ;;  %1613 = vmatprep.subr.msk.bf16.mxu1 %vm1935_vm2, %v2043_v21 }
  0x5c   : > { %1503 = vmatmul.mubr.msk.f32.gmra.mrb[2].mxu0 %vm305_vm3, %v1552_v7  ;;  %1507 = vmatmul.mubr.msk.f32.gmra.mrb[2].mxu1 %vm305_vm3, %v1552_v7 }
  0x5d   : > { %1606 = vmatpush1.bf16.msk.msra.mxu0 %vm1935_vm2, %v1604_v24  ;;  %1616 = vmatpush1.bf16.msk.msra.mxu1 %vm1935_vm2, %v1614_v27 }
  0x5e   : > { %735 = vmatprep.mubr.f32.mxu0 %v1819_v0  ;;  %812 = vmatprep.mubr.f32.mxu1 %v1819_v0 }
  0x5f   : > { %1618 = vmatprep.subr.bf16.mxu0 %v1940_v5  ;;  %1628 = vmatprep.subr.bf16.mxu1 %v1942_v9  ;;  %v1141_v5 = vrot.slane %v1971_v30, 1  ;;  %v1142_v9 = vrot.slane %v1998_v48, 1 }
  0x60   : > { %1510 = vmatmul.mubr.msk.f32.vlgmr.msra.gmra.mrb[0].mxu0 %vm305_vm3, %v654_v28  ;;  %1514 = vmatmul.mubr.msk.f32.vlgmr.msra.gmra.mrb[0].mxu1 %vm305_vm3, %v654_v28 }
  0x61   : > { %1620 = vmatpush1.bf16.msra.mxu0 %v1944_v10  ;;  %1630 = vmatpush1.bf16.msra.mxu1 %v1952_v14  ;;  %v1143_v10 = vsel %vm651_vm4, %v1141_v5, %v1142_v9 }
  0x62   : > { %741 = vmatprep.mubr.f32.mxu0 %v1819_v0  ;;  %818 = vmatprep.mubr.f32.mxu1 %v1819_v0 }
  0x63   : > { %1623 = vmatprep.subr.msk.bf16.mxu0 %vm1935_vm2, %v1956_v18  ;;  %1633 = vmatprep.subr.msk.bf16.mxu1 %vm1935_vm2, %v1958_v19 }
  0x64   : > { %1511 = vmatmul.mubr.msk.f32.gmra.mrb[2].mxu0 %vm305_vm3, %v653_v22  ;;  %1515 = vmatmul.mubr.msk.f32.gmra.mrb[2].mxu1 %vm305_vm3, %v653_v22 }
  0x65   : > { %1626 = vmatpush1.bf16.msk.msra.mxu0 %vm1935_vm2, %v1961_v23  ;;  %1636 = vmatpush1.bf16.msk.msra.mxu1 %vm1935_vm2, %v1969_v26 }
  0x66   : > { %897 = vmatprep.mubr.f32.mxu0 %v1819_v0  ;;  %974 = vmatprep.mubr.f32.mxu1 %v1819_v0 }
  0x67   : > { %1638 = vmatprep.subr.bf16.mxu0 %v1973_v31  ;;  %1648 = vmatprep.subr.bf16.mxu1 %v1978_v35 }
  0x68   : > { %1518 = vmatmul.mubr.msk.f32.vlgmr.msra.gmra.mrb[4].mxu0 %vm305_vm3, %v654_v28  ;;  %1522 = vmatmul.mubr.msk.f32.vlgmr.msra.gmra.mrb[4].mxu1 %vm305_vm3, %v654_v28 }
  0x69   : > { %1640 = vmatpush1.bf16.msra.mxu0 %v1980_v36  ;;  %1650 = vmatpush1.bf16.msra.mxu1 %v1991_v40 }
  0x6a   : > { %903 = vmatprep.mubr.f32.mxu0 %v1819_v0  ;;  %980 = vmatprep.mubr.f32.mxu1 %v1819_v0 }
  0x6b   : > { %1643 = vmatprep.subr.msk.bf16.mxu0 %vm1935_vm2, %v1994_v44  ;;  %1653 = vmatprep.subr.msk.bf16.mxu1 %vm1935_vm2, %v2000_v49  ;;  %v296_v49 = vld [vmem:[#allocation4] sm:$0x3] }
  0x6c   : > { %1519 = vmatmul.mubr.msk.f32.gmra.mrb[6].mxu0 %vm305_vm3, %v653_v22  ;;  %1523 = vmatmul.mubr.msk.f32.gmra.mrb[6].mxu1 %vm305_vm3, %v653_v22  ;;  %v1353_v56 = vrot.slane %v296_v49, %v1352_v51 }
  0x6d   : > { %1646 = vmatpush1.bf16.msk.msra.mxu0 %vm1935_vm2, %v2005_v54  ;;  %1656 = vmatpush1.bf16.msk.msra.mxu1 %vm1935_vm2, %v2009_v57 }
  0x6e   : > { %1051 = vmatprep.mubr.f32.mxu0 %v1819_v0  ;;  %1128 = vmatprep.mubr.f32.mxu1 %v1819_v0 }
  0x6f   : > { %1658 = vmatprep.subr.bf16.mxu0 %v2015_v60  ;;  %1668 = vmatprep.subr.bf16.mxu1 %v2022_v2 }
  0x70   : > { %1526 = vmatmul.mubr.msk.f32.vlgmr.msra.gmra.mrb[4].mxu0 %vm305_vm3, %v1971_v30  ;;  %1530 = vmatmul.mubr.msk.f32.vlgmr.msra.gmra.mrb[4].mxu1 %vm305_vm3, %v1971_v30 }
  0x71   : > { %1660 = vmatpush1.bf16.msra.mxu0 %v2029_v6  ;;  %1670 = vmatpush1.bf16.msra.mxu1 %v2035_v12 }
  0x72   : > { %1057 = vmatprep.mubr.f32.mxu0 %v1819_v0  ;;  %1134 = vmatprep.mubr.f32.mxu1 %v1819_v0 }
  0x73   : > { %1663 = vmatprep.subr.msk.bf16.mxu0 %vm1935_vm2, %v2039_v16  ;;  %1673 = vmatprep.subr.msk.bf16.mxu1 %vm1935_vm2, %v2043_v21 }
  0x74   : > { %1527 = vmatmul.mubr.msk.f32.gmra.mrb[6].mxu0 %vm305_vm3, %v1998_v48  ;;  %1531 = vmatmul.mubr.msk.f32.gmra.mrb[6].mxu1 %vm305_vm3, %v1998_v48  ;;  %v1356_v48 = vsub.s32 1, %v1351_v47 }
  0x75   : > { %1666 = vmatpush1.bf16.msk.msra.mxu0 %vm1935_vm2, %v1604_v24  ;;  %1676 = vmatpush1.bf16.msk.msra.mxu1 %vm1935_vm2, %v1614_v27 }
  0x76   : > { %1212 = vmatprep.mubr.f32.mxu0 %v1819_v0  ;;  %1289 = vmatprep.mubr.f32.mxu1 %v1819_v0  ;;  %v1357_v53 = vrot.slane %v296_v49, %v1356_v48 }
  0x78   : > { %1534 = vmatmul.mubr.msk.f32.vlgmr.msra.gmra.mrb[4].mxu0 %vm305_vm3, %v1143_v10  ;;  %1538 = vmatmul.mubr.msk.f32.vlgmr.msra.gmra.mrb[4].mxu1 %vm305_vm3, %v1143_v10 }
  0x79   : > { %1218 = vmatprep.mubr.f32.mxu0 %v1819_v0  ;;  %1295 = vmatprep.mubr.f32.mxu1 %v1819_v0 }
  0x7c   : > { %1535 = vmatmul.mubr.msk.f32.gmra.mrb[6].mxu0 %vm305_vm3, %v1142_v9  ;;  %1539 = vmatmul.mubr.msk.f32.gmra.mrb[6].mxu1 %vm305_vm3, %v1142_v9 }
 0x133   : > { %v737_v14 = vpop.f32.mrb[0].mxu0  ;;  %v814_v18 = vpop.f32.mrb[0].mxu1 }
 0x134   : > { %v739_v1 = vpop.f32.mrb[1].mxu0  ;;  %v816_v19 = vpop.f32.mrb[1].mxu1 }
 0x137   : > { %v743_v23 = vpop.f32.mrb[2].mxu0  ;;  %v820_v26 = vpop.f32.mrb[2].mxu1 }
 0x138   : > { %v745_v29 = vpop.f32.mrb[3].mxu0  ;;  %v822_v30 = vpop.f32.mrb[3].mxu1 }
 0x14b   : > { %v1214_v31 = vpop.f32.mrb[4].mxu0  ;;  %v1291_v33 = vpop.f32.mrb[4].mxu1 }
 0x14c   : > { %v1310_v32 = vmax.f32 %v737_v14, %v1214_v31  ;;  %v1216_v34 = vpop.f32.mrb[5].mxu0  ;;  %v1312_v35 = vmax.f32 %v814_v18, %v1291_v33  ;;  %v1293_v37 = vpop.f32.mrb[5].mxu1 }
 0x14d   : > { %v1311_v36 = vmax.f32 %v739_v1, %v1216_v34  ;;  %v1313_v0 = vmax.f32 %v816_v19, %v1293_v37 }
 0x14e   : > { %1326 = vrot.lane.b32.xlu0 %v1312_v35, %s1821_s28 }
 0x14f   : > { %v1220_v38 = vpop.f32.mrb[6].mxu0  ;;  %1328 = vrot.lane.b32.xlu1 %v1313_v0, %s1821_s28  ;;  %v1297_v40 = vpop.f32.mrb[6].mxu1 }
 0x150   : > { %v1314_v39 = vmax.f32 %v743_v23, %v1220_v38  ;;  %v1222_v41 = vpop.f32.mrb[7].mxu0  ;;  %v1316_v42 = vmax.f32 %v820_v26, %v1297_v40  ;;  %v1299_v44 = vpop.f32.mrb[7].mxu1 }
 0x151   : > { %v1315_v43 = vmax.f32 %v745_v29, %v1222_v41  ;;  %v1317_v45 = vmax.f32 %v822_v30, %v1299_v44 }
 0x152   : > { %1324 = vrot.lane.b32.xlu0 %v1311_v36, %s1821_s28 }
 0x153   : > { %1330 = vrot.lane.b32.xlu1 %v1315_v43, %s1821_s28 }
 0x156   : > { %1332 = vrot.lane.b32.xlu0 %v1316_v42, %s1821_s28 }
 0x157   : > { %1334 = vrot.lane.b32.xlu1 %v1317_v45, %s1821_s28 }
 0x1c0   : > { %v1327_v50 = vpop.permute.xlu0 %1326 }
 0x1c1   : > { %v1329_v52 = vpop.permute.xlu1 %1328 }
 0x1c2   : > { %v1338_v54 = vsel %vm1336_vm5, %v1327_v50, %v1329_v52 }
 0x1c3   : > { %v1346_v55 = vmax.f32 %v1311_v36, %v1338_v54 }
 0x1c4   : > { %v1325_v57 = vpop.permute.xlu0 %1324 }
 0x1c5   : > { %v1337_v58 = vsel %vm1336_vm5, %v1325_v57, %v1327_v50  ;;  %v1331_v59 = vpop.permute.xlu1 %1330  ;;  %v1361_v60 = vadd.f32 %v1357_v53, %v1346_v55 }
 0x1c6   : > { %v1345_v61 = vmax.f32 %v1310_v32, %v1337_v58 }
 0x1c7   : > { %v1365_v4 = vmax.f32 %v1361_v60, 0.0 }
 0x1c8   : > { %v1360_v62 = vadd.f32 %v1353_v56, %v1345_v61  ;;  %v1333_v63 = vpop.permute.xlu0 %1332 }
 0x1c9   : > { %v1339_v2 = vsel %vm1336_vm5, %v1331_v59, %v1333_v63  ;;  %v1335_v3 = vpop.permute.xlu1 %1334 }
 0x1ca   : > { %v1364_v6 = vmax.f32 %v1360_v62, 0.0  ;;  %v1347_v7 = vmax.f32 %v1314_v39, %v1339_v2  ;;  %v1340_v8 = vsel %vm1336_vm5, %v1333_v63, %v1335_v3 }
 0x1cb   : > { %v1348_v11 = vmax.f32 %v1315_v43, %v1340_v8 }
 0x1cc   : > { %v1547_v12 = vpack.c.bf16 %v1365_v4, %v1364_v6  ;;  %v1362_v13 = vadd.f32 %v1353_v56, %v1347_v7 }
 0x1cd   : > { %v1363_v15 = vadd.f32 %v1357_v53, %v1348_v11 }
 0x1ce   : > { %1383 = vst.msk [vmem:[%s245_s6] sm:$0xff] %vm1382_vm8, %v1547_v12  ;;  %v1366_v16 = vmax.f32 %v1362_v13, 0.0 }
 0x1cf   : > { %v1367_v17 = vmax.f32 %v1363_v15, 0.0 }
 0x1d1   : > { %v1548_v20 = vpack.c.bf16 %v1367_v17, %v1366_v16 }
 0x1d3   : > { %1387 = vst.msk [vmem:[%s245_s6 + $0x8] sm:$0x77] %vm1386_vm11, %v1548_v20 }
 0x1d4 PF: > { %s16_s15 = sadd.s32 1, %s1813_s15  }
 0x1d5   : > { %p13_p5 = scmp.ge.s32.totalorder %s16_s15, 4  }
 0x1d7   :  { %15 = sbr.rel (!%p13_p5) target bundleno = 2 (0x2), region = 80 }
 0x1de   :  { %1409 = vsyncpa [#allocation3], 1 }
 0x1df   :  { %1411 = vsyncpa [#allocation3 + $0x1], 1 }
 0x1e0   :  { %1412 = vsyncpa [#allocation5], 1 }

// kernel: cnn_forward.4
= control target key start
LH: loop header
LB: loop body
LE: loop exit
PB: predicated region body
PF: predicated region fallthrough
CT: control target
= control target key end

     0   :  { %s2704_s15 = smov 0   ;;  %s4706_s0 = inlined_call_operand.vmem [shape: bf16[2,8,256], index: 0, kind: input, shape index: {}]   ;;  %s4707_s1 = inlined_call_operand.vmem [shape: bf16[2,8,256], index: 1, kind: input, shape index: {}]   ;;  %s4708_s2 = inlined_call_operand.vmem [shape: f32[3,256,448], index: 2, kind: input, shape index: {}]   ;;  %s4709_s3 = inlined_call_operand.vmem [shape: f32[1,224], index: 3, kind: input, shape index: {}]   ;;  %s4710_s4 = inlined_call_operand.vmem [shape: bf16[2,7,224], index: 4, kind: output, shape index: {}]  }
   0x1 LB: > { %s1603_s16 = sadd.s32 4294967295, %s2676_s15   ;;  %p1607_p0 = scmp.ge.s32.totalorder %s2676_s15, 1  ;;  %s2676_s15 = sphi %s2704_s15, %s14_s15  }
   0x2   : > { %p172_p1 = scmp.lt.s32.totalorder %s2676_s15, 3 }
   0x4   : > { %p173_p2 = pnand %p1607_p0, %p172_p1 }
   0x6   : > { %176 = sbr.rel (%p173_p2) target bundleno = 746 (0x2ea), region = 36 }
   0xd   : > { %v1615_v0 = vld [vmem:[%s4708_s2 + $0x408] sm:$0xff]  ;;  %v1617_v2 = vld [vmem:[%s4708_s2 + $0x418] sm:$0xff]  ;;  %v1614_v5 = vld [vmem:[%s4708_s2 + $0x400] sm:$0xff]  ;;  %p3007_p3 = scmp.lt.s32.totalorder %s1603_s16, 1  ;;  %s2678_s24 = smov 32   ;;  %vm1496_vm0 = vcmask 261120  }
   0xe   : > { %v1619_v1 = vld [vmem:[%s4708_s2 + $0x428] sm:$0xff]  ;;  %v1621_v4 = vld [vmem:[%s4708_s2 + $0x438] sm:$0xff]  ;;  %v1618_v6 = vld [vmem:[%s4708_s2 + $0x420] sm:$0xff]  ;;  %vm1526_vm1 = vcmask 1043456   ;;  %vm1527_vm2 = vsmask.f32 3328 }
   0xf   : > { %v2721_v3 = vpack.c.bf16 %v1619_v1, %v1615_v0  ;;  %v2732_v7 = vpack.c.bf16 %v1621_v4, %v1617_v2  ;;  %v2734_v8 = vpack.c.bf16 %v1618_v6, %v1614_v5  ;;  %v1616_v9 = vld [vmem:[%s4708_s2 + $0x410] sm:$0xff]  ;;  %v1623_v11 = vld [vmem:[%s4708_s2 + $0x448] sm:$0xff]  ;;  %v1625_v14 = vld [vmem:[%s4708_s2 + $0x458] sm:$0xff]  ;;  %s5132_s16 = smov (!%p3007_p3, %s1603_s16), 1  ;;  %vm1529_vm3 = vcmask 785412  }
  0x10   : > { %v1620_v10 = vld [vmem:[%s4708_s2 + $0x430] sm:$0xff]  ;;  %v1627_v13 = vld [vmem:[%s4708_s2 + $0x468] sm:$0xff]  ;;  %v1629_v15 = vld [vmem:[%s4708_s2 + $0x478] sm:$0xff]  ;;  %s3087_s18 = sshll.u32 %s5132_s16, 3  ;;  %vm1530_vm4 = vsmask.f32 7424 }
  0x11   : > { %1878 = vmatprep.subr.bf16.mxu0 %v2721_v3  ;;  %v2746_v12 = vpack.c.bf16 %v1620_v10, %v1616_v9  ;;  %1942 = vmatprep.subr.bf16.mxu1 %v2732_v7  ;;  %v2759_v16 = vpack.c.bf16 %v1627_v13, %v1623_v11  ;;  %v2761_v17 = vpack.c.bf16 %v1629_v15, %v1625_v14  ;;  %v1622_v18 = vld [vmem:[%s4708_s2 + $0x440] sm:$0xff]  ;;  %v1624_v20 = vld [vmem:[%s4708_s2 + $0x450] sm:$0xff]  ;;  %v1631_v23 = vld [vmem:[%s4708_s2 + $0x488] sm:$0xff]  ;;  %s212_s10 = scalar_lea.vmem %s4707_s1, %s3087_s18  ;;  %s207_s20 = scalar_lea.vmem %s4706_s0, %s3087_s18 }
  0x12   : > { %1880 = vmatpush1.bf16.msra.mxu0 %v2734_v8  ;;  %v1626_v19 = vld [vmem:[%s4708_s2 + $0x460] sm:$0xff]  ;;  %v1628_v22 = vld [vmem:[%s4708_s2 + $0x470] sm:$0xff]  ;;  %v1635_v24 = vld [vmem:[%s4708_s2 + $0x4a8] sm:$0xff]  ;;  %s217_s29 = scalar_lea.vmem %s4710_s4, %s3087_s18 }
  0x13   : > { %1944 = vmatpush1.bf16.msra.mxu1 %v2746_v12  ;;  %v2773_v21 = vpack.c.bf16 %v1626_v19, %v1622_v18  ;;  %1882 = vmatprep.subr.bf16.mxu0 %v2759_v16  ;;  %v2786_v25 = vpack.c.bf16 %v1628_v22, %v1624_v20  ;;  %v2788_v26 = vpack.c.bf16 %v1635_v24, %v1631_v23  ;;  %v1633_v27 = vld [vmem:[%s4708_s2 + $0x498] sm:$0xff]  ;;  %v1630_v29 = vld [vmem:[%s4708_s2 + $0x480] sm:$0xff]  ;;  %v1632_v32 = vld [vmem:[%s4708_s2 + $0x490] sm:$0xff] }
  0x14   : > { %1946 = vmatprep.subr.bf16.mxu1 %v2761_v17  ;;  %v1637_v28 = vld [vmem:[%s4708_s2 + $0x4b8] sm:$0xff]  ;;  %v1634_v31 = vld [vmem:[%s4708_s2 + $0x4a0] sm:$0xff]  ;;  %v1636_v33 = vld [vmem:[%s4708_s2 + $0x4b0] sm:$0xff] }
  0x15   : > { %v2799_v30 = vpack.c.bf16 %v1637_v28, %v1633_v27  ;;  %v2811_v34 = vpack.c.bf16 %v1634_v31, %v1630_v29  ;;  %v1639_v35 = vld [vmem:[%s4708_s2 + $0x4c8] sm:$0xff]  ;;  %v1641_v37 = vld [vmem:[%s4708_s2 + $0x4d8] sm:$0xff]  ;;  %v2824_v38 = vpack.c.bf16 %v1636_v33, %v1632_v32  ;;  %v1638_v41 = vld [vmem:[%s4708_s2 + $0x4c0] sm:$0xff] }
  0x16   : > { %1884 = vmatpush1.bf16.msra.mxu0 %v2773_v21  ;;  %v1643_v36 = vld [vmem:[%s4708_s2 + $0x4e8] sm:$0xff]  ;;  %v1645_v40 = vld [vmem:[%s4708_s2 + $0x4f8] sm:$0xff]  ;;  %v1642_v42 = vld [vmem:[%s4708_s2 + $0x4e0] sm:$0xff] }
  0x17   : > { %1948 = vmatpush1.bf16.msra.mxu1 %v2786_v25  ;;  %1886 = vmatprep.subr.bf16.mxu0 %v2788_v26  ;;  %v2826_v39 = vpack.c.bf16 %v1643_v36, %v1639_v35  ;;  %v2838_v43 = vpack.c.bf16 %v1645_v40, %v1641_v37  ;;  %v1640_v44 = vld [vmem:[%s4708_s2 + $0x4d0] sm:$0xff]  ;;  %v1647_v46 = vld [vmem:[%s4708_s2 + $0x508] sm:$0xff]  ;;  %v1649_v48 = vld [vmem:[%s4708_s2 + $0x518] sm:$0xff]  ;;  %v2859_v50 = vpack.c.bf16 %v1642_v42, %v1638_v41 }
  0x18   : > { %1950 = vmatprep.subr.bf16.mxu1 %v2799_v30  ;;  %v1644_v45 = vld [vmem:[%s4708_s2 + $0x4f0] sm:$0xff]  ;;  %v1651_v47 = vld [vmem:[%s4708_s2 + $0x528] sm:$0xff]  ;;  %v1653_v49 = vld [vmem:[%s4708_s2 + $0x538] sm:$0xff] }
  0x19   : > { %v2863_v51 = vpack.c.bf16 %v1644_v45, %v1640_v44  ;;  %v2865_v52 = vpack.c.bf16 %v1651_v47, %v1647_v46  ;;  %v1646_v53 = vld [vmem:[%s4708_s2 + $0x500] sm:$0xff]  ;;  %v1648_v55 = vld [vmem:[%s4708_s2 + $0x510] sm:$0xff]  ;;  %v2877_v56 = vpack.c.bf16 %v1653_v49, %v1649_v48  ;;  %v1655_v58 = vld [vmem:[%s4708_s2 + $0x548] sm:$0xff] }
  0x1a   : > { %1888 = vmatpush1.bf16.msra.mxu0 %v2811_v34  ;;  %v1650_v54 = vld [vmem:[%s4708_s2 + $0x520] sm:$0xff]  ;;  %v1652_v57 = vld [vmem:[%s4708_s2 + $0x530] sm:$0xff]  ;;  %v1659_v59 = vld [vmem:[%s4708_s2 + $0x568] sm:$0xff] }
  0x1b   : > { %1952 = vmatpush1.bf16.msra.mxu1 %v2824_v38  ;;  %1890 = vmatprep.subr.bf16.mxu0 %v2826_v39  ;;  %v1657_v60 = vld [vmem:[%s4708_s2 + $0x558] sm:$0xff]  ;;  %v2895_v62 = vpack.c.bf16 %v1650_v54, %v1646_v53  ;;  %v2899_v63 = vpack.c.bf16 %v1652_v57, %v1648_v55  ;;  %v2901_v0 = vpack.c.bf16 %v1659_v59, %v1655_v58  ;;  %v1654_v1 = vld [vmem:[%s4708_s2 + $0x540] sm:$0xff]  ;;  %v1656_v4 = vld [vmem:[%s4708_s2 + $0x550] sm:$0xff] }
  0x1c   : > { %1954 = vmatprep.subr.bf16.mxu1 %v2838_v43  ;;  %v1661_v61 = vld [vmem:[%s4708_s2 + $0x578] sm:$0xff]  ;;  %v1658_v2 = vld [vmem:[%s4708_s2 + $0x560] sm:$0xff]  ;;  %v1660_v6 = vld [vmem:[%s4708_s2 + $0x570] sm:$0xff] }
  0x1d   : > { %v2913_v5 = vpack.c.bf16 %v1661_v61, %v1657_v60  ;;  %v1663_v9 = vld [vmem:[%s4708_s2 + $0x588] sm:$0xff]  ;;  %v1665_v11 = vld [vmem:[%s4708_s2 + $0x598] sm:$0xff]  ;;  %v2931_v14 = vpack.c.bf16 %v1658_v2, %v1654_v1  ;;  %v2935_v15 = vpack.c.bf16 %v1660_v6, %v1656_v4  ;;  %v1662_v19 = vld [vmem:[%s4708_s2 + $0x580] sm:$0xff] }
  0x1e   : > { %1892 = vmatpush1.bf16.msra.mxu0 %v2859_v50  ;;  %v1667_v10 = vld [vmem:[%s4708_s2 + $0x5a8] sm:$0xff]  ;;  %v1669_v13 = vld [vmem:[%s4708_s2 + $0x5b8] sm:$0xff]  ;;  %v1666_v20 = vld [vmem:[%s4708_s2 + $0x5a0] sm:$0xff] }
  0x1f   : > { %1956 = vmatpush1.bf16.msra.mxu1 %v2863_v51  ;;  %1894 = vmatprep.subr.bf16.mxu0 %v2865_v52  ;;  %v2937_v18 = vpack.c.bf16 %v1667_v10, %v1663_v9  ;;  %v1664_v22 = vld [vmem:[%s4708_s2 + $0x590] sm:$0xff]  ;;  %v2949_v23 = vpack.c.bf16 %v1669_v13, %v1665_v11  ;;  %v1671_v27 = vld [vmem:[%s4708_s2 + $0x5c8] sm:$0xff]  ;;  %v1673_v29 = vld [vmem:[%s4708_s2 + $0x5d8] sm:$0xff]  ;;  %v2967_v32 = vpack.c.bf16 %v1666_v20, %v1662_v19 }
  0x20   : > { %1958 = vmatprep.subr.bf16.mxu1 %v2877_v56  ;;  %v1668_v24 = vld [vmem:[%s4708_s2 + $0x5b0] sm:$0xff]  ;;  %v1675_v28 = vld [vmem:[%s4708_s2 + $0x5e8] sm:$0xff]  ;;  %v1677_v31 = vld [vmem:[%s4708_s2 + $0x5f8] sm:$0xff] }
  0x21   : > { %v2971_v33 = vpack.c.bf16 %v1668_v24, %v1664_v22  ;;  %v2973_v35 = vpack.c.bf16 %v1675_v28, %v1671_v27  ;;  %v1670_v36 = vld [vmem:[%s4708_s2 + $0x5c0] sm:$0xff]  ;;  %v1672_v40 = vld [vmem:[%s4708_s2 + $0x5d0] sm:$0xff]  ;;  %v2985_v41 = vpack.c.bf16 %v1677_v31, %v1673_v29  ;;  %v1679_v44 = vld [vmem:[%s4708_s2 + $0x608] sm:$0xff] }
  0x22   : > { %1896 = vmatpush1.bf16.msra.mxu0 %v2895_v62  ;;  %v1674_v37 = vld [vmem:[%s4708_s2 + $0x5e0] sm:$0xff]  ;;  %v1676_v42 = vld [vmem:[%s4708_s2 + $0x5f0] sm:$0xff]  ;;  %v1683_v45 = vld [vmem:[%s4708_s2 + $0x628] sm:$0xff] }
  0x23   : > { %1960 = vmatpush1.bf16.msra.mxu1 %v2899_v63  ;;  %1898 = vmatprep.subr.bf16.mxu0 %v2901_v0  ;;  %v1681_v46 = vld [vmem:[%s4708_s2 + $0x618] sm:$0xff]  ;;  %v3003_v48 = vpack.c.bf16 %v1674_v37, %v1670_v36  ;;  %v3013_v49 = vpack.c.bf16 %v1676_v42, %v1672_v40  ;;  %v3015_v53 = vpack.c.bf16 %v1683_v45, %v1679_v44  ;;  %v1678_v54 = vld [vmem:[%s4708_s2 + $0x600] sm:$0xff]  ;;  %v1680_v57 = vld [vmem:[%s4708_s2 + $0x610] sm:$0xff] }
  0x24   : > { %1962 = vmatprep.subr.bf16.mxu1 %v2913_v5  ;;  %v1685_v47 = vld [vmem:[%s4708_s2 + $0x638] sm:$0xff]  ;;  %v1682_v55 = vld [vmem:[%s4708_s2 + $0x620] sm:$0xff]  ;;  %v1684_v59 = vld [vmem:[%s4708_s2 + $0x630] sm:$0xff] }
  0x25   : > { %v3027_v58 = vpack.c.bf16 %v1685_v47, %v1681_v46  ;;  %v1687_v60 = vld [vmem:[%s4708_s2 + $0x648] sm:$0xff]  ;;  %v1689_v1 = vld [vmem:[%s4708_s2 + $0x658] sm:$0xff]  ;;  %v3045_v4 = vpack.c.bf16 %v1682_v55, %v1678_v54  ;;  %v3053_v6 = vpack.c.bf16 %v1684_v59, %v1680_v57  ;;  %v1686_v10 = vld [vmem:[%s4708_s2 + $0x640] sm:$0xff] }
  0x26   : > { %1900 = vmatpush1.bf16.msra.mxu0 %v2931_v14  ;;  %v1691_v61 = vld [vmem:[%s4708_s2 + $0x668] sm:$0xff]  ;;  %v1693_v2 = vld [vmem:[%s4708_s2 + $0x678] sm:$0xff]  ;;  %v1690_v11 = vld [vmem:[%s4708_s2 + $0x660] sm:$0xff] }
  0x27   : > { %1964 = vmatpush1.bf16.msra.mxu1 %v2935_v15  ;;  %1902 = vmatprep.subr.bf16.mxu0 %v2937_v18  ;;  %v3055_v9 = vpack.c.bf16 %v1691_v61, %v1687_v60  ;;  %v1688_v13 = vld [vmem:[%s4708_s2 + $0x650] sm:$0xff]  ;;  %v3067_v19 = vpack.c.bf16 %v1693_v2, %v1689_v1  ;;  %v1695_v22 = vld [vmem:[%s4708_s2 + $0x688] sm:$0xff]  ;;  %v1697_v27 = vld [vmem:[%s4708_s2 + $0x698] sm:$0xff]  ;;  %v3085_v29 = vpack.c.bf16 %v1690_v11, %v1686_v10 }
  0x28   : > { %1966 = vmatprep.subr.bf16.mxu1 %v2949_v23  ;;  %v1692_v20 = vld [vmem:[%s4708_s2 + $0x670] sm:$0xff]  ;;  %v1699_v24 = vld [vmem:[%s4708_s2 + $0x6a8] sm:$0xff]  ;;  %v1701_v28 = vld [vmem:[%s4708_s2 + $0x6b8] sm:$0xff] }
  0x29   : > { %v3091_v31 = vpack.c.bf16 %v1692_v20, %v1688_v13  ;;  %v3093_v36 = vpack.c.bf16 %v1699_v24, %v1695_v22  ;;  %v1694_v37 = vld [vmem:[%s4708_s2 + $0x680] sm:$0xff]  ;;  %v1696_v42 = vld [vmem:[%s4708_s2 + $0x690] sm:$0xff]  ;;  %v3105_v44 = vpack.c.bf16 %v1701_v28, %v1697_v27  ;;  %v1703_v46 = vld [vmem:[%s4708_s2 + $0x6c8] sm:$0xff] }
  0x2a   : > { %1904 = vmatpush1.bf16.msra.mxu0 %v2967_v32  ;;  %v1698_v40 = vld [vmem:[%s4708_s2 + $0x6a0] sm:$0xff]  ;;  %v1700_v45 = vld [vmem:[%s4708_s2 + $0x6b0] sm:$0xff]  ;;  %v1707_v47 = vld [vmem:[%s4708_s2 + $0x6e8] sm:$0xff] }
  0x2b   : > { %1968 = vmatpush1.bf16.msra.mxu1 %v2971_v33  ;;  %1906 = vmatprep.subr.bf16.mxu0 %v2973_v35  ;;  %v1705_v54 = vld [vmem:[%s4708_s2 + $0x6d8] sm:$0xff]  ;;  %v3127_v57 = vpack.c.bf16 %v1698_v40, %v1694_v37  ;;  %v1702_v59 = vld [vmem:[%s4708_s2 + $0x6c0] sm:$0xff]  ;;  %v3134_v60 = vpack.c.bf16 %v1700_v45, %v1696_v42  ;;  %v3136_v61 = vpack.c.bf16 %v1707_v47, %v1703_v46  ;;  %v1704_v2 = vld [vmem:[%s4708_s2 + $0x6d0] sm:$0xff] }
  0x2c   : > { %1970 = vmatprep.subr.bf16.mxu1 %v2985_v41  ;;  %v1709_v55 = vld [vmem:[%s4708_s2 + $0x6f8] sm:$0xff]  ;;  %v1706_v1 = vld [vmem:[%s4708_s2 + $0x6e0] sm:$0xff]  ;;  %v1708_v10 = vld [vmem:[%s4708_s2 + $0x6f0] sm:$0xff] }
  0x2d   : > { %v3148_v11 = vpack.c.bf16 %v1709_v55, %v1705_v54  ;;  %v1711_v13 = vld [vmem:[%s4708_s2 + $0x708] sm:$0xff]  ;;  %v3156_v22 = vld [vmem:[%s212_s10] sm:$0xff]  ;;  %v1713_v24 = vld [vmem:[%s4708_s2 + $0x718] sm:$0xff]  ;;  %v3168_v37 = vpack.c.bf16 %v1706_v1, %v1702_v59  ;;  %v3172_v40 = vpack.c.bf16 %v1708_v10, %v1704_v2 }
  0x2e   : > { %1908 = vmatpush1.bf16.msra.mxu0 %v3003_v48  ;;  %v1715_v20 = vld [vmem:[%s4708_s2 + $0x728] sm:$0xff]  ;;  %v1717_v27 = vld [vmem:[%s4708_s2 + $0x738] sm:$0xff]  ;;  %v3165_v28 = vunpack.c.h.bf16 %v3156_v22  ;;  %v1710_v45 = vld [vmem:[%s4708_s2 + $0x700] sm:$0xff] }
  0x2f   : > { %1972 = vmatpush1.bf16.msra.mxu1 %v3013_v49  ;;  %1910 = vmatprep.subr.bf16.mxu0 %v3015_v53  ;;  %4853 = vst [vmem:[#allocation2_spill] sm:$0xff] %v3148_v11  ;;  %4855 = vst [vmem:[#allocation4_spill] sm:$0xff] %v3168_v37  ;;  %v3174_v42 = vpack.c.bf16 %v1715_v20, %v1711_v13  ;;  %v1714_v46 = vld [vmem:[%s4708_s2 + $0x720] sm:$0xff]  ;;  %v1712_v47 = vld [vmem:[%s4708_s2 + $0x710] sm:$0xff]  ;;  %v3186_v54 = vpack.c.bf16 %v1717_v27, %v1713_v24 }
  0x30   : > { %1974 = vmatprep.subr.bf16.mxu1 %v3027_v58  ;;  %4854 = vst [vmem:[#allocation3_spill] sm:$0xff] %v3165_v28  ;;  %4856 = vst [vmem:[#allocation5_spill] sm:$0xff] %v3172_v40  ;;  %v1716_v55 = vld [vmem:[%s4708_s2 + $0x730] sm:$0xff]  ;;  %v1719_v59 = vld [vmem:[%s4708_s2 + $0x748] sm:$0xff]  ;;  %675 = vmatprep.mubr.f32.mxu0 %v3165_v28  ;;  %v3206_v13 = vpack.c.bf16 %v1714_v46, %v1710_v45 }
  0x31   : > { %4857 = vst [vmem:[#allocation6_spill] sm:$0xff] %v3174_v42  ;;  %4858 = vst [vmem:[#allocation7_spill] sm:$0xff] %v3186_v54  ;;  %v1723_v1 = vld [vmem:[%s4708_s2 + $0x768] sm:$0xff]  ;;  %v1721_v2 = vld [vmem:[%s4708_s2 + $0x758] sm:$0xff]  ;;  %746 = vmatprep.mubr.f32.mxu1 %v3165_v28  ;;  %v3210_v20 = vpack.c.bf16 %v1716_v55, %v1712_v47 }
  0x32   : > { %1912 = vmatpush1.bf16.msra.mxu0 %v3045_v4  ;;  %v1725_v10 = vld [vmem:[%s4708_s2 + $0x778] sm:$0xff]  ;;  %4859 = vst [vmem:[#allocation8_spill] sm:$0xff] %v3206_v13  ;;  %v3212_v24 = vpack.c.bf16 %v1723_v1, %v1719_v59  ;;  %v1718_v27 = vld [vmem:[%s4708_s2 + $0x740] sm:$0xff]  ;;  %v1720_v45 = vld [vmem:[%s4708_s2 + $0x750] sm:$0xff] }
  0x33   : > { %1976 = vmatpush1.bf16.msra.mxu1 %v3053_v6  ;;  %1914 = vmatprep.subr.bf16.mxu0 %v3055_v9  ;;  %4860 = vst [vmem:[#allocation9_spill] sm:$0xff] %v3210_v20  ;;  %v1722_v28 = vld [vmem:[%s4708_s2 + $0x760] sm:$0xff]  ;;  %v3224_v46 = vpack.c.bf16 %v1725_v10, %v1721_v2  ;;  %v1724_v47 = vld [vmem:[%s4708_s2 + $0x770] sm:$0xff]  ;;  %v1727_v55 = vld [vmem:[%s4708_s2 + $0x788] sm:$0xff] }
  0x34   : > { %1978 = vmatprep.subr.bf16.mxu1 %v3067_v19  ;;  %4861 = vst [vmem:[#allocation10_spill] sm:$0xff] %v3212_v24  ;;  %v1731_v59 = vld [vmem:[%s4708_s2 + $0x7a8] sm:$0xff]  ;;  %v1729_v1 = vld [vmem:[%s4708_s2 + $0x798] sm:$0xff]  ;;  %v3242_v10 = vpack.c.bf16 %v1722_v28, %v1718_v27  ;;  %v1728_v28 = vld [vmem:[%s4708_s2 + $0x790] sm:$0xff] }
  0x35   : > { %4862 = vst [vmem:[#allocation11_spill] sm:$0xff] %v3224_v46  ;;  %v1733_v2 = vld [vmem:[%s4708_s2 + $0x7b8] sm:$0xff]  ;;  %vm1528_vm5 = vmand %vm1526_vm1, %vm1527_vm2 }
  0x36   : > { %1916 = vmatpush1.bf16.msra.mxu0 %v3085_v29  ;;  %4863 = vst [vmem:[#allocation12_spill] sm:$0xff] %v3242_v10  ;;  %v3260_v27 = vpack.c.bf16 %v1733_v2, %v1729_v1  ;;  %v1741_v1 = vld [vmem:[%s4708_s2 + $0x7f8] sm:$0xff]  ;;  %vm1531_vm6 = vmand %vm1529_vm3, %vm1530_vm4 }
  0x37   : > { %1980 = vmatpush1.bf16.msra.mxu1 %v3091_v31  ;;  %1918 = vmatprep.subr.bf16.mxu0 %v3093_v36  ;;  %vm1532_vm7 = vmor %vm1531_vm6, %vm1528_vm5 }
  0x38   : > { %1982 = vmatprep.subr.bf16.mxu1 %v3105_v44  ;;  %4866 = vst [vmem:[#allocation15_spill] sm:$0xff] %v3260_v27 }
  0x3a   : > { %1920 = vmatpush1.bf16.msra.mxu0 %v3127_v57 }
  0x3b   : > { %1984 = vmatpush1.bf16.msra.mxu1 %v3134_v60  ;;  %1922 = vmatprep.subr.bf16.mxu0 %v3136_v61 }
  0x3c   : > { %1986 = vmatprep.subr.bf16.mxu1 %v3148_v11  ;;  %v286_v11 = vld [vmem:[%s4708_s2 + $0x220] sm:$0xff] }
  0x3e   : > { %1924 = vmatpush1.bf16.msra.mxu0 %v3168_v37  ;;  %v1730_v37 = vld [vmem:[%s4708_s2 + $0x7a0] sm:$0xff] }
  0x3f   : > { %1988 = vmatpush1.bf16.msra.mxu1 %v3172_v40  ;;  %1926 = vmatprep.subr.bf16.mxu0 %v3174_v42  ;;  %v3248_v42 = vpack.c.bf16 %v1731_v59, %v1727_v55  ;;  %v1726_v40 = vld [vmem:[%s4708_s2 + $0x780] sm:$0xff]  ;;  %v1739_v55 = vld [vmem:[%s4708_s2 + $0x7e8] sm:$0xff]  ;;  %v1737_v59 = vld [vmem:[%s4708_s2 + $0x7d8] sm:$0xff] }
  0x40   : > { %1990 = vmatprep.subr.bf16.mxu1 %v3186_v54  ;;  %v3246_v54 = vpack.c.bf16 %v1724_v47, %v1720_v45  ;;  %v1732_v45 = vld [vmem:[%s4708_s2 + $0x7b0] sm:$0xff]  ;;  %v1735_v47 = vld [vmem:[%s4708_s2 + $0x7c8] sm:$0xff]  ;;  %v3278_v2 = vpack.c.bf16 %v1730_v37, %v1726_v40  ;;  %v3296_v40 = vpack.c.bf16 %v1741_v1, %v1737_v59  ;;  %v225_v59 = vld [vmem:[%s4708_s2 + $0x38] sm:$0xff] }
  0x41   : > { %4865 = vst [vmem:[#allocation14_spill] sm:$0xff] %v3248_v42  ;;  %v1736_v37 = vld [vmem:[%s4708_s2 + $0x7d0] sm:$0xff] }
  0x42   : > { %1928 = vmatpush1.bf16.msra.mxu0 %v3206_v13  ;;  %4864 = vst [vmem:[#allocation13_spill] sm:$0xff] %v3246_v54  ;;  %4867 = vst [vmem:[#allocation16_spill] sm:$0xff] %v3278_v2  ;;  %v1738_v13 = vld [vmem:[%s4708_s2 + $0x7e0] sm:$0xff] }
  0x43   : > { %1992 = vmatpush1.bf16.msra.mxu1 %v3210_v20  ;;  %1930 = vmatprep.subr.bf16.mxu0 %v3212_v24  ;;  %v3284_v24 = vpack.c.bf16 %v1739_v55, %v1735_v47  ;;  %v1734_v20 = vld [vmem:[%s4708_s2 + $0x7c0] sm:$0xff]  ;;  %4870 = vst [vmem:[#allocation19_spill] sm:$0xff] %v3296_v40  ;;  %v223_v47 = vld [vmem:[%s4708_s2 + $0x28] sm:$0xff]  ;;  %v221_v55 = vld [vmem:[%s4708_s2 + $0x18] sm:$0xff] }
  0x44   : > { %1994 = vmatprep.subr.bf16.mxu1 %v3224_v46  ;;  %v3282_v46 = vpack.c.bf16 %v1732_v45, %v1728_v28  ;;  %v1740_v28 = vld [vmem:[%s4708_s2 + $0x7f0] sm:$0xff]  ;;  %v219_v45 = vld [vmem:[%s4708_s2 + $0x8] sm:$0xff]  ;;  %v3314_v1 = vpack.c.bf16 %v1738_v13, %v1734_v20  ;;  %v3332_v20 = vpack.c.bf16 %v225_v59, %v221_v55  ;;  %v229_v55 = vld [vmem:[%s4708_s2 + $0x58] sm:$0xff] }
  0x45   : > { %4869 = vst [vmem:[#allocation18_spill] sm:$0xff] %v3284_v24  ;;  %v220_v13 = vld [vmem:[%s4708_s2 + $0x10] sm:$0xff]  ;;  %v233_v59 = vld [vmem:[%s4708_s2 + $0x78] sm:$0xff] }
  0x46   : > { %1932 = vmatpush1.bf16.msra.mxu0 %v3242_v10  ;;  %4868 = vst [vmem:[#allocation17_spill] sm:$0xff] %v3282_v46  ;;  %4871 = vst [vmem:[#allocation20_spill] sm:$0xff] %v3314_v1  ;;  %v222_v10 = vld [vmem:[%s4708_s2 + $0x20] sm:$0xff] }
  0x47   : > { %1996 = vmatpush1.bf16.msra.mxu1 %v3246_v54  ;;  %1934 = vmatprep.subr.bf16.mxu0 %v3248_v42  ;;  %v3320_v42 = vpack.c.bf16 %v223_v47, %v219_v45  ;;  %v218_v54 = vld [vmem:[%s4708_s2] sm:$0xff]  ;;  %4874 = vst [vmem:[#allocation23_spill] sm:$0xff] %v3332_v20  ;;  %v231_v45 = vld [vmem:[%s4708_s2 + $0x68] sm:$0xff]  ;;  %v3344_v47 = vunpack.c.l.bf16 %v3156_v22 }
  0x48   : > { %1998 = vmatprep.subr.bf16.mxu1 %v3260_v27  ;;  %v3318_v27 = vpack.c.bf16 %v1740_v28, %v1736_v37  ;;  %v224_v37 = vld [vmem:[%s4708_s2 + $0x30] sm:$0xff]  ;;  %v227_v28 = vld [vmem:[%s4708_s2 + $0x48] sm:$0xff] }
  0x49   : > { %4873 = vst [vmem:[#allocation22_spill] sm:$0xff] %v3320_v42  ;;  %4875 = vst [vmem:[#allocation24_spill] sm:$0xff] %v3344_v47  ;;  %v3359_v22 = vpack.c.bf16 %v231_v45, %v227_v28  ;;  %v239_v28 = vld [vmem:[%s4708_s2 + $0xa8] sm:$0xff]  ;;  %v237_v45 = vld [vmem:[%s4708_s2 + $0x98] sm:$0xff] }
  0x4a   : > { %1936 = vmatpush1.bf16.msra.mxu0 %v3278_v2  ;;  %4872 = vst [vmem:[#allocation21_spill] sm:$0xff] %v3318_v27  ;;  %v230_v2 = vld [vmem:[%s4708_s2 + $0x60] sm:$0xff] }
  0x4b   : > { %2000 = vmatpush1.bf16.msra.mxu1 %v3282_v46  ;;  %1938 = vmatprep.subr.bf16.mxu0 %v3284_v24  ;;  %v3357_v24 = vpack.c.bf16 %v224_v37, %v220_v13  ;;  %4878 = vst [vmem:[#allocation27_spill] sm:$0xff] %v3359_v22  ;;  %v226_v46 = vld [vmem:[%s4708_s2 + $0x40] sm:$0xff]  ;;  %v232_v13 = vld [vmem:[%s4708_s2 + $0x70] sm:$0xff]  ;;  %v235_v37 = vld [vmem:[%s4708_s2 + $0x88] sm:$0xff] }
  0x4c   : > { %2002 = vmatprep.subr.bf16.mxu1 %v3296_v40  ;;  %v3353_v40 = vpack.c.bf16 %v222_v10, %v218_v54  ;;  %v228_v54 = vld [vmem:[%s4708_s2 + $0x50] sm:$0xff]  ;;  %v3371_v10 = vpack.c.bf16 %v233_v59, %v229_v55  ;;  %v241_v55 = vld [vmem:[%s4708_s2 + $0xb8] sm:$0xff]  ;;  %v3391_v59 = vpack.c.bf16 %v230_v2, %v226_v46 }
  0x4d   : > { %4877 = vst [vmem:[#allocation26_spill] sm:$0xff] %v3357_v24  ;;  %v236_v46 = vld [vmem:[%s4708_s2 + $0x90] sm:$0xff]  ;;  %v3409_v2 = vpack.c.bf16 %v241_v55, %v237_v45  ;;  %v249_v45 = vld [vmem:[%s4708_s2 + $0xf8] sm:$0xff] }
  0x4e   : > { %1940 = vmatpush1.bf16.msra.mxu0 %v3314_v1  ;;  %4876 = vst [vmem:[#allocation25_spill] sm:$0xff] %v3353_v40  ;;  %4879 = vst [vmem:[#allocation28_spill] sm:$0xff] %v3371_v10  ;;  %v274_v1 = vld [vmem:[%s4708_s2 + $0x1c0] sm:$0xff] }
  0x4f   : > { %2004 = vmatpush1.bf16.msra.mxu1 %v3318_v27  ;;  %2006 = vmatprep.subr.bf16.mxu0 %v3320_v42  ;;  %4880 = vst [vmem:[#allocation29_spill] sm:$0xff] %v3391_v59  ;;  %v3397_v42 = vpack.c.bf16 %v239_v28, %v235_v37  ;;  %v234_v27 = vld [vmem:[%s4708_s2 + $0x80] sm:$0xff]  ;;  %4883 = vst [vmem:[#allocation32_spill] sm:$0xff] %v3409_v2  ;;  %v247_v37 = vld [vmem:[%s4708_s2 + $0xe8] sm:$0xff] }
  0x50   : > { %2070 = vmatprep.subr.bf16.mxu1 %v3332_v20  ;;  %v3395_v20 = vpack.c.bf16 %v232_v13, %v228_v54  ;;  %v240_v54 = vld [vmem:[%s4708_s2 + $0xb0] sm:$0xff]  ;;  %v243_v13 = vld [vmem:[%s4708_s2 + $0xc8] sm:$0xff]  ;;  %v245_v28 = vld [vmem:[%s4708_s2 + $0xd8] sm:$0xff] }
  0x51   : > { %676 = vmatmul.mubr.f32.vlgmr.msra.gmra.mrb[0].mxu0 %v3344_v47  ;;  %4882 = vst [vmem:[#allocation31_spill] sm:$0xff] %v3397_v42 }
  0x52   : > { %747 = vmatmul.mubr.f32.vlgmr.msra.gmra.mrb[0].mxu1 %v3344_v47  ;;  %2008 = vmatpush1.bf16.msra.mxu0 %v3353_v40  ;;  %4881 = vst [vmem:[#allocation30_spill] sm:$0xff] %v3395_v20  ;;  %v238_v47 = vld [vmem:[%s4708_s2 + $0xa0] sm:$0xff] }
  0x53   : > { %2072 = vmatpush1.bf16.msra.mxu1 %v3357_v24  ;;  %2010 = vmatprep.subr.bf16.mxu0 %v3359_v22  ;;  %v3427_v55 = vpack.c.bf16 %v238_v47, %v234_v27  ;;  %v3433_v22 = vpack.c.bf16 %v247_v37, %v243_v13  ;;  %v242_v24 = vld [vmem:[%s4708_s2 + $0xc0] sm:$0xff]  ;;  %v244_v27 = vld [vmem:[%s4708_s2 + $0xd0] sm:$0xff]  ;;  %v3445_v47 = vpack.c.bf16 %v249_v45, %v245_v28  ;;  %v255_v13 = vld [vmem:[%s4708_s2 + $0x128] sm:$0xff] }
  0x54   : > { %2074 = vmatprep.subr.bf16.mxu1 %v3371_v10  ;;  %v3431_v10 = vpack.c.bf16 %v240_v54, %v236_v46  ;;  %v246_v40 = vld [vmem:[%s4708_s2 + $0xe0] sm:$0xff]  ;;  %v248_v46 = vld [vmem:[%s4708_s2 + $0xf0] sm:$0xff]  ;;  %v251_v54 = vld [vmem:[%s4708_s2 + $0x108] sm:$0xff] }
  0x55   : > { %4884 = vst [vmem:[#allocation33_spill] sm:$0xff] %v3427_v55  ;;  %4886 = vst [vmem:[#allocation35_spill] sm:$0xff] %v3433_v22  ;;  %v253_v37 = vld [vmem:[%s4708_s2 + $0x118] sm:$0xff]  ;;  %v3463_v45 = vpack.c.bf16 %v246_v40, %v242_v24  ;;  %v252_v24 = vld [vmem:[%s4708_s2 + $0x110] sm:$0xff] }
  0x56   : > { %2012 = vmatpush1.bf16.msra.mxu0 %v3391_v59  ;;  %4885 = vst [vmem:[#allocation34_spill] sm:$0xff] %v3431_v10  ;;  %4887 = vst [vmem:[#allocation36_spill] sm:$0xff] %v3445_v47  ;;  %v257_v28 = vld [vmem:[%s4708_s2 + $0x138] sm:$0xff]  ;;  %v254_v59 = vld [vmem:[%s4708_s2 + $0x120] sm:$0xff] }
  0x57   : > { %2076 = vmatpush1.bf16.msra.mxu1 %v3395_v20  ;;  %2014 = vmatprep.subr.bf16.mxu0 %v3397_v42  ;;  %4888 = vst [vmem:[#allocation37_spill] sm:$0xff] %v3463_v45  ;;  %v3469_v42 = vpack.c.bf16 %v255_v13, %v251_v54  ;;  %v250_v20 = vld [vmem:[%s4708_s2 + $0x100] sm:$0xff]  ;;  %v3481_v40 = vpack.c.bf16 %v257_v28, %v253_v37  ;;  %v263_v54 = vld [vmem:[%s4708_s2 + $0x168] sm:$0xff]  ;;  %v261_v13 = vld [vmem:[%s4708_s2 + $0x158] sm:$0xff] }
  0x58   : > { %2078 = vmatprep.subr.bf16.mxu1 %v3409_v2  ;;  %v3467_v2 = vpack.c.bf16 %v248_v46, %v244_v27  ;;  %v256_v27 = vld [vmem:[%s4708_s2 + $0x130] sm:$0xff]  ;;  %v259_v46 = vld [vmem:[%s4708_s2 + $0x148] sm:$0xff]  ;;  %v265_v37 = vld [vmem:[%s4708_s2 + $0x178] sm:$0xff]  ;;  %v3499_v28 = vpack.c.bf16 %v254_v59, %v250_v20 }
  0x59   : > { %4890 = vst [vmem:[#allocation39_spill] sm:$0xff] %v3469_v42  ;;  %4891 = vst [vmem:[#allocation40_spill] sm:$0xff] %v3481_v40  ;;  %v260_v20 = vld [vmem:[%s4708_s2 + $0x150] sm:$0xff]  ;;  %v3517_v59 = vpack.c.bf16 %v265_v37, %v261_v13  ;;  %v273_v13 = vld [vmem:[%s4708_s2 + $0x1b8] sm:$0xff] }
  0x5a   : > { %2016 = vmatpush1.bf16.msra.mxu0 %v3427_v55  ;;  %4889 = vst [vmem:[#allocation38_spill] sm:$0xff] %v3467_v2  ;;  %4892 = vst [vmem:[#allocation41_spill] sm:$0xff] %v3499_v28  ;;  %v262_v55 = vld [vmem:[%s4708_s2 + $0x160] sm:$0xff] }
  0x5b   : > { %2080 = vmatpush1.bf16.msra.mxu1 %v3431_v10  ;;  %2018 = vmatprep.subr.bf16.mxu0 %v3433_v22  ;;  %v3505_v22 = vpack.c.bf16 %v263_v54, %v259_v46  ;;  %v258_v10 = vld [vmem:[%s4708_s2 + $0x140] sm:$0xff]  ;;  %4895 = vst [vmem:[#allocation44_spill] sm:$0xff] %v3517_v59  ;;  %v271_v46 = vld [vmem:[%s4708_s2 + $0x1a8] sm:$0xff]  ;;  %v269_v54 = vld [vmem:[%s4708_s2 + $0x198] sm:$0xff] }
  0x5c   : > { %2082 = vmatprep.subr.bf16.mxu1 %v3445_v47  ;;  %v3503_v47 = vpack.c.bf16 %v256_v27, %v252_v24  ;;  %v264_v24 = vld [vmem:[%s4708_s2 + $0x170] sm:$0xff]  ;;  %v267_v27 = vld [vmem:[%s4708_s2 + $0x188] sm:$0xff]  ;;  %v3539_v37 = vpack.c.bf16 %v262_v55, %v258_v10  ;;  %v3556_v55 = vld [vmem:[%s207_s20] sm:$0xff] }
  0x5d   : > { %4894 = vst [vmem:[#allocation43_spill] sm:$0xff] %v3505_v22  ;;  %v268_v10 = vld [vmem:[%s4708_s2 + $0x190] sm:$0xff] }
  0x5e   : > { %2020 = vmatpush1.bf16.msra.mxu0 %v3463_v45  ;;  %4893 = vst [vmem:[#allocation42_spill] sm:$0xff] %v3503_v47  ;;  %4896 = vst [vmem:[#allocation45_spill] sm:$0xff] %v3539_v37  ;;  %v270_v45 = vld [vmem:[%s4708_s2 + $0x1a0] sm:$0xff] }
  0x5f   : > { %2084 = vmatpush1.bf16.msra.mxu1 %v3467_v2  ;;  %2022 = vmatprep.subr.bf16.mxu0 %v3469_v42  ;;  %v3546_v42 = vpack.c.bf16 %v264_v24, %v260_v20  ;;  %v3548_v2 = vpack.c.bf16 %v271_v46, %v267_v27  ;;  %v272_v20 = vld [vmem:[%s4708_s2 + $0x1b0] sm:$0xff]  ;;  %v275_v24 = vld [vmem:[%s4708_s2 + $0x1c8] sm:$0xff]  ;;  %v3571_v46 = vunpack.c.h.bf16 %v3556_v55 }
  0x60   : > { %2086 = vmatprep.subr.bf16.mxu1 %v3481_v40  ;;  %v266_v40 = vld [vmem:[%s4708_s2 + $0x180] sm:$0xff]  ;;  %v279_v27 = vld [vmem:[%s4708_s2 + $0x1e8] sm:$0xff] }
  0x61   : > { %4897 = vst [vmem:[#allocation46_spill] sm:$0xff] %v3546_v42  ;;  %4898 = vst [vmem:[#allocation47_spill] sm:$0xff] %v3548_v2  ;;  %817 = vmatprep.mubr.f32.mxu0 %v3571_v46  ;;  %888 = vmatprep.mubr.f32.mxu1 %v3571_v46 }
  0x62   : > { %2024 = vmatpush1.bf16.msra.mxu0 %v3499_v28  ;;  %v3559_v28 = vpack.c.bf16 %v273_v13, %v269_v54  ;;  %v277_v54 = vld [vmem:[%s4708_s2 + $0x1d8] sm:$0xff] }
  0x63   : > { %2088 = vmatpush1.bf16.msra.mxu1 %v3503_v47  ;;  %2026 = vmatprep.subr.bf16.mxu0 %v3505_v22  ;;  %v281_v13 = vld [vmem:[%s4708_s2 + $0x1f8] sm:$0xff]  ;;  %v3585_v22 = vpack.c.bf16 %v272_v20, %v268_v10  ;;  %v3587_v47 = vpack.c.bf16 %v279_v27, %v275_v24  ;;  %v280_v10 = vld [vmem:[%s4708_s2 + $0x1f0] sm:$0xff]  ;;  %v283_v20 = vld [vmem:[%s4708_s2 + $0x208] sm:$0xff] }
  0x64   : > { %2090 = vmatprep.subr.bf16.mxu1 %v3517_v59  ;;  %4899 = vst [vmem:[#allocation48_spill] sm:$0xff] %v3559_v28  ;;  %v3580_v59 = vpack.c.bf16 %v270_v45, %v266_v40  ;;  %v276_v45 = vld [vmem:[%s4708_s2 + $0x1d0] sm:$0xff]  ;;  %v3599_v40 = vpack.c.bf16 %v281_v13, %v277_v54  ;;  %v287_v24 = vld [vmem:[%s4708_s2 + $0x228] sm:$0xff]  ;;  %v285_v27 = vld [vmem:[%s4708_s2 + $0x218] sm:$0xff] }
  0x65   : > { %4901 = vst [vmem:[#allocation50_spill] sm:$0xff] %v3585_v22  ;;  %4902 = vst [vmem:[#allocation51_spill] sm:$0xff] %v3587_v47  ;;  %v289_v54 = vld [vmem:[%s4708_s2 + $0x238] sm:$0xff] }
  0x66   : > { %2028 = vmatpush1.bf16.msra.mxu0 %v3539_v37  ;;  %4900 = vst [vmem:[#allocation49_spill] sm:$0xff] %v3580_v59  ;;  %v278_v37 = vld [vmem:[%s4708_s2 + $0x1e0] sm:$0xff]  ;;  %4903 = vst [vmem:[#allocation52_spill] sm:$0xff] %v3599_v40 }
  0x67   : > { %2092 = vmatpush1.bf16.msra.mxu1 %v3546_v42  ;;  %2030 = vmatprep.subr.bf16.mxu0 %v3548_v2  ;;  %v3618_v13 = vpack.c.bf16 %v278_v37, %v274_v1  ;;  %v3624_v2 = vpack.c.bf16 %v287_v24, %v283_v20  ;;  %v282_v42 = vld [vmem:[%s4708_s2 + $0x200] sm:$0xff]  ;;  %v284_v1 = vld [vmem:[%s4708_s2 + $0x210] sm:$0xff]  ;;  %v3636_v37 = vpack.c.bf16 %v289_v54, %v285_v27  ;;  %v295_v20 = vld [vmem:[%s4708_s2 + $0x268] sm:$0xff] }
  0x68   : > { %2094 = vmatprep.subr.bf16.mxu1 %v3559_v28  ;;  %v3622_v28 = vpack.c.bf16 %v280_v10, %v276_v45  ;;  %v288_v45 = vld [vmem:[%s4708_s2 + $0x230] sm:$0xff]  ;;  %v291_v10 = vld [vmem:[%s4708_s2 + $0x248] sm:$0xff]  ;;  %v293_v24 = vld [vmem:[%s4708_s2 + $0x258] sm:$0xff]  ;;  %v3654_v54 = vpack.c.bf16 %v286_v11, %v282_v42 }
  0x69   : > { %4904 = vst [vmem:[#allocation53_spill] sm:$0xff] %v3618_v13  ;;  %4906 = vst [vmem:[#allocation55_spill] sm:$0xff] %v3624_v2  ;;  %v297_v27 = vld [vmem:[%s4708_s2 + $0x278] sm:$0xff]  ;;  %v292_v11 = vld [vmem:[%s4708_s2 + $0x250] sm:$0xff] }
  0x6a   : > { %2032 = vmatpush1.bf16.msra.mxu0 %v3580_v59  ;;  %4905 = vst [vmem:[#allocation54_spill] sm:$0xff] %v3622_v28  ;;  %4907 = vst [vmem:[#allocation56_spill] sm:$0xff] %v3636_v37  ;;  %v294_v59 = vld [vmem:[%s4708_s2 + $0x260] sm:$0xff]  ;;  %v3672_v42 = vpack.c.bf16 %v297_v27, %v293_v24  ;;  %v305_v24 = vld [vmem:[%s4708_s2 + $0x2b8] sm:$0xff] }
  0x6b   : > { %2096 = vmatpush1.bf16.msra.mxu1 %v3585_v22  ;;  %2034 = vmatprep.subr.bf16.mxu0 %v3587_v47  ;;  %4908 = vst [vmem:[#allocation57_spill] sm:$0xff] %v3654_v54  ;;  %v3660_v47 = vpack.c.bf16 %v295_v20, %v291_v10  ;;  %v290_v22 = vld [vmem:[%s4708_s2 + $0x240] sm:$0xff]  ;;  %v303_v10 = vld [vmem:[%s4708_s2 + $0x2a8] sm:$0xff]  ;;  %v301_v20 = vld [vmem:[%s4708_s2 + $0x298] sm:$0xff] }
  0x6c   : > { %2098 = vmatprep.subr.bf16.mxu1 %v3599_v40  ;;  %v3658_v40 = vpack.c.bf16 %v288_v45, %v284_v1  ;;  %4911 = vst [vmem:[#allocation60_spill] sm:$0xff] %v3672_v42  ;;  %v296_v1 = vld [vmem:[%s4708_s2 + $0x270] sm:$0xff]  ;;  %v299_v45 = vld [vmem:[%s4708_s2 + $0x288] sm:$0xff]  ;;  %v3690_v27 = vpack.c.bf16 %v294_v59, %v290_v22  ;;  %v3708_v59 = vpack.c.bf16 %v305_v24, %v301_v20  ;;  %v313_v20 = vld [vmem:[%s4708_s2 + $0x2f8] sm:$0xff] }
  0x6d   : > { %4910 = vst [vmem:[#allocation59_spill] sm:$0xff] %v3660_v47  ;;  %v300_v22 = vld [vmem:[%s4708_s2 + $0x290] sm:$0xff] }
  0x6e   : > { %2036 = vmatpush1.bf16.msra.mxu0 %v3618_v13  ;;  %4909 = vst [vmem:[#allocation58_spill] sm:$0xff] %v3658_v40  ;;  %4912 = vst [vmem:[#allocation61_spill] sm:$0xff] %v3690_v27  ;;  %v302_v13 = vld [vmem:[%s4708_s2 + $0x2a0] sm:$0xff] }
  0x6f   : > { %2100 = vmatpush1.bf16.msra.mxu1 %v3622_v28  ;;  %2038 = vmatprep.subr.bf16.mxu0 %v3624_v2  ;;  %v3696_v2 = vpack.c.bf16 %v303_v10, %v299_v45  ;;  %v298_v28 = vld [vmem:[%s4708_s2 + $0x280] sm:$0xff]  ;;  %4915 = vst [vmem:[#allocation64_spill] sm:$0xff] %v3708_v59  ;;  %v311_v45 = vld [vmem:[%s4708_s2 + $0x2e8] sm:$0xff]  ;;  %v309_v10 = vld [vmem:[%s4708_s2 + $0x2d8] sm:$0xff] }
  0x70   : > { %2102 = vmatprep.subr.bf16.mxu1 %v3636_v37  ;;  %v3694_v37 = vpack.c.bf16 %v296_v1, %v292_v11  ;;  %v304_v11 = vld [vmem:[%s4708_s2 + $0x2b0] sm:$0xff]  ;;  %v307_v1 = vld [vmem:[%s4708_s2 + $0x2c8] sm:$0xff]  ;;  %v3726_v24 = vpack.c.bf16 %v302_v13, %v298_v28  ;;  %v3744_v13 = vpack.c.bf16 %v313_v20, %v309_v10  ;;  %v321_v10 = vld [vmem:[%s4708_s2 + $0x338] sm:$0xff] }
  0x71   : > { %4914 = vst [vmem:[#allocation63_spill] sm:$0xff] %v3696_v2  ;;  %v308_v28 = vld [vmem:[%s4708_s2 + $0x2d0] sm:$0xff] }
  0x72   : > { %2040 = vmatpush1.bf16.msra.mxu0 %v3654_v54  ;;  %4913 = vst [vmem:[#allocation62_spill] sm:$0xff] %v3694_v37  ;;  %4916 = vst [vmem:[#allocation65_spill] sm:$0xff] %v3726_v24  ;;  %v310_v54 = vld [vmem:[%s4708_s2 + $0x2e0] sm:$0xff] }
  0x73   : > { %2104 = vmatpush1.bf16.msra.mxu1 %v3658_v40  ;;  %2042 = vmatprep.subr.bf16.mxu0 %v3660_v47  ;;  %v3732_v47 = vpack.c.bf16 %v311_v45, %v307_v1  ;;  %v306_v40 = vld [vmem:[%s4708_s2 + $0x2c0] sm:$0xff]  ;;  %4919 = vst [vmem:[#allocation68_spill] sm:$0xff] %v3744_v13  ;;  %v319_v1 = vld [vmem:[%s4708_s2 + $0x328] sm:$0xff]  ;;  %v317_v45 = vld [vmem:[%s4708_s2 + $0x318] sm:$0xff] }
  0x74   : > { %2106 = vmatprep.subr.bf16.mxu1 %v3672_v42  ;;  %v3730_v42 = vpack.c.bf16 %v304_v11, %v300_v22  ;;  %v312_v22 = vld [vmem:[%s4708_s2 + $0x2f0] sm:$0xff]  ;;  %v315_v11 = vld [vmem:[%s4708_s2 + $0x308] sm:$0xff]  ;;  %v3762_v20 = vpack.c.bf16 %v310_v54, %v306_v40  ;;  %v3780_v54 = vpack.c.bf16 %v321_v10, %v317_v45  ;;  %v329_v45 = vld [vmem:[%s4708_s2 + $0x378] sm:$0xff] }
  0x75   : > { %4918 = vst [vmem:[#allocation67_spill] sm:$0xff] %v3732_v47  ;;  %v316_v40 = vld [vmem:[%s4708_s2 + $0x310] sm:$0xff] }
  0x76   : > { %2044 = vmatpush1.bf16.msra.mxu0 %v3690_v27  ;;  %4917 = vst [vmem:[#allocation66_spill] sm:$0xff] %v3730_v42  ;;  %4920 = vst [vmem:[#allocation69_spill] sm:$0xff] %v3762_v20  ;;  %v318_v27 = vld [vmem:[%s4708_s2 + $0x320] sm:$0xff] }
  0x77   : > { %2108 = vmatpush1.bf16.msra.mxu1 %v3694_v37  ;;  %2046 = vmatprep.subr.bf16.mxu0 %v3696_v2  ;;  %v3768_v2 = vpack.c.bf16 %v319_v1, %v315_v11  ;;  %v314_v37 = vld [vmem:[%s4708_s2 + $0x300] sm:$0xff]  ;;  %4923 = vst [vmem:[#allocation72_spill] sm:$0xff] %v3780_v54  ;;  %v327_v11 = vld [vmem:[%s4708_s2 + $0x368] sm:$0xff]  ;;  %v325_v1 = vld [vmem:[%s4708_s2 + $0x358] sm:$0xff] }
  0x78   : > { %2110 = vmatprep.subr.bf16.mxu1 %v3708_v59  ;;  %v3766_v59 = vpack.c.bf16 %v312_v22, %v308_v28  ;;  %v320_v28 = vld [vmem:[%s4708_s2 + $0x330] sm:$0xff]  ;;  %v323_v22 = vld [vmem:[%s4708_s2 + $0x348] sm:$0xff]  ;;  %v3798_v10 = vpack.c.bf16 %v318_v27, %v314_v37  ;;  %v3816_v27 = vpack.c.bf16 %v329_v45, %v325_v1  ;;  %v337_v1 = vld [vmem:[%s4708_s2 + $0x3b8] sm:$0xff] }
  0x79   : > { %4922 = vst [vmem:[#allocation71_spill] sm:$0xff] %v3768_v2  ;;  %v324_v37 = vld [vmem:[%s4708_s2 + $0x350] sm:$0xff] }
  0x7a   : > { %2048 = vmatpush1.bf16.msra.mxu0 %v3726_v24  ;;  %4921 = vst [vmem:[#allocation70_spill] sm:$0xff] %v3766_v59  ;;  %4924 = vst [vmem:[#allocation73_spill] sm:$0xff] %v3798_v10  ;;  %v326_v24 = vld [vmem:[%s4708_s2 + $0x360] sm:$0xff] }
  0x7b   : > { %2112 = vmatpush1.bf16.msra.mxu1 %v3730_v42  ;;  %2050 = vmatprep.subr.bf16.mxu0 %v3732_v47  ;;  %v3804_v47 = vpack.c.bf16 %v327_v11, %v323_v22  ;;  %v322_v42 = vld [vmem:[%s4708_s2 + $0x340] sm:$0xff]  ;;  %4927 = vst [vmem:[#allocation76_spill] sm:$0xff] %v3816_v27  ;;  %v335_v22 = vld [vmem:[%s4708_s2 + $0x3a8] sm:$0xff]  ;;  %v333_v11 = vld [vmem:[%s4708_s2 + $0x398] sm:$0xff] }
  0x7c   : > { %2114 = vmatprep.subr.bf16.mxu1 %v3744_v13  ;;  %v3802_v13 = vpack.c.bf16 %v320_v28, %v316_v40  ;;  %v328_v40 = vld [vmem:[%s4708_s2 + $0x370] sm:$0xff]  ;;  %v331_v28 = vld [vmem:[%s4708_s2 + $0x388] sm:$0xff]  ;;  %v3834_v45 = vpack.c.bf16 %v326_v24, %v322_v42  ;;  %v3852_v24 = vpack.c.bf16 %v337_v1, %v333_v11  ;;  %v345_v11 = vld [vmem:[%s4708_s2 + $0x3f8] sm:$0xff] }
  0x7d   : > { %4926 = vst [vmem:[#allocation75_spill] sm:$0xff] %v3804_v47  ;;  %v332_v42 = vld [vmem:[%s4708_s2 + $0x390] sm:$0xff] }
  0x7e   : > { %2052 = vmatpush1.bf16.msra.mxu0 %v3762_v20  ;;  %4925 = vst [vmem:[#allocation74_spill] sm:$0xff] %v3802_v13  ;;  %4928 = vst [vmem:[#allocation77_spill] sm:$0xff] %v3834_v45  ;;  %v334_v20 = vld [vmem:[%s4708_s2 + $0x3a0] sm:$0xff] }
  0x7f   : > { %2116 = vmatpush1.bf16.msra.mxu1 %v3766_v59  ;;  %2054 = vmatprep.subr.bf16.mxu0 %v3768_v2  ;;  %v3840_v2 = vpack.c.bf16 %v335_v22, %v331_v28  ;;  %v330_v59 = vld [vmem:[%s4708_s2 + $0x380] sm:$0xff]  ;;  %4931 = vst [vmem:[#allocation80_spill] sm:$0xff] %v3852_v24  ;;  %v343_v28 = vld [vmem:[%s4708_s2 + $0x3e8] sm:$0xff]  ;;  %v341_v22 = vld [vmem:[%s4708_s2 + $0x3d8] sm:$0xff] }
  0x80   : > { %2118 = vmatprep.subr.bf16.mxu1 %v3780_v54  ;;  %v3838_v54 = vpack.c.bf16 %v328_v40, %v324_v37  ;;  %v336_v37 = vld [vmem:[%s4708_s2 + $0x3b0] sm:$0xff]  ;;  %v339_v40 = vld [vmem:[%s4708_s2 + $0x3c8] sm:$0xff]  ;;  %v3870_v1 = vpack.c.bf16 %v334_v20, %v330_v59  ;;  %v3888_v20 = vpack.c.bf16 %v345_v11, %v341_v22  ;;  %v1749_v22 = vld [vmem:[%s4708_s2 + $0x838] sm:$0xff] }
  0x81   : > { %4930 = vst [vmem:[#allocation79_spill] sm:$0xff] %v3840_v2  ;;  %v340_v59 = vld [vmem:[%s4708_s2 + $0x3d0] sm:$0xff] }
  0x82   : > { %2056 = vmatpush1.bf16.msra.mxu0 %v3798_v10  ;;  %4929 = vst [vmem:[#allocation78_spill] sm:$0xff] %v3838_v54  ;;  %4932 = vst [vmem:[#allocation81_spill] sm:$0xff] %v3870_v1  ;;  %v342_v10 = vld [vmem:[%s4708_s2 + $0x3e0] sm:$0xff] }
  0x83   : > { %2120 = vmatpush1.bf16.msra.mxu1 %v3802_v13  ;;  %2058 = vmatprep.subr.bf16.mxu0 %v3804_v47  ;;  %v3876_v47 = vpack.c.bf16 %v343_v28, %v339_v40  ;;  %v338_v13 = vld [vmem:[%s4708_s2 + $0x3c0] sm:$0xff]  ;;  %4935 = vst [vmem:[#allocation84_spill] sm:$0xff] %v3888_v20  ;;  %v1747_v40 = vld [vmem:[%s4708_s2 + $0x828] sm:$0xff]  ;;  %v1745_v28 = vld [vmem:[%s4708_s2 + $0x818] sm:$0xff] }
  0x84   : > { %2122 = vmatprep.subr.bf16.mxu1 %v3816_v27  ;;  %v3874_v27 = vpack.c.bf16 %v336_v37, %v332_v42  ;;  %v344_v42 = vld [vmem:[%s4708_s2 + $0x3f0] sm:$0xff]  ;;  %v1743_v37 = vld [vmem:[%s4708_s2 + $0x808] sm:$0xff]  ;;  %v3906_v11 = vpack.c.bf16 %v342_v10, %v338_v13  ;;  %v3924_v10 = vpack.c.bf16 %v1749_v22, %v1745_v28  ;;  %v1753_v28 = vld [vmem:[%s4708_s2 + $0x858] sm:$0xff] }
  0x85   : > { %4934 = vst [vmem:[#allocation83_spill] sm:$0xff] %v3876_v47  ;;  %v1744_v13 = vld [vmem:[%s4708_s2 + $0x810] sm:$0xff]  ;;  %v1757_v22 = vld [vmem:[%s4708_s2 + $0x878] sm:$0xff] }
  0x86   : > { %2060 = vmatpush1.bf16.msra.mxu0 %v3834_v45  ;;  %4933 = vst [vmem:[#allocation82_spill] sm:$0xff] %v3874_v27  ;;  %4936 = vst [vmem:[#allocation85_spill] sm:$0xff] %v3906_v11  ;;  %v1746_v45 = vld [vmem:[%s4708_s2 + $0x820] sm:$0xff] }
  0x87   : > { %2124 = vmatpush1.bf16.msra.mxu1 %v3838_v54  ;;  %2062 = vmatprep.subr.bf16.mxu0 %v3840_v2  ;;  %v3912_v2 = vpack.c.bf16 %v1747_v40, %v1743_v37  ;;  %v1742_v54 = vld [vmem:[%s4708_s2 + $0x800] sm:$0xff]  ;;  %4939 = vst [vmem:[#allocation88_spill] sm:$0xff] %v3924_v10  ;;  %v1755_v37 = vld [vmem:[%s4708_s2 + $0x868] sm:$0xff]  ;;  %v3936_v40 = vunpack.c.l.bf16 %v3556_v55 }
  0x88   : > { %2126 = vmatprep.subr.bf16.mxu1 %v3852_v24  ;;  %v3910_v24 = vpack.c.bf16 %v344_v42, %v340_v59  ;;  %v1748_v59 = vld [vmem:[%s4708_s2 + $0x830] sm:$0xff]  ;;  %v1751_v42 = vld [vmem:[%s4708_s2 + $0x848] sm:$0xff] }
  0x89   : > { %4938 = vst [vmem:[#allocation87_spill] sm:$0xff] %v3912_v2  ;;  %v3951_v55 = vpack.c.bf16 %v1755_v37, %v1751_v42  ;;  %v1763_v42 = vld [vmem:[%s4708_s2 + $0x8a8] sm:$0xff]  ;;  %v3975_v37 = vrot.slane %v3571_v46, 1 }
  0x8a   : > { %2064 = vmatpush1.bf16.msra.mxu0 %v3870_v1  ;;  %4937 = vst [vmem:[#allocation86_spill] sm:$0xff] %v3910_v24  ;;  %v1754_v1 = vld [vmem:[%s4708_s2 + $0x860] sm:$0xff] }
  0x8b   : > { %2128 = vmatpush1.bf16.msra.mxu1 %v3874_v27  ;;  %2066 = vmatprep.subr.bf16.mxu0 %v3876_v47  ;;  %v3949_v47 = vpack.c.bf16 %v1748_v59, %v1744_v13  ;;  %4942 = vst [vmem:[#allocation91_spill] sm:$0xff] %v3951_v55  ;;  %v1750_v27 = vld [vmem:[%s4708_s2 + $0x840] sm:$0xff]  ;;  %v1756_v13 = vld [vmem:[%s4708_s2 + $0x870] sm:$0xff]  ;;  %v1759_v59 = vld [vmem:[%s4708_s2 + $0x888] sm:$0xff] }
  0x8c   : > { %2130 = vmatprep.subr.bf16.mxu1 %v3888_v20  ;;  %v3945_v20 = vpack.c.bf16 %v1746_v45, %v1742_v54  ;;  %v1752_v54 = vld [vmem:[%s4708_s2 + $0x850] sm:$0xff]  ;;  %v3963_v45 = vpack.c.bf16 %v1757_v22, %v1753_v28  ;;  %v1761_v28 = vld [vmem:[%s4708_s2 + $0x898] sm:$0xff] }
  0x8d   : > { %4941 = vst [vmem:[#allocation90_spill] sm:$0xff] %v3949_v47  ;;  %v1765_v22 = vld [vmem:[%s4708_s2 + $0x8b8] sm:$0xff]  ;;  %v3990_v46 = vpack.c.bf16 %v1756_v13, %v1752_v54  ;;  %v1764_v54 = vld [vmem:[%s4708_s2 + $0x8b0] sm:$0xff]  ;;  %v1767_v13 = vld [vmem:[%s4708_s2 + $0x8c8] sm:$0xff] }
  0x8e   : > { %2068 = vmatpush1.bf16.msra.mxu0 %v3906_v11  ;;  %4940 = vst [vmem:[#allocation89_spill] sm:$0xff] %v3945_v20  ;;  %4943 = vst [vmem:[#allocation92_spill] sm:$0xff] %v3963_v45  ;;  %v1762_v11 = vld [vmem:[%s4708_s2 + $0x8a0] sm:$0xff] }
  0x8f   : > { %2132 = vmatpush1.bf16.msra.mxu1 %v3910_v24  ;;  %2134 = vmatprep.subr.bf16.mxu0 %v3912_v2  ;;  %4945 = vst [vmem:[#allocation94_spill] sm:$0xff] %v3990_v46  ;;  %v3992_v2 = vpack.c.bf16 %v1763_v42, %v1759_v59  ;;  %v1758_v24 = vld [vmem:[%s4708_s2 + $0x880] sm:$0xff]  ;;  %v1771_v59 = vld [vmem:[%s4708_s2 + $0x8e8] sm:$0xff]  ;;  %v1769_v42 = vld [vmem:[%s4708_s2 + $0x8d8] sm:$0xff] }
  0x90   : > { %2198 = vmatprep.subr.bf16.mxu1 %v3924_v10  ;;  %v3986_v10 = vpack.c.bf16 %v1754_v1, %v1750_v27  ;;  %v1760_v27 = vld [vmem:[%s4708_s2 + $0x890] sm:$0xff]  ;;  %v4004_v1 = vpack.c.bf16 %v1765_v22, %v1761_v28  ;;  %v1773_v28 = vld [vmem:[%s4708_s2 + $0x8f8] sm:$0xff]  ;;  %v4024_v22 = vpack.c.bf16 %v1762_v11, %v1758_v24 }
  0x91   : > { %818 = vmatmul.mubr.f32.vlgmr.msra.gmra.mrb[0].mxu0 %v3936_v40  ;;  %4946 = vst [vmem:[#allocation95_spill] sm:$0xff] %v3992_v2  ;;  %v1768_v24 = vld [vmem:[%s4708_s2 + $0x8d0] sm:$0xff]  ;;  %v4042_v11 = vpack.c.bf16 %v1773_v28, %v1769_v42  ;;  %v1781_v42 = vld [vmem:[%s4708_s2 + $0x938] sm:$0xff] }
  0x92   : > { %889 = vmatmul.mubr.f32.vlgmr.msra.gmra.mrb[0].mxu1 %v3936_v40  ;;  %2136 = vmatpush1.bf16.msra.mxu0 %v3945_v20  ;;  %4944 = vst [vmem:[#allocation93_spill] sm:$0xff] %v3986_v10  ;;  %4947 = vst [vmem:[#allocation96_spill] sm:$0xff] %v4004_v1  ;;  %v1770_v20 = vld [vmem:[%s4708_s2 + $0x8e0] sm:$0xff] }
  0x93   : > { %2200 = vmatpush1.bf16.msra.mxu1 %v3949_v47  ;;  %2138 = vmatprep.subr.bf16.mxu0 %v3951_v55  ;;  %4948 = vst [vmem:[#allocation97_spill] sm:$0xff] %v4024_v22  ;;  %v4030_v55 = vpack.c.bf16 %v1771_v59, %v1767_v13  ;;  %v1766_v47 = vld [vmem:[%s4708_s2 + $0x8c0] sm:$0xff]  ;;  %4951 = vst [vmem:[#allocation100_spill] sm:$0xff] %v4042_v11  ;;  %v1779_v13 = vld [vmem:[%s4708_s2 + $0x928] sm:$0xff] }
  0x94   : > { %2202 = vmatprep.subr.bf16.mxu1 %v3963_v45  ;;  %965 = vmatprep.mubr.f32.mxu0 %v3975_v37  ;;  %v4028_v45 = vpack.c.bf16 %v1764_v54, %v1760_v27  ;;  %v1772_v27 = vld [vmem:[%s4708_s2 + $0x8f0] sm:$0xff]  ;;  %v1775_v54 = vld [vmem:[%s4708_s2 + $0x908] sm:$0xff]  ;;  %v1777_v59 = vld [vmem:[%s4708_s2 + $0x918] sm:$0xff]  ;;  %v4060_v28 = vpack.c.bf16 %v1770_v20, %v1766_v47 }
  0x95   : > { %1036 = vmatprep.mubr.f32.mxu1 %v3975_v37  ;;  %4950 = vst [vmem:[#allocation99_spill] sm:$0xff] %v4030_v55  ;;  %v1776_v47 = vld [vmem:[%s4708_s2 + $0x910] sm:$0xff]  ;;  %v4078_v20 = vpack.c.bf16 %v1781_v42, %v1777_v59  ;;  %v1789_v59 = vld [vmem:[%s4708_s2 + $0x978] sm:$0xff] }
  0x96   : > { %2140 = vmatpush1.bf16.msra.mxu0 %v3986_v10  ;;  %4949 = vst [vmem:[#allocation98_spill] sm:$0xff] %v4028_v45  ;;  %4952 = vst [vmem:[#allocation101_spill] sm:$0xff] %v4060_v28  ;;  %v1778_v10 = vld [vmem:[%s4708_s2 + $0x920] sm:$0xff] }
  0x97   : > { %2204 = vmatpush1.bf16.msra.mxu1 %v3990_v46  ;;  %2142 = vmatprep.subr.bf16.mxu0 %v3992_v2  ;;  %v4066_v2 = vpack.c.bf16 %v1779_v13, %v1775_v54  ;;  %v1774_v46 = vld [vmem:[%s4708_s2 + $0x900] sm:$0xff]  ;;  %4955 = vst [vmem:[#allocation104_spill] sm:$0xff] %v4078_v20  ;;  %v1787_v54 = vld [vmem:[%s4708_s2 + $0x968] sm:$0xff]  ;;  %v1785_v13 = vld [vmem:[%s4708_s2 + $0x958] sm:$0xff] }
  0x98   : > { %2206 = vmatprep.subr.bf16.mxu1 %v4004_v1  ;;  %v4064_v1 = vpack.c.bf16 %v1772_v27, %v1768_v24  ;;  %v1780_v24 = vld [vmem:[%s4708_s2 + $0x930] sm:$0xff]  ;;  %v1783_v27 = vld [vmem:[%s4708_s2 + $0x948] sm:$0xff]  ;;  %v4096_v42 = vpack.c.bf16 %v1778_v10, %v1774_v46  ;;  %v4114_v46 = vpack.c.bf16 %v1789_v59, %v1785_v13  ;;  %v1797_v13 = vld [vmem:[%s4708_s2 + $0x9b8] sm:$0xff] }
  0x99   : > { %4954 = vst [vmem:[#allocation103_spill] sm:$0xff] %v4066_v2  ;;  %v1784_v10 = vld [vmem:[%s4708_s2 + $0x950] sm:$0xff] }
  0x9a   : > { %2144 = vmatpush1.bf16.msra.mxu0 %v4024_v22  ;;  %4953 = vst [vmem:[#allocation102_spill] sm:$0xff] %v4064_v1  ;;  %4956 = vst [vmem:[#allocation105_spill] sm:$0xff] %v4096_v42  ;;  %v1786_v22 = vld [vmem:[%s4708_s2 + $0x960] sm:$0xff] }
  0x9b   : > { %2208 = vmatpush1.bf16.msra.mxu1 %v4028_v45  ;;  %2146 = vmatprep.subr.bf16.mxu0 %v4030_v55  ;;  %v4102_v55 = vpack.c.bf16 %v1787_v54, %v1783_v27  ;;  %v1782_v45 = vld [vmem:[%s4708_s2 + $0x940] sm:$0xff]  ;;  %4959 = vst [vmem:[#allocation108_spill] sm:$0xff] %v4114_v46  ;;  %v1795_v27 = vld [vmem:[%s4708_s2 + $0x9a8] sm:$0xff]  ;;  %v1793_v54 = vld [vmem:[%s4708_s2 + $0x998] sm:$0xff] }
  0x9c   : > { %2210 = vmatprep.subr.bf16.mxu1 %v4042_v11  ;;  %v4100_v11 = vpack.c.bf16 %v1780_v24, %v1776_v47  ;;  %v1788_v47 = vld [vmem:[%s4708_s2 + $0x970] sm:$0xff]  ;;  %v1791_v24 = vld [vmem:[%s4708_s2 + $0x988] sm:$0xff]  ;;  %v4132_v59 = vpack.c.bf16 %v1786_v22, %v1782_v45  ;;  %v4150_v22 = vpack.c.bf16 %v1797_v13, %v1793_v54  ;;  %v1805_v54 = vld [vmem:[%s4708_s2 + $0x9f8] sm:$0xff] }
  0x9d   : > { %4958 = vst [vmem:[#allocation107_spill] sm:$0xff] %v4102_v55  ;;  %v1792_v45 = vld [vmem:[%s4708_s2 + $0x990] sm:$0xff] }
  0x9e   : > { %2148 = vmatpush1.bf16.msra.mxu0 %v4060_v28  ;;  %4957 = vst [vmem:[#allocation106_spill] sm:$0xff] %v4100_v11  ;;  %4960 = vst [vmem:[#allocation109_spill] sm:$0xff] %v4132_v59  ;;  %v1794_v28 = vld [vmem:[%s4708_s2 + $0x9a0] sm:$0xff] }
  0x9f   : > { %2212 = vmatpush1.bf16.msra.mxu1 %v4064_v1  ;;  %2150 = vmatprep.subr.bf16.mxu0 %v4066_v2  ;;  %v4138_v2 = vpack.c.bf16 %v1795_v27, %v1791_v24  ;;  %v1790_v1 = vld [vmem:[%s4708_s2 + $0x980] sm:$0xff]  ;;  %4963 = vst [vmem:[#allocation112_spill] sm:$0xff] %v4150_v22  ;;  %v1803_v24 = vld [vmem:[%s4708_s2 + $0x9e8] sm:$0xff]  ;;  %v1801_v27 = vld [vmem:[%s4708_s2 + $0x9d8] sm:$0xff] }
  0xa0   : > { %2214 = vmatprep.subr.bf16.mxu1 %v4078_v20  ;;  %v4136_v20 = vpack.c.bf16 %v1788_v47, %v1784_v10  ;;  %v1796_v10 = vld [vmem:[%s4708_s2 + $0x9b0] sm:$0xff]  ;;  %v1799_v47 = vld [vmem:[%s4708_s2 + $0x9c8] sm:$0xff]  ;;  %v4168_v13 = vpack.c.bf16 %v1794_v28, %v1790_v1  ;;  %v4186_v28 = vpack.c.bf16 %v1805_v54, %v1801_v27  ;;  %v1813_v27 = vld [vmem:[%s4708_s2 + $0xa38] sm:$0xff] }
  0xa1   : > { %4962 = vst [vmem:[#allocation111_spill] sm:$0xff] %v4138_v2  ;;  %v1800_v1 = vld [vmem:[%s4708_s2 + $0x9d0] sm:$0xff] }
  0xa2   : > { %2152 = vmatpush1.bf16.msra.mxu0 %v4096_v42  ;;  %4961 = vst [vmem:[#allocation110_spill] sm:$0xff] %v4136_v20  ;;  %4964 = vst [vmem:[#allocation113_spill] sm:$0xff] %v4168_v13  ;;  %v1802_v42 = vld [vmem:[%s4708_s2 + $0x9e0] sm:$0xff] }
  0xa3   : > { %2216 = vmatpush1.bf16.msra.mxu1 %v4100_v11  ;;  %2154 = vmatprep.subr.bf16.mxu0 %v4102_v55  ;;  %v4174_v55 = vpack.c.bf16 %v1803_v24, %v1799_v47  ;;  %v1798_v11 = vld [vmem:[%s4708_s2 + $0x9c0] sm:$0xff]  ;;  %4967 = vst [vmem:[#allocation116_spill] sm:$0xff] %v4186_v28  ;;  %v1811_v47 = vld [vmem:[%s4708_s2 + $0xa28] sm:$0xff]  ;;  %v1809_v24 = vld [vmem:[%s4708_s2 + $0xa18] sm:$0xff] }
  0xa4   : > { %2218 = vmatprep.subr.bf16.mxu1 %v4114_v46  ;;  %v4172_v46 = vpack.c.bf16 %v1796_v10, %v1792_v45  ;;  %v1804_v45 = vld [vmem:[%s4708_s2 + $0x9f0] sm:$0xff]  ;;  %v1807_v10 = vld [vmem:[%s4708_s2 + $0xa08] sm:$0xff]  ;;  %v4204_v54 = vpack.c.bf16 %v1802_v42, %v1798_v11  ;;  %v4222_v42 = vpack.c.bf16 %v1813_v27, %v1809_v24  ;;  %v1821_v24 = vld [vmem:[%s4708_s2 + $0xa78] sm:$0xff] }
  0xa5   : > { %4966 = vst [vmem:[#allocation115_spill] sm:$0xff] %v4174_v55  ;;  %v1808_v11 = vld [vmem:[%s4708_s2 + $0xa10] sm:$0xff] }
  0xa6   : > { %2156 = vmatpush1.bf16.msra.mxu0 %v4132_v59  ;;  %4965 = vst [vmem:[#allocation114_spill] sm:$0xff] %v4172_v46  ;;  %4968 = vst [vmem:[#allocation117_spill] sm:$0xff] %v4204_v54  ;;  %v1810_v59 = vld [vmem:[%s4708_s2 + $0xa20] sm:$0xff] }
  0xa7   : > { %2220 = vmatpush1.bf16.msra.mxu1 %v4136_v20  ;;  %2158 = vmatprep.subr.bf16.mxu0 %v4138_v2  ;;  %v4210_v2 = vpack.c.bf16 %v1811_v47, %v1807_v10  ;;  %v1806_v20 = vld [vmem:[%s4708_s2 + $0xa00] sm:$0xff]  ;;  %4971 = vst [vmem:[#allocation120_spill] sm:$0xff] %v4222_v42  ;;  %v1819_v10 = vld [vmem:[%s4708_s2 + $0xa68] sm:$0xff]  ;;  %v1817_v47 = vld [vmem:[%s4708_s2 + $0xa58] sm:$0xff] }
  0xa8   : > { %2222 = vmatprep.subr.bf16.mxu1 %v4150_v22  ;;  %v4208_v22 = vpack.c.bf16 %v1804_v45, %v1800_v1  ;;  %v1812_v1 = vld [vmem:[%s4708_s2 + $0xa30] sm:$0xff]  ;;  %v1815_v45 = vld [vmem:[%s4708_s2 + $0xa48] sm:$0xff]  ;;  %v4240_v27 = vpack.c.bf16 %v1810_v59, %v1806_v20  ;;  %v4258_v59 = vpack.c.bf16 %v1821_v24, %v1817_v47  ;;  %v1829_v47 = vld [vmem:[%s4708_s2 + $0xab8] sm:$0xff] }
  0xa9   : > { %4970 = vst [vmem:[#allocation119_spill] sm:$0xff] %v4210_v2  ;;  %v1816_v20 = vld [vmem:[%s4708_s2 + $0xa50] sm:$0xff] }
  0xaa   : > { %2160 = vmatpush1.bf16.msra.mxu0 %v4168_v13  ;;  %4969 = vst [vmem:[#allocation118_spill] sm:$0xff] %v4208_v22  ;;  %4972 = vst [vmem:[#allocation121_spill] sm:$0xff] %v4240_v27  ;;  %v1818_v13 = vld [vmem:[%s4708_s2 + $0xa60] sm:$0xff] }
  0xab   : > { %2224 = vmatpush1.bf16.msra.mxu1 %v4172_v46  ;;  %2162 = vmatprep.subr.bf16.mxu0 %v4174_v55  ;;  %v4246_v55 = vpack.c.bf16 %v1819_v10, %v1815_v45  ;;  %v1814_v46 = vld [vmem:[%s4708_s2 + $0xa40] sm:$0xff]  ;;  %4975 = vst [vmem:[#allocation124_spill] sm:$0xff] %v4258_v59  ;;  %v1827_v45 = vld [vmem:[%s4708_s2 + $0xaa8] sm:$0xff]  ;;  %v1825_v10 = vld [vmem:[%s4708_s2 + $0xa98] sm:$0xff] }
  0xac   : > { %2226 = vmatprep.subr.bf16.mxu1 %v4186_v28  ;;  %v4244_v28 = vpack.c.bf16 %v1812_v1, %v1808_v11  ;;  %v1820_v11 = vld [vmem:[%s4708_s2 + $0xa70] sm:$0xff]  ;;  %v1823_v1 = vld [vmem:[%s4708_s2 + $0xa88] sm:$0xff]  ;;  %v4276_v24 = vpack.c.bf16 %v1818_v13, %v1814_v46  ;;  %v4294_v13 = vpack.c.bf16 %v1829_v47, %v1825_v10  ;;  %v1837_v10 = vld [vmem:[%s4708_s2 + $0xaf8] sm:$0xff] }
  0xad   : > { %4974 = vst [vmem:[#allocation123_spill] sm:$0xff] %v4246_v55  ;;  %v1824_v46 = vld [vmem:[%s4708_s2 + $0xa90] sm:$0xff] }
  0xae   : > { %2164 = vmatpush1.bf16.msra.mxu0 %v4204_v54  ;;  %4973 = vst [vmem:[#allocation122_spill] sm:$0xff] %v4244_v28  ;;  %4976 = vst [vmem:[#allocation125_spill] sm:$0xff] %v4276_v24  ;;  %v1826_v54 = vld [vmem:[%s4708_s2 + $0xaa0] sm:$0xff] }
  0xaf   : > { %2228 = vmatpush1.bf16.msra.mxu1 %v4208_v22  ;;  %2166 = vmatprep.subr.bf16.mxu0 %v4210_v2  ;;  %v4282_v2 = vpack.c.bf16 %v1827_v45, %v1823_v1  ;;  %v1822_v22 = vld [vmem:[%s4708_s2 + $0xa80] sm:$0xff]  ;;  %4979 = vst [vmem:[#allocation128_spill] sm:$0xff] %v4294_v13  ;;  %v1835_v1 = vld [vmem:[%s4708_s2 + $0xae8] sm:$0xff]  ;;  %v1833_v45 = vld [vmem:[%s4708_s2 + $0xad8] sm:$0xff] }
  0xb0   : > { %2230 = vmatprep.subr.bf16.mxu1 %v4222_v42  ;;  %v4280_v42 = vpack.c.bf16 %v1820_v11, %v1816_v20  ;;  %v1828_v20 = vld [vmem:[%s4708_s2 + $0xab0] sm:$0xff]  ;;  %v1831_v11 = vld [vmem:[%s4708_s2 + $0xac8] sm:$0xff]  ;;  %v4312_v47 = vpack.c.bf16 %v1826_v54, %v1822_v22  ;;  %v4330_v54 = vpack.c.bf16 %v1837_v10, %v1833_v45  ;;  %v1845_v45 = vld [vmem:[%s4708_s2 + $0xb38] sm:$0xff] }
  0xb1   : > { %4978 = vst [vmem:[#allocation127_spill] sm:$0xff] %v4282_v2  ;;  %v1832_v22 = vld [vmem:[%s4708_s2 + $0xad0] sm:$0xff] }
  0xb2   : > { %2168 = vmatpush1.bf16.msra.mxu0 %v4240_v27  ;;  %4977 = vst [vmem:[#allocation126_spill] sm:$0xff] %v4280_v42  ;;  %4980 = vst [vmem:[#allocation129_spill] sm:$0xff] %v4312_v47  ;;  %v1834_v27 = vld [vmem:[%s4708_s2 + $0xae0] sm:$0xff] }
  0xb3   : > { %2232 = vmatpush1.bf16.msra.mxu1 %v4244_v28  ;;  %2170 = vmatprep.subr.bf16.mxu0 %v4246_v55  ;;  %v4318_v55 = vpack.c.bf16 %v1835_v1, %v1831_v11  ;;  %v1830_v28 = vld [vmem:[%s4708_s2 + $0xac0] sm:$0xff]  ;;  %4983 = vst [vmem:[#allocation132_spill] sm:$0xff] %v4330_v54  ;;  %v1843_v11 = vld [vmem:[%s4708_s2 + $0xb28] sm:$0xff]  ;;  %v1841_v1 = vld [vmem:[%s4708_s2 + $0xb18] sm:$0xff] }
  0xb4   : > { %2234 = vmatprep.subr.bf16.mxu1 %v4258_v59  ;;  %v4316_v59 = vpack.c.bf16 %v1828_v20, %v1824_v46  ;;  %v1836_v46 = vld [vmem:[%s4708_s2 + $0xaf0] sm:$0xff]  ;;  %v1839_v20 = vld [vmem:[%s4708_s2 + $0xb08] sm:$0xff]  ;;  %v4348_v10 = vpack.c.bf16 %v1834_v27, %v1830_v28  ;;  %v4366_v27 = vpack.c.bf16 %v1845_v45, %v1841_v1  ;;  %v1853_v1 = vld [vmem:[%s4708_s2 + $0xb78] sm:$0xff] }
  0xb5   : > { %4982 = vst [vmem:[#allocation131_spill] sm:$0xff] %v4318_v55  ;;  %v1840_v28 = vld [vmem:[%s4708_s2 + $0xb10] sm:$0xff] }
  0xb6   : > { %2172 = vmatpush1.bf16.msra.mxu0 %v4276_v24  ;;  %4981 = vst [vmem:[#allocation130_spill] sm:$0xff] %v4316_v59  ;;  %4984 = vst [vmem:[#allocation133_spill] sm:$0xff] %v4348_v10  ;;  %v1842_v24 = vld [vmem:[%s4708_s2 + $0xb20] sm:$0xff] }
  0xb7   : > { %2236 = vmatpush1.bf16.msra.mxu1 %v4280_v42  ;;  %2174 = vmatprep.subr.bf16.mxu0 %v4282_v2  ;;  %v4354_v2 = vpack.c.bf16 %v1843_v11, %v1839_v20  ;;  %v1838_v42 = vld [vmem:[%s4708_s2 + $0xb00] sm:$0xff]  ;;  %4987 = vst [vmem:[#allocation136_spill] sm:$0xff] %v4366_v27  ;;  %v1851_v20 = vld [vmem:[%s4708_s2 + $0xb68] sm:$0xff]  ;;  %v1849_v11 = vld [vmem:[%s4708_s2 + $0xb58] sm:$0xff] }
  0xb8   : > { %2238 = vmatprep.subr.bf16.mxu1 %v4294_v13  ;;  %v4352_v13 = vpack.c.bf16 %v1836_v46, %v1832_v22  ;;  %v1844_v22 = vld [vmem:[%s4708_s2 + $0xb30] sm:$0xff]  ;;  %v1847_v46 = vld [vmem:[%s4708_s2 + $0xb48] sm:$0xff]  ;;  %v4384_v45 = vpack.c.bf16 %v1842_v24, %v1838_v42  ;;  %v4402_v24 = vpack.c.bf16 %v1853_v1, %v1849_v11  ;;  %v1861_v11 = vld [vmem:[%s4708_s2 + $0xbb8] sm:$0xff] }
  0xb9   : > { %4986 = vst [vmem:[#allocation135_spill] sm:$0xff] %v4354_v2  ;;  %v1848_v42 = vld [vmem:[%s4708_s2 + $0xb50] sm:$0xff] }
  0xba   : > { %2176 = vmatpush1.bf16.msra.mxu0 %v4312_v47  ;;  %4985 = vst [vmem:[#allocation134_spill] sm:$0xff] %v4352_v13  ;;  %4988 = vst [vmem:[#allocation137_spill] sm:$0xff] %v4384_v45  ;;  %v1850_v47 = vld [vmem:[%s4708_s2 + $0xb60] sm:$0xff] }
  0xbb   : > { %2240 = vmatpush1.bf16.msra.mxu1 %v4316_v59  ;;  %2178 = vmatprep.subr.bf16.mxu0 %v4318_v55  ;;  %v4390_v55 = vpack.c.bf16 %v1851_v20, %v1847_v46  ;;  %v1846_v59 = vld [vmem:[%s4708_s2 + $0xb40] sm:$0xff]  ;;  %4991 = vst [vmem:[#allocation140_spill] sm:$0xff] %v4402_v24  ;;  %v1859_v46 = vld [vmem:[%s4708_s2 + $0xba8] sm:$0xff]  ;;  %v1857_v20 = vld [vmem:[%s4708_s2 + $0xb98] sm:$0xff] }
  0xbc   : > { %2242 = vmatprep.subr.bf16.mxu1 %v4330_v54  ;;  %v4388_v54 = vpack.c.bf16 %v1844_v22, %v1840_v28  ;;  %v1852_v28 = vld [vmem:[%s4708_s2 + $0xb70] sm:$0xff]  ;;  %v1855_v22 = vld [vmem:[%s4708_s2 + $0xb88] sm:$0xff]  ;;  %v4420_v1 = vpack.c.bf16 %v1850_v47, %v1846_v59  ;;  %v4438_v47 = vpack.c.bf16 %v1861_v11, %v1857_v20  ;;  %v1869_v20 = vld [vmem:[%s4708_s2 + $0xbf8] sm:$0xff] }
  0xbd   : > { %4990 = vst [vmem:[#allocation139_spill] sm:$0xff] %v4390_v55  ;;  %v1856_v59 = vld [vmem:[%s4708_s2 + $0xb90] sm:$0xff] }
  0xbe   : > { %2180 = vmatpush1.bf16.msra.mxu0 %v4348_v10  ;;  %4989 = vst [vmem:[#allocation138_spill] sm:$0xff] %v4388_v54  ;;  %v1858_v10 = vld [vmem:[%s4708_s2 + $0xba0] sm:$0xff] }
  0xbf   : > { %2244 = vmatpush1.bf16.msra.mxu1 %v4352_v13  ;;  %2182 = vmatprep.subr.bf16.mxu0 %v4354_v2  ;;  %v4426_v2 = vpack.c.bf16 %v1859_v46, %v1855_v22  ;;  %v1854_v13 = vld [vmem:[%s4708_s2 + $0xb80] sm:$0xff]  ;;  %v1867_v22 = vld [vmem:[%s4708_s2 + $0xbe8] sm:$0xff]  ;;  %v1865_v46 = vld [vmem:[%s4708_s2 + $0xbd8] sm:$0xff] }
  0xc0   : > { %2246 = vmatprep.subr.bf16.mxu1 %v4366_v27  ;;  %v4424_v27 = vpack.c.bf16 %v1852_v28, %v1848_v42  ;;  %v1860_v42 = vld [vmem:[%s4708_s2 + $0xbb0] sm:$0xff]  ;;  %v1863_v28 = vld [vmem:[%s4708_s2 + $0xbc8] sm:$0xff]  ;;  %v4456_v11 = vpack.c.bf16 %v1858_v10, %v1854_v13  ;;  %v4471_v13 = vpack.c.bf16 %v1869_v20, %v1865_v46  ;;  %v5042_v20 = vld [vmem:[#allocation53_spill] sm:$0xff] }
  0xc1   : > { %v1864_v10 = vld [vmem:[%s4708_s2 + $0xbd0] sm:$0xff] }
  0xc2   : > { %2184 = vmatpush1.bf16.msra.mxu0 %v4384_v45  ;;  %v1866_v45 = vld [vmem:[%s4708_s2 + $0xbe0] sm:$0xff]  ;;  %v5041_v46 = vld [vmem:[#allocation52_spill] sm:$0xff] }
  0xc3   : > { %2248 = vmatpush1.bf16.msra.mxu1 %v4388_v54  ;;  %2186 = vmatprep.subr.bf16.mxu0 %v4390_v55  ;;  %v4462_v55 = vpack.c.bf16 %v1867_v22, %v1863_v28  ;;  %v1862_v54 = vld [vmem:[%s4708_s2 + $0xbc0] sm:$0xff]  ;;  %v4488_v22 = vrot.slane %v3936_v40, 1  ;;  %v5037_v40 = vld [vmem:[#allocation48_spill] sm:$0xff] }
  0xc4   : > { %2250 = vmatprep.subr.bf16.mxu1 %v4402_v24  ;;  %v4460_v24 = vpack.c.bf16 %v1860_v42, %v1856_v59  ;;  %v1868_v59 = vld [vmem:[%s4708_s2 + $0xbf0] sm:$0xff]  ;;  %v4480_v42 = vpack.c.bf16 %v1866_v45, %v1862_v54  ;;  %v5039_v54 = vld [vmem:[#allocation50_spill] sm:$0xff]  ;;  %v5040_v45 = vld [vmem:[#allocation51_spill] sm:$0xff] }
  0xc5   : > { %v4484_v28 = vpack.c.bf16 %v1868_v59, %v1864_v10  ;;  %v5043_v10 = vld [vmem:[#allocation54_spill] sm:$0xff]  ;;  %v5044_v59 = vld [vmem:[#allocation55_spill] sm:$0xff] }
  0xc6   : > { %2188 = vmatpush1.bf16.msra.mxu0 %v4420_v1 }
  0xc7   : > { %2252 = vmatpush1.bf16.msra.mxu1 %v4424_v27  ;;  %2190 = vmatprep.subr.bf16.mxu0 %v4426_v2 }
  0xc8   : > { %2254 = vmatprep.subr.bf16.mxu1 %v4438_v47 }
  0xca   : > { %2192 = vmatpush1.bf16.msra.mxu0 %v4456_v11 }
  0xcb   : > { %2256 = vmatpush1.bf16.msra.mxu1 %v4460_v24  ;;  %2194 = vmatprep.subr.bf16.mxu0 %v4462_v55 }
  0xcc   : > { %2258 = vmatprep.subr.bf16.mxu1 %v4471_v13 }
  0xce   : > { %2196 = vmatpush1.bf16.msra.mxu0 %v4480_v42 }
  0xcf   : > { %2260 = vmatpush1.bf16.msra.mxu1 %v4484_v28  ;;  %2262 = vmatprep.subr.bf16.mxu0 %v2721_v3  ;;  %v4992_v3 = vld [vmem:[#allocation2_spill] sm:$0xff] }
  0xd0   : > { %2326 = vmatprep.subr.bf16.mxu1 %v2732_v7  ;;  %v4993_v7 = vld [vmem:[#allocation4_spill] sm:$0xff] }
  0xd1   : > { %966 = vmatmul.mubr.f32.vlgmr.msra.gmra.mrb[0].mxu0 %v4488_v22 }
  0xd2   : > { %1037 = vmatmul.mubr.f32.vlgmr.msra.gmra.mrb[0].mxu1 %v4488_v22  ;;  %2264 = vmatpush1.bf16.msra.mxu0 %v2734_v8  ;;  %v4994_v8 = vld [vmem:[#allocation5_spill] sm:$0xff] }
  0xd3   : > { %2328 = vmatpush1.bf16.msra.mxu1 %v2746_v12  ;;  %2266 = vmatprep.subr.bf16.mxu0 %v2759_v16  ;;  %v4995_v12 = vld [vmem:[#allocation6_spill] sm:$0xff]  ;;  %v4996_v16 = vld [vmem:[#allocation7_spill] sm:$0xff] }
  0xd4   : > { %2330 = vmatprep.subr.bf16.mxu1 %v2761_v17  ;;  %1111 = vmatprep.mubr.f32.mxu0 %v3975_v37  ;;  %v4997_v17 = vld [vmem:[#allocation8_spill] sm:$0xff] }
  0xd5   : > { %1182 = vmatprep.mubr.f32.mxu1 %v3975_v37  ;;  %v5038_v37 = vld [vmem:[#allocation49_spill] sm:$0xff] }
  0xd6   : > { %2268 = vmatpush1.bf16.msra.mxu0 %v2773_v21  ;;  %v4998_v21 = vld [vmem:[#allocation9_spill] sm:$0xff] }
  0xd7   : > { %2332 = vmatpush1.bf16.msra.mxu1 %v2786_v25  ;;  %2270 = vmatprep.subr.bf16.mxu0 %v2788_v26  ;;  %v4999_v25 = vld [vmem:[#allocation10_spill] sm:$0xff]  ;;  %v5000_v26 = vld [vmem:[#allocation11_spill] sm:$0xff] }
  0xd8   : > { %2334 = vmatprep.subr.bf16.mxu1 %v2799_v30  ;;  %v5001_v30 = vld [vmem:[#allocation12_spill] sm:$0xff] }
  0xda   : > { %2272 = vmatpush1.bf16.msra.mxu0 %v2811_v34  ;;  %v5002_v34 = vld [vmem:[#allocation13_spill] sm:$0xff] }
  0xdb   : > { %2336 = vmatpush1.bf16.msra.mxu1 %v2824_v38  ;;  %2274 = vmatprep.subr.bf16.mxu0 %v2826_v39  ;;  %v5003_v38 = vld [vmem:[#allocation14_spill] sm:$0xff]  ;;  %v5004_v39 = vld [vmem:[#allocation15_spill] sm:$0xff] }
  0xdc   : > { %2338 = vmatprep.subr.bf16.mxu1 %v2838_v43  ;;  %v5005_v43 = vld [vmem:[#allocation16_spill] sm:$0xff] }
  0xde   : > { %2276 = vmatpush1.bf16.msra.mxu0 %v2859_v50  ;;  %v5006_v50 = vld [vmem:[#allocation17_spill] sm:$0xff] }
  0xdf   : > { %2340 = vmatpush1.bf16.msra.mxu1 %v2863_v51  ;;  %2278 = vmatprep.subr.bf16.mxu0 %v2865_v52  ;;  %v5007_v51 = vld [vmem:[#allocation18_spill] sm:$0xff]  ;;  %v5008_v52 = vld [vmem:[#allocation19_spill] sm:$0xff] }
  0xe0   : > { %2342 = vmatprep.subr.bf16.mxu1 %v2877_v56  ;;  %v5009_v56 = vld [vmem:[#allocation20_spill] sm:$0xff] }
  0xe2   : > { %2280 = vmatpush1.bf16.msra.mxu0 %v2895_v62  ;;  %v5010_v62 = vld [vmem:[#allocation21_spill] sm:$0xff] }
  0xe3   : > { %2344 = vmatpush1.bf16.msra.mxu1 %v2899_v63  ;;  %2282 = vmatprep.subr.bf16.mxu0 %v2901_v0  ;;  %v5011_v63 = vld [vmem:[#allocation22_spill] sm:$0xff]  ;;  %v5012_v0 = vld [vmem:[#allocation23_spill] sm:$0xff] }
  0xe4   : > { %2346 = vmatprep.subr.bf16.mxu1 %v2913_v5  ;;  %v5013_v5 = vld [vmem:[#allocation25_spill] sm:$0xff] }
  0xe6   : > { %2284 = vmatpush1.bf16.msra.mxu0 %v2931_v14  ;;  %v5014_v14 = vld [vmem:[#allocation26_spill] sm:$0xff] }
  0xe7   : > { %2348 = vmatpush1.bf16.msra.mxu1 %v2935_v15  ;;  %2286 = vmatprep.subr.bf16.mxu0 %v2937_v18  ;;  %v5015_v15 = vld [vmem:[#allocation27_spill] sm:$0xff]  ;;  %v5016_v18 = vld [vmem:[#allocation28_spill] sm:$0xff] }
  0xe8   : > { %2350 = vmatprep.subr.bf16.mxu1 %v2949_v23  ;;  %v5017_v23 = vld [vmem:[#allocation3_spill] sm:$0xff] }
  0xea   : > { %2288 = vmatpush1.bf16.msra.mxu0 %v2967_v32  ;;  %v5018_v32 = vld [vmem:[#allocation29_spill] sm:$0xff] }
  0xeb   : > { %2352 = vmatpush1.bf16.msra.mxu1 %v2971_v33  ;;  %2290 = vmatprep.subr.bf16.mxu0 %v2973_v35  ;;  %v5019_v33 = vld [vmem:[#allocation30_spill] sm:$0xff]  ;;  %v5020_v35 = vld [vmem:[#allocation31_spill] sm:$0xff] }
  0xec   : > { %2354 = vmatprep.subr.bf16.mxu1 %v2985_v41  ;;  %v5021_v41 = vld [vmem:[#allocation32_spill] sm:$0xff] }
  0xee   : > { %2292 = vmatpush1.bf16.msra.mxu0 %v3003_v48  ;;  %v5022_v48 = vld [vmem:[#allocation33_spill] sm:$0xff] }
  0xef   : > { %2356 = vmatpush1.bf16.msra.mxu1 %v3013_v49  ;;  %2294 = vmatprep.subr.bf16.mxu0 %v3015_v53  ;;  %v5023_v49 = vld [vmem:[#allocation34_spill] sm:$0xff]  ;;  %v5024_v53 = vld [vmem:[#allocation35_spill] sm:$0xff] }
  0xf0   : > { %2358 = vmatprep.subr.bf16.mxu1 %v3027_v58  ;;  %v5025_v58 = vld [vmem:[#allocation36_spill] sm:$0xff] }
  0xf2   : > { %2296 = vmatpush1.bf16.msra.mxu0 %v3045_v4  ;;  %v5026_v4 = vld [vmem:[#allocation37_spill] sm:$0xff] }
  0xf3   : > { %2360 = vmatpush1.bf16.msra.mxu1 %v3053_v6  ;;  %2298 = vmatprep.subr.bf16.mxu0 %v3055_v9  ;;  %v5027_v6 = vld [vmem:[#allocation38_spill] sm:$0xff]  ;;  %v5028_v9 = vld [vmem:[#allocation39_spill] sm:$0xff] }
  0xf4   : > { %2362 = vmatprep.subr.bf16.mxu1 %v3067_v19  ;;  %v5029_v19 = vld [vmem:[#allocation40_spill] sm:$0xff] }
  0xf6   : > { %2300 = vmatpush1.bf16.msra.mxu0 %v3085_v29  ;;  %v5030_v29 = vld [vmem:[#allocation41_spill] sm:$0xff] }
  0xf7   : > { %2364 = vmatpush1.bf16.msra.mxu1 %v3091_v31  ;;  %2302 = vmatprep.subr.bf16.mxu0 %v3093_v36  ;;  %v5031_v31 = vld [vmem:[#allocation42_spill] sm:$0xff]  ;;  %v5032_v36 = vld [vmem:[#allocation43_spill] sm:$0xff] }
  0xf8   : > { %2366 = vmatprep.subr.bf16.mxu1 %v3105_v44  ;;  %v5033_v44 = vld [vmem:[#allocation44_spill] sm:$0xff] }
  0xfa   : > { %2304 = vmatpush1.bf16.msra.mxu0 %v3127_v57  ;;  %v5034_v57 = vld [vmem:[#allocation45_spill] sm:$0xff] }
  0xfb   : > { %2368 = vmatpush1.bf16.msra.mxu1 %v3134_v60  ;;  %2306 = vmatprep.subr.bf16.mxu0 %v3136_v61  ;;  %v5035_v60 = vld [vmem:[#allocation46_spill] sm:$0xff]  ;;  %v5036_v61 = vld [vmem:[#allocation47_spill] sm:$0xff] }
  0xfc   : > { %2370 = vmatprep.subr.bf16.mxu1 %v4992_v3  ;;  %v5046_v3 = vld [vmem:[#allocation57_spill] sm:$0xff] }
  0xfe   : > { %2308 = vmatpush1.bf16.msra.mxu0 %v4993_v7  ;;  %v5047_v7 = vld [vmem:[#allocation58_spill] sm:$0xff] }
  0xff   : > { %2372 = vmatpush1.bf16.msra.mxu1 %v4994_v8  ;;  %2310 = vmatprep.subr.bf16.mxu0 %v4995_v12  ;;  %v5048_v8 = vld [vmem:[#allocation59_spill] sm:$0xff]  ;;  %v5049_v12 = vld [vmem:[#allocation60_spill] sm:$0xff] }
 0x100   : > { %2374 = vmatprep.subr.bf16.mxu1 %v4996_v16  ;;  %v5050_v16 = vld [vmem:[#allocation61_spill] sm:$0xff] }
 0x102   : > { %2312 = vmatpush1.bf16.msra.mxu0 %v4997_v17  ;;  %v5051_v17 = vld [vmem:[#allocation62_spill] sm:$0xff] }
 0x103   : > { %2376 = vmatpush1.bf16.msra.mxu1 %v4998_v21  ;;  %2314 = vmatprep.subr.bf16.mxu0 %v4999_v25  ;;  %v5052_v21 = vld [vmem:[#allocation63_spill] sm:$0xff]  ;;  %v5053_v25 = vld [vmem:[#allocation64_spill] sm:$0xff] }
 0x104   : > { %2378 = vmatprep.subr.bf16.mxu1 %v5000_v26  ;;  %v5054_v26 = vld [vmem:[#allocation65_spill] sm:$0xff] }
 0x106   : > { %2316 = vmatpush1.bf16.msra.mxu0 %v5001_v30  ;;  %v5055_v30 = vld [vmem:[#allocation66_spill] sm:$0xff] }
 0x107   : > { %2380 = vmatpush1.bf16.msra.mxu1 %v5002_v34  ;;  %2318 = vmatprep.subr.bf16.mxu0 %v5003_v38  ;;  %v5056_v34 = vld [vmem:[#allocation67_spill] sm:$0xff]  ;;  %v5057_v38 = vld [vmem:[#allocation68_spill] sm:$0xff] }
 0x108   : > { %2382 = vmatprep.subr.bf16.mxu1 %v5004_v39  ;;  %v5058_v39 = vld [vmem:[#allocation69_spill] sm:$0xff] }
 0x10a   : > { %2320 = vmatpush1.bf16.msra.mxu0 %v5005_v43  ;;  %v5059_v43 = vld [vmem:[#allocation70_spill] sm:$0xff] }
 0x10b   : > { %2384 = vmatpush1.bf16.msra.mxu1 %v5006_v50  ;;  %2322 = vmatprep.subr.bf16.mxu0 %v5007_v51  ;;  %v5060_v50 = vld [vmem:[#allocation71_spill] sm:$0xff]  ;;  %v5061_v51 = vld [vmem:[#allocation72_spill] sm:$0xff] }
 0x10c   : > { %2386 = vmatprep.subr.bf16.mxu1 %v5008_v52  ;;  %v5062_v52 = vld [vmem:[#allocation73_spill] sm:$0xff] }
 0x10e   : > { %2324 = vmatpush1.bf16.msra.mxu0 %v5009_v56  ;;  %v5063_v56 = vld [vmem:[#allocation74_spill] sm:$0xff] }
 0x10f   : > { %2388 = vmatpush1.bf16.msra.mxu1 %v5010_v62  ;;  %2390 = vmatprep.subr.bf16.mxu0 %v5011_v63  ;;  %v5064_v62 = vld [vmem:[#allocation75_spill] sm:$0xff]  ;;  %v5065_v63 = vld [vmem:[#allocation76_spill] sm:$0xff] }
 0x110   : > { %2454 = vmatprep.subr.bf16.mxu1 %v5012_v0  ;;  %v5066_v0 = vld [vmem:[#allocation77_spill] sm:$0xff] }
 0x111   : > { %1112 = vmatmul.mubr.f32.vlgmr.msra.gmra.mrb[2].mxu0 %v4488_v22 }
 0x112   : > { %1183 = vmatmul.mubr.f32.vlgmr.msra.gmra.mrb[2].mxu1 %v4488_v22  ;;  %2392 = vmatpush1.bf16.msra.mxu0 %v5013_v5  ;;  %v5045_v22 = vld [vmem:[#allocation56_spill] sm:$0xff]  ;;  %v5067_v5 = vld [vmem:[#allocation78_spill] sm:$0xff] }
 0x113   : > { %2456 = vmatpush1.bf16.msra.mxu1 %v5014_v14  ;;  %2394 = vmatprep.subr.bf16.mxu0 %v5015_v15  ;;  %v5068_v14 = vld [vmem:[#allocation79_spill] sm:$0xff]  ;;  %v5069_v15 = vld [vmem:[#allocation80_spill] sm:$0xff] }
 0x114   : > { %2458 = vmatprep.subr.bf16.mxu1 %v5016_v18  ;;  %1253 = vmatprep.mubr.f32.mxu0 %v5017_v23  ;;  %v5070_v18 = vld [vmem:[#allocation81_spill] sm:$0xff] }
 0x115   : > { %1324 = vmatprep.mubr.f32.mxu1 %v5017_v23 }
 0x116   : > { %2396 = vmatpush1.bf16.msra.mxu0 %v5018_v32  ;;  %v5071_v32 = vld [vmem:[#allocation82_spill] sm:$0xff] }
 0x117   : > { %2460 = vmatpush1.bf16.msra.mxu1 %v5019_v33  ;;  %2398 = vmatprep.subr.bf16.mxu0 %v5020_v35  ;;  %v5072_v33 = vld [vmem:[#allocation83_spill] sm:$0xff]  ;;  %v5073_v35 = vld [vmem:[#allocation84_spill] sm:$0xff] }
 0x118   : > { %2462 = vmatprep.subr.bf16.mxu1 %v5021_v41  ;;  %v5074_v41 = vld [vmem:[#allocation85_spill] sm:$0xff] }
 0x11a   : > { %2400 = vmatpush1.bf16.msra.mxu0 %v5022_v48  ;;  %v5075_v48 = vld [vmem:[#allocation86_spill] sm:$0xff] }
 0x11b   : > { %2464 = vmatpush1.bf16.msra.mxu1 %v5023_v49  ;;  %2402 = vmatprep.subr.bf16.mxu0 %v5024_v53  ;;  %v5076_v49 = vld [vmem:[#allocation87_spill] sm:$0xff]  ;;  %v5077_v53 = vld [vmem:[#allocation88_spill] sm:$0xff] }
 0x11c   : > { %2466 = vmatprep.subr.bf16.mxu1 %v5025_v58  ;;  %v1334_v58 = vrot.slane %v5017_v23, 1  ;;  %v5086_v23 = vld [vmem:[#allocation96_spill] sm:$0xff] }
 0x11e   : > { %2404 = vmatpush1.bf16.msra.mxu0 %v5026_v4  ;;  %v5078_v4 = vld [vmem:[#allocation24_spill] sm:$0xff] }
 0x11f   : > { %2468 = vmatpush1.bf16.msra.mxu1 %v5027_v6  ;;  %2406 = vmatprep.subr.bf16.mxu0 %v5028_v9  ;;  %v5079_v6 = vld [vmem:[#allocation89_spill] sm:$0xff]  ;;  %v5080_v9 = vld [vmem:[#allocation90_spill] sm:$0xff] }
 0x120   : > { %2470 = vmatprep.subr.bf16.mxu1 %v5029_v19  ;;  %v5081_v19 = vld [vmem:[#allocation91_spill] sm:$0xff] }
 0x122   : > { %2408 = vmatpush1.bf16.msra.mxu0 %v5030_v29  ;;  %v5082_v29 = vld [vmem:[#allocation92_spill] sm:$0xff] }
 0x123   : > { %2472 = vmatpush1.bf16.msra.mxu1 %v5031_v31  ;;  %2410 = vmatprep.subr.bf16.mxu0 %v5032_v36  ;;  %v5083_v31 = vld [vmem:[#allocation93_spill] sm:$0xff]  ;;  %v5084_v36 = vld [vmem:[#allocation94_spill] sm:$0xff] }
 0x124   : > { %2474 = vmatprep.subr.bf16.mxu1 %v5033_v44  ;;  %v5085_v44 = vld [vmem:[#allocation95_spill] sm:$0xff] }
 0x126   : > { %2412 = vmatpush1.bf16.msra.mxu0 %v5034_v57  ;;  %v5087_v57 = vld [vmem:[#allocation97_spill] sm:$0xff] }
 0x127   : > { %2476 = vmatpush1.bf16.msra.mxu1 %v5035_v60  ;;  %2414 = vmatprep.subr.bf16.mxu0 %v5036_v61  ;;  %v5088_v60 = vld [vmem:[#allocation98_spill] sm:$0xff]  ;;  %v5089_v61 = vld [vmem:[#allocation99_spill] sm:$0xff] }
 0x128   : > { %2478 = vmatprep.subr.bf16.mxu1 %v5037_v40  ;;  %v5090_v40 = vld [vmem:[#allocation100_spill] sm:$0xff] }
 0x12a   : > { %2416 = vmatpush1.bf16.msra.mxu0 %v5038_v37  ;;  %v5091_v37 = vld [vmem:[#allocation101_spill] sm:$0xff] }
 0x12b   : > { %2480 = vmatpush1.bf16.msra.mxu1 %v5039_v54  ;;  %2418 = vmatprep.subr.bf16.mxu0 %v5040_v45  ;;  %v5092_v54 = vld [vmem:[#allocation102_spill] sm:$0xff]  ;;  %v5093_v45 = vld [vmem:[#allocation103_spill] sm:$0xff] }
 0x12c   : > { %2482 = vmatprep.subr.bf16.mxu1 %v5041_v46  ;;  %v5094_v46 = vld [vmem:[#allocation104_spill] sm:$0xff] }
 0x12e   : > { %2420 = vmatpush1.bf16.msra.mxu0 %v5042_v20  ;;  %v5095_v20 = vld [vmem:[#allocation105_spill] sm:$0xff] }
 0x12f   : > { %2484 = vmatpush1.bf16.msra.mxu1 %v5043_v10  ;;  %2422 = vmatprep.subr.bf16.mxu0 %v5044_v59  ;;  %v5096_v10 = vld [vmem:[#allocation106_spill] sm:$0xff]  ;;  %v5097_v59 = vld [vmem:[#allocation107_spill] sm:$0xff] }
 0x130   : > { %2486 = vmatprep.subr.bf16.mxu1 %v5045_v22  ;;  %v5098_v22 = vld [vmem:[#allocation108_spill] sm:$0xff] }
 0x132   : > { %2424 = vmatpush1.bf16.msra.mxu0 %v5046_v3  ;;  %v5099_v3 = vld [vmem:[#allocation109_spill] sm:$0xff] }
 0x133   : > { %2488 = vmatpush1.bf16.msra.mxu1 %v5047_v7  ;;  %2426 = vmatprep.subr.bf16.mxu0 %v5048_v8  ;;  %v5100_v7 = vld [vmem:[#allocation110_spill] sm:$0xff]  ;;  %v5101_v8 = vld [vmem:[#allocation111_spill] sm:$0xff] }
 0x134   : > { %2490 = vmatprep.subr.bf16.mxu1 %v5049_v12  ;;  %v5102_v12 = vld [vmem:[#allocation112_spill] sm:$0xff] }
 0x136   : > { %2428 = vmatpush1.bf16.msra.mxu0 %v5050_v16  ;;  %v5103_v16 = vld [vmem:[#allocation113_spill] sm:$0xff] }
 0x137   : > { %2492 = vmatpush1.bf16.msra.mxu1 %v5051_v17  ;;  %2430 = vmatprep.subr.bf16.mxu0 %v5052_v21  ;;  %v5104_v17 = vld [vmem:[#allocation114_spill] sm:$0xff]  ;;  %v5105_v21 = vld [vmem:[#allocation115_spill] sm:$0xff] }
 0x138   : > { %2494 = vmatprep.subr.bf16.mxu1 %v5053_v25  ;;  %v5106_v25 = vld [vmem:[#allocation116_spill] sm:$0xff] }
 0x13a   : > { %2432 = vmatpush1.bf16.msra.mxu0 %v5054_v26  ;;  %v5107_v26 = vld [vmem:[#allocation117_spill] sm:$0xff] }
 0x13b   : > { %2496 = vmatpush1.bf16.msra.mxu1 %v5055_v30  ;;  %2434 = vmatprep.subr.bf16.mxu0 %v5056_v34  ;;  %v5108_v30 = vld [vmem:[#allocation118_spill] sm:$0xff]  ;;  %v5109_v34 = vld [vmem:[#allocation119_spill] sm:$0xff] }
 0x13c   : > { %2498 = vmatprep.subr.bf16.mxu1 %v5057_v38  ;;  %v5110_v38 = vld [vmem:[#allocation120_spill] sm:$0xff] }
 0x13e   : > { %2436 = vmatpush1.bf16.msra.mxu0 %v5058_v39  ;;  %v5111_v39 = vld [vmem:[#allocation121_spill] sm:$0xff] }
 0x13f   : > { %2500 = vmatpush1.bf16.msra.mxu1 %v5059_v43  ;;  %2438 = vmatprep.subr.bf16.mxu0 %v5060_v50  ;;  %v5112_v43 = vld [vmem:[#allocation122_spill] sm:$0xff]  ;;  %v5113_v50 = vld [vmem:[#allocation123_spill] sm:$0xff] }
 0x140   : > { %2502 = vmatprep.subr.bf16.mxu1 %v5061_v51  ;;  %v5114_v51 = vld [vmem:[#allocation124_spill] sm:$0xff] }
 0x142   : > { %2440 = vmatpush1.bf16.msra.mxu0 %v5062_v52  ;;  %v5115_v52 = vld [vmem:[#allocation125_spill] sm:$0xff] }
 0x143   : > { %2504 = vmatpush1.bf16.msra.mxu1 %v5063_v56  ;;  %2442 = vmatprep.subr.bf16.mxu0 %v5064_v62  ;;  %v5116_v56 = vld [vmem:[#allocation126_spill] sm:$0xff]  ;;  %v5117_v62 = vld [vmem:[#allocation127_spill] sm:$0xff] }
 0x144   : > { %2506 = vmatprep.subr.bf16.mxu1 %v5065_v63  ;;  %v5118_v63 = vld [vmem:[#allocation128_spill] sm:$0xff] }
 0x146   : > { %2444 = vmatpush1.bf16.msra.mxu0 %v5066_v0  ;;  %v5119_v0 = vld [vmem:[#allocation129_spill] sm:$0xff] }
 0x147   : > { %2508 = vmatpush1.bf16.msra.mxu1 %v5067_v5  ;;  %2446 = vmatprep.subr.bf16.mxu0 %v5068_v14  ;;  %v5120_v5 = vld [vmem:[#allocation130_spill] sm:$0xff]  ;;  %v5121_v14 = vld [vmem:[#allocation131_spill] sm:$0xff] }
 0x148   : > { %2510 = vmatprep.subr.bf16.mxu1 %v5069_v15  ;;  %v5122_v15 = vld [vmem:[#allocation132_spill] sm:$0xff] }
 0x14a   : > { %2448 = vmatpush1.bf16.msra.mxu0 %v5070_v18  ;;  %v5123_v18 = vld [vmem:[#allocation133_spill] sm:$0xff] }
 0x14b   : > { %2512 = vmatpush1.bf16.msra.mxu1 %v5071_v32  ;;  %2450 = vmatprep.subr.bf16.mxu0 %v5072_v33  ;;  %v5124_v32 = vld [vmem:[#allocation134_spill] sm:$0xff]  ;;  %v5125_v33 = vld [vmem:[#allocation135_spill] sm:$0xff] }
 0x14c   : > { %2514 = vmatprep.subr.bf16.mxu1 %v5073_v35  ;;  %v5126_v35 = vld [vmem:[#allocation136_spill] sm:$0xff] }
 0x14e   : > { %2452 = vmatpush1.bf16.msra.mxu0 %v5074_v41  ;;  %v5127_v41 = vld [vmem:[#allocation137_spill] sm:$0xff] }
 0x14f   : > { %2516 = vmatpush1.bf16.msra.mxu1 %v5075_v48  ;;  %2518 = vmatprep.subr.bf16.mxu0 %v5076_v49  ;;  %v5128_v48 = vld [vmem:[#allocation138_spill] sm:$0xff]  ;;  %v5129_v49 = vld [vmem:[#allocation139_spill] sm:$0xff] }
 0x150   : > { %2582 = vmatprep.subr.bf16.mxu1 %v5077_v53  ;;  %v5130_v53 = vld [vmem:[#allocation140_spill] sm:$0xff] }
 0x151   : > { %1254 = vmatmul.mubr.f32.vlgmr.msra.gmra.mrb[2].mxu0 %v5078_v4 }
 0x152   : > { %1325 = vmatmul.mubr.f32.vlgmr.msra.gmra.mrb[2].mxu1 %v5078_v4  ;;  %2520 = vmatpush1.bf16.msra.mxu0 %v5079_v6 }
 0x153   : > { %2584 = vmatpush1.bf16.msra.mxu1 %v5080_v9  ;;  %2522 = vmatprep.subr.bf16.mxu0 %v5081_v19 }
 0x154   : > { %2586 = vmatprep.subr.bf16.mxu1 %v5082_v29  ;;  %1401 = vmatprep.mubr.f32.mxu0 %v1334_v58 }
 0x155   : > { %1472 = vmatprep.mubr.f32.mxu1 %v1334_v58  ;;  %v1333_v58 = vrot.slane %v5078_v4, 1 }
 0x156   : > { %2524 = vmatpush1.bf16.msra.mxu0 %v5083_v31 }
 0x157   : > { %2588 = vmatpush1.bf16.msra.mxu1 %v5084_v36  ;;  %2526 = vmatprep.subr.bf16.mxu0 %v5085_v44  ;;  %v604_v44 = vld [vmem:[%s4709_s3] sm:$0x3] }
 0x158   : > { %2590 = vmatprep.subr.bf16.mxu1 %v5086_v23 }
 0x15a   : > { %2528 = vmatpush1.bf16.msra.mxu0 %v5087_v57 }
 0x15b   : > { %2592 = vmatpush1.bf16.msra.mxu1 %v5088_v60  ;;  %2530 = vmatprep.subr.bf16.mxu0 %v5089_v61 }
 0x15c   : > { %2594 = vmatprep.subr.bf16.mxu1 %v5090_v40 }
 0x15e   : > { %2532 = vmatpush1.bf16.msra.mxu0 %v5091_v37 }
 0x15f   : > { %2596 = vmatpush1.bf16.msra.mxu1 %v5092_v54  ;;  %2534 = vmatprep.subr.bf16.mxu0 %v5093_v45 }
 0x160   : > { %2598 = vmatprep.subr.bf16.mxu1 %v5094_v46 }
 0x162   : > { %2536 = vmatpush1.bf16.msra.mxu0 %v5095_v20 }
 0x163   : > { %2600 = vmatpush1.bf16.msra.mxu1 %v5096_v10  ;;  %2538 = vmatprep.subr.bf16.mxu0 %v5097_v59 }
 0x164   : > { %2602 = vmatprep.subr.bf16.mxu1 %v5098_v22  ;;  %v1533_v22 = vld [vmem:[%s217_s29] sm:$0xff] }
 0x166   : > { %2540 = vmatpush1.bf16.msra.mxu0 %v5099_v3 }
 0x167   : > { %2604 = vmatpush1.bf16.msra.mxu1 %v5100_v7  ;;  %2542 = vmatprep.subr.bf16.mxu0 %v5101_v8 }
 0x168   : > { %2606 = vmatprep.subr.bf16.mxu1 %v5102_v12 }
 0x16a   : > { %2544 = vmatpush1.bf16.msra.mxu0 %v5103_v16 }
 0x16b   : > { %2608 = vmatpush1.bf16.msra.mxu1 %v5104_v17  ;;  %2546 = vmatprep.subr.bf16.mxu0 %v5105_v21 }
 0x16c   : > { %2610 = vmatprep.subr.bf16.mxu1 %v5106_v25 }
 0x16e   : > { %2548 = vmatpush1.bf16.msra.mxu0 %v5107_v26 }
 0x16f   : > { %2612 = vmatpush1.bf16.msra.mxu1 %v5108_v30  ;;  %2550 = vmatprep.subr.bf16.mxu0 %v5109_v34 }
 0x170   : > { %2614 = vmatprep.subr.bf16.mxu1 %v5110_v38 }
 0x172   : > { %2552 = vmatpush1.bf16.msra.mxu0 %v5111_v39 }
 0x173   : > { %2616 = vmatpush1.bf16.msra.mxu1 %v5112_v43  ;;  %2554 = vmatprep.subr.bf16.mxu0 %v5113_v50 }
 0x174   : > { %2618 = vmatprep.subr.bf16.mxu1 %v5114_v51 }
 0x176   : > { %2556 = vmatpush1.bf16.msra.mxu0 %v5115_v52 }
 0x177   : > { %2620 = vmatpush1.bf16.msra.mxu1 %v5116_v56  ;;  %2558 = vmatprep.subr.bf16.mxu0 %v5117_v62 }
 0x178   : > { %2622 = vmatprep.subr.bf16.mxu1 %v5118_v63 }
 0x17a   : > { %2560 = vmatpush1.bf16.msra.mxu0 %v5119_v0 }
 0x17b   : > { %2624 = vmatpush1.bf16.msra.mxu1 %v5120_v5  ;;  %2562 = vmatprep.subr.bf16.mxu0 %v5121_v14 }
 0x17c   : > { %2626 = vmatprep.subr.bf16.mxu1 %v5122_v15 }
 0x17e   : > { %2564 = vmatpush1.bf16.msra.mxu0 %v5123_v18 }
 0x17f   : > { %2628 = vmatpush1.bf16.msra.mxu1 %v5124_v32  ;;  %2566 = vmatprep.subr.bf16.mxu0 %v5125_v33 }
 0x180   : > { %2630 = vmatprep.subr.bf16.mxu1 %v5126_v35 }
 0x182   : > { %2568 = vmatpush1.bf16.msra.mxu0 %v5127_v41 }
 0x183   : > { %2632 = vmatpush1.bf16.msra.mxu1 %v5128_v48  ;;  %2570 = vmatprep.subr.bf16.mxu0 %v5129_v49 }
 0x184   : > { %2634 = vmatprep.subr.bf16.mxu1 %v5130_v53 }
 0x186   : > { %2572 = vmatpush1.bf16.msra.mxu0 %v4420_v1 }
 0x187   : > { %2636 = vmatpush1.bf16.msra.mxu1 %v4424_v27  ;;  %2574 = vmatprep.subr.bf16.mxu0 %v4426_v2 }
 0x188   : > { %2638 = vmatprep.subr.bf16.mxu1 %v4438_v47 }
 0x18a   : > { %2576 = vmatpush1.bf16.msra.mxu0 %v4456_v11 }
 0x18b   : > { %2640 = vmatpush1.bf16.msra.mxu1 %v4460_v24  ;;  %2578 = vmatprep.subr.bf16.mxu0 %v4462_v55 }
 0x18c   : > { %2642 = vmatprep.subr.bf16.mxu1 %v4471_v13 }
 0x18e   : > { %2580 = vmatpush1.bf16.msra.mxu0 %v4480_v42  ;;  %v1504_v42 = vlaneseq }
 0x18f   : > { %2644 = vmatpush1.bf16.msra.mxu1 %v4484_v28 }
 0x190   : > { %v1505_v28 = vshrl.u32 %v1504_v42, 7 }
 0x191   : > { %1402 = vmatmul.mubr.f32.vlgmr.msra.gmra.mrb[2].mxu0 %v1333_v58 }
 0x192   : > { %1473 = vmatmul.mubr.f32.vlgmr.msra.gmra.mrb[2].mxu1 %v1333_v58  ;;  %v1506_v31 = vsub.s32 0, %v1505_v28  ;;  %v1510_v36 = vsub.s32 1, %v1505_v28 }
 0x194   : > { %v1507_v57 = vrot.slane %v604_v44, %v1506_v31  ;;  %v1511_v60 = vrot.slane %v604_v44, %v1510_v36 }
 0x1a4   : > { %v967_v27 = vpop.f32.mrb[0].mxu0 }
 0x1a5   : > { %v1038_v2 = vpop.f32.mrb[0].mxu1  ;;  %v969_v1 = vpop.f32.mrb[1].mxu0 }
 0x1a6   : > { %v1040_v47 = vpop.f32.mrb[1].mxu1 }
 0x264   : > { %v1403_v6 = vpop.f32.mrb[2].mxu0 }
 0x265   : > { %v1483_v11 = vmax.f32 %v967_v27, %v1403_v6  ;;  %v1474_v9 = vpop.f32.mrb[2].mxu1  ;;  %v1405_v24 = vpop.f32.mrb[3].mxu0 }
 0x266   : > { %v1485_v19 = vmax.f32 %v1038_v2, %v1474_v9  ;;  %v1484_v55 = vmax.f32 %v969_v1, %v1405_v24  ;;  %v1476_v29 = vpop.f32.mrb[3].mxu1 }
 0x267   : > { %v1486_v13 = vmax.f32 %v1040_v47, %v1476_v29 }
 0x268   : > { %1490 = vrot.lane.b32.xlu0 %v1484_v55, %s2678_s24 }
 0x269   : > { %1494 = vrot.lane.b32.xlu1 %v1486_v13, %s2678_s24 }
 0x26c   : > { %1492 = vrot.lane.b32.xlu0 %v1485_v19, %s2678_s24 }
 0x2da   : > { %v1491_v4 = vpop.permute.xlu0 %1490 }
 0x2db   : > { %v1495_v23 = vpop.permute.xlu1 %1494 }
 0x2de   : > { %v1493_v61 = vpop.permute.xlu0 %1492 }
 0x2df   : > { %v1497_v40 = vsel %vm1496_vm0, %v1491_v4, %v1493_v61  ;;  %v1498_v37 = vsel %vm1496_vm0, %v1493_v61, %v1495_v23 }
 0x2e0   : > { %v1501_v54 = vmax.f32 %v1483_v11, %v1497_v40  ;;  %v1502_v45 = vmax.f32 %v1484_v55, %v1498_v37 }
 0x2e2   : > { %v1514_v46 = vadd.f32 %v1507_v57, %v1501_v54  ;;  %v1515_v20 = vadd.f32 %v1511_v60, %v1502_v45 }
 0x2e4   : > { %v1516_v10 = vmax.f32 %v1514_v46, 0.0  ;;  %v1517_v59 = vmax.f32 %v1515_v20, 0.0 }
 0x2e6   : > { %v1876_v3 = vpack.c.bf16 %v1517_v59, %v1516_v10 }
 0x2e8   : > { %v1534_v7 = vsel %vm1532_vm7, %v1876_v3, %v1533_v22 }
 0x2e9   : > { %1535 = vst [vmem:[%s217_s29] sm:$0xff] %v1534_v7 }
 0x2ea PF: > { %s14_s15 = sadd.s32 1, %s2676_s15  }
 0x2eb   : > { %p11_p4 = scmp.ge.s32.totalorder %s14_s15, 4  }
 0x2ed   :  { %13 = sbr.rel (!%p11_p4) target bundleno = 1 (0x1), region = 71 }

// kernel: cnn_forward.5
= control target key start
LH: loop header
LB: loop body
LE: loop exit
PB: predicated region body
PF: predicated region fallthrough
CT: control target
= control target key end

     0   :  { %v227_v29 = vlaneseq  ;;  %v1582_v35 = vmov 1966171168   ;;  %s1939_s0 = inlined_call_operand.vmem [shape: bf16[2,1568], index: 0, kind: input, shape index: {}]   ;;  %s1940_s1 = inlined_call_operand.vmem [shape: bf16[1568,10], index: 1, kind: input, shape index: {}]   ;;  %s1941_s2 = inlined_call_operand.vmem [shape: f32[1,10], index: 2, kind: input, shape index: {}]   ;;  %s1942_s3 = inlined_call_operand.hbm [shape: f32[2,10], index: 3, kind: output, shape index: {}]  }
   0x1   :  { %v1458_v0 = vld [vmem:[%s1940_s1 + $0x40] sm:$0xff]   ;;  %v1462_v4 = vld [vmem:[%s1940_s1 + $0x48] sm:$0xff]   ;;  %v1466_v8 = vld [vmem:[%s1940_s1 + $0x50] sm:$0xff]   ;;  %v225_v36 = vunpack.c.l.s4 %v1582_v35 }
   0x2   :  { %v1459_v1 = vld [vmem:[%s1940_s1] sm:$0xff]   ;;  %1311 = vmatprep.subr.bf16.mxu0 %v1458_v0  ;;  %v1463_v5 = vld [vmem:[%s1940_s1 + $0x8] sm:$0xff]   ;;  %v1467_v9 = vld [vmem:[%s1940_s1 + $0x10] sm:$0xff]   ;;  %v228_v33 = vshrl.u32 %v227_v29, 7 }
   0x3   :  { %v1460_v2 = vld [vmem:[%s1940_s1 + $0xc0] sm:$0xff]   ;;  %1312 = vmatpush3.bf16.msra.mxu0 %v1459_v1  ;;  %v1464_v6 = vld [vmem:[%s1940_s1 + $0xc8] sm:$0xff]   ;;  %v1468_v10 = vld [vmem:[%s1940_s1 + $0xd0] sm:$0xff]   ;;  %v226_v39 = vunpack.c.0.s8 %v225_v36 }
   0x4   :  { %v1461_v3 = vld [vmem:[%s1940_s1 + $0x80] sm:$0xff]   ;;  %1333 = vmatprep.subr.bf16.mxu1 %v1460_v2  ;;  %1313 = vmatprep.subr.bf16.mxu0 %v1462_v4  ;;  %v1465_v7 = vld [vmem:[%s1940_s1 + $0x88] sm:$0xff]   ;;  %v1469_v11 = vld [vmem:[%s1940_s1 + $0x90] sm:$0xff]  }
   0x5   :  { %1334 = vmatpush3.bf16.msra.mxu1 %v1461_v3  ;;  %v1470_v12 = vld [vmem:[%s1940_s1 + $0x58] sm:$0xff]   ;;  %v1474_v16 = vld [vmem:[%s1940_s1 + $0x60] sm:$0xff]   ;;  %v1478_v20 = vld [vmem:[%s1940_s1 + $0x68] sm:$0xff]   ;;  %v1711_v41 = vsub.s32 %v226_v39, %v228_v33 }
   0x6   :  { %1335 = vmatprep.subr.bf16.mxu1 %v1464_v6  ;;  %v1471_v13 = vld [vmem:[%s1940_s1 + $0x18] sm:$0xff]   ;;  %v1475_v17 = vld [vmem:[%s1940_s1 + $0x20] sm:$0xff]   ;;  %v1479_v21 = vld [vmem:[%s1940_s1 + $0x28] sm:$0xff]  }
   0x7   :  { %1314 = vmatpush3.bf16.msra.mxu0 %v1463_v5  ;;  %v1472_v14 = vld [vmem:[%s1940_s1 + $0xd8] sm:$0xff]   ;;  %v1476_v18 = vld [vmem:[%s1940_s1 + $0xe0] sm:$0xff]   ;;  %v1480_v22 = vld [vmem:[%s1940_s1 + $0xe8] sm:$0xff]  }
   0x8   :  { %1315 = vmatprep.subr.bf16.mxu0 %v1466_v8  ;;  %v1473_v15 = vld [vmem:[%s1940_s1 + $0x98] sm:$0xff]   ;;  %v1477_v19 = vld [vmem:[%s1940_s1 + $0xa0] sm:$0xff]   ;;  %v1481_v23 = vld [vmem:[%s1940_s1 + $0xa8] sm:$0xff]  }
   0x9   :  { %1336 = vmatpush3.bf16.msra.mxu1 %v1465_v7  ;;  %v1482_v24 = vld [vmem:[%s1940_s1 + $0x70] sm:$0xff]   ;;  %v1486_v28 = vld [vmem:[%s1940_s1 + $0x78] sm:$0xff]   ;;  %v1491_v34 = vld [vmem:[%s1940_s1 + $0x140] sm:$0xff]  }
   0xa   :  { %1337 = vmatprep.subr.bf16.mxu1 %v1468_v10  ;;  %v1483_v25 = vld [vmem:[%s1940_s1 + $0x30] sm:$0xff]   ;;  %v1487_v30 = vld [vmem:[%s1940_s1 + $0x38] sm:$0xff]   ;;  %v16_v37 = vld [vmem:[%s1939_s0] sm:$0xff] }
   0xb   :  { %1316 = vmatpush3.bf16.msra.mxu0 %v1467_v9  ;;  %v1484_v26 = vld [vmem:[%s1940_s1 + $0xf0] sm:$0xff]   ;;  %v1488_v31 = vld [vmem:[%s1940_s1 + $0xf8] sm:$0xff]   ;;  %v223_v38 = vcombine.high %v16_v37, %v16_v37  ;;  %v1493_v40 = vld [vmem:[%s1940_s1 + $0x1c0] sm:$0xff]   ;;  %v230_v42 = vrot.slane %v16_v37, %v1711_v41 }
   0xc   :  { %1317 = vmatprep.subr.bf16.mxu0 %v1470_v12  ;;  %v1485_v27 = vld [vmem:[%s1940_s1 + $0xb0] sm:$0xff]   ;;  %v1489_v32 = vld [vmem:[%s1940_s1 + $0xb8] sm:$0xff]   ;;  %v1492_v48 = vld [vmem:[%s1940_s1 + $0x100] sm:$0xff]  }
   0xd   :  { %1338 = vmatpush3.bf16.msra.mxu1 %v1469_v11  ;;  %v1715_v43 = vrot.slane %v223_v38, %v1711_v41  ;;  %v238_v44 = vcombine.high %v230_v42, %v230_v42  ;;  %v246_v45 = vrot.slane %v230_v42, %v1711_v41  ;;  %v1495_v51 = vld [vmem:[%s1940_s1 + $0x148] sm:$0xff]   ;;  %v1494_v53 = vld [vmem:[%s1940_s1 + $0x180] sm:$0xff]   ;;  %v1499_v57 = vld [vmem:[%s1940_s1 + $0x150] sm:$0xff]  }
   0xe   :  { %1339 = vmatprep.subr.bf16.mxu1 %v1472_v14  ;;  %v1497_v54 = vld [vmem:[%s1940_s1 + $0x1c8] sm:$0xff]   ;;  %v1501_v59 = vld [vmem:[%s1940_s1 + $0x1d0] sm:$0xff]   ;;  %v1503_v61 = vld [vmem:[%s1940_s1 + $0x158] sm:$0xff]  }
   0xf   :  { %1318 = vmatpush3.bf16.msra.mxu0 %v1471_v13  ;;  %v239_v46 = vcombine.high %v1715_v43, %v1715_v43  ;;  %v260_v47 = vrot.slane %v238_v44, %v1711_v41  ;;  %v268_v50 = vcombine.high %v246_v45, %v246_v45  ;;  %v1496_v56 = vld [vmem:[%s1940_s1 + $0x108] sm:$0xff]   ;;  %v1500_v60 = vld [vmem:[%s1940_s1 + $0x110] sm:$0xff]   ;;  %v1505_v63 = vld [vmem:[%s1940_s1 + $0x1d8] sm:$0xff]  }
  0x10   :  { %1319 = vmatprep.subr.bf16.mxu0 %v1474_v16  ;;  %v1498_v58 = vld [vmem:[%s1940_s1 + $0x188] sm:$0xff]   ;;  %v1502_v62 = vld [vmem:[%s1940_s1 + $0x190] sm:$0xff]   ;;  %v1504_v0 = vld [vmem:[%s1940_s1 + $0x118] sm:$0xff]  }
  0x11   :  { %1340 = vmatpush3.bf16.msra.mxu1 %v1473_v15  ;;  %v267_v49 = vrot.slane %v239_v46, %v1711_v41  ;;  %947 = vmatprep.mubr.bf16.mxu0 %v260_v47  ;;  %v270_v52 = vcombine.high %v260_v47, %v260_v47  ;;  %v1507_v1 = vld [vmem:[%s1940_s1 + $0x160] sm:$0xff]   ;;  %v1506_v2 = vld [vmem:[%s1940_s1 + $0x198] sm:$0xff]   ;;  %v1511_v5 = vld [vmem:[%s1940_s1 + $0x168] sm:$0xff]  }
  0x12   :  { %1341 = vmatprep.subr.bf16.mxu1 %v1476_v18  ;;  %v1509_v3 = vld [vmem:[%s1940_s1 + $0x1e0] sm:$0xff]   ;;  %v1513_v7 = vld [vmem:[%s1940_s1 + $0x1e8] sm:$0xff]   ;;  %v1515_v9 = vld [vmem:[%s1940_s1 + $0x170] sm:$0xff]  }
  0x13   :  { %1320 = vmatpush3.bf16.msra.mxu0 %v1475_v17  ;;  %v271_v55 = vcombine.high %v267_v49, %v267_v49  ;;  %987 = vmatprep.mubr.bf16.mxu1 %v270_v52  ;;  %v1508_v4 = vld [vmem:[%s1940_s1 + $0x120] sm:$0xff]   ;;  %v1512_v8 = vld [vmem:[%s1940_s1 + $0x128] sm:$0xff]   ;;  %v1517_v11 = vld [vmem:[%s1940_s1 + $0x1f0] sm:$0xff]   ;;  %v253_v17 = vrot.slane %v1715_v43, %v1711_v41 }
  0x14   :  { %1321 = vmatprep.subr.bf16.mxu0 %v1478_v20  ;;  %v1510_v6 = vld [vmem:[%s1940_s1 + $0x1a0] sm:$0xff]   ;;  %v1514_v10 = vld [vmem:[%s1940_s1 + $0x1a8] sm:$0xff]   ;;  %v1516_v12 = vld [vmem:[%s1940_s1 + $0x130] sm:$0xff]  }
  0x15   :  { %1342 = vmatpush3.bf16.msra.mxu1 %v1477_v19  ;;  %v1519_v13 = vld [vmem:[%s1940_s1 + $0x178] sm:$0xff]   ;;  %v1518_v14 = vld [vmem:[%s1940_s1 + $0x1b0] sm:$0xff]   ;;  %v1523_v18 = vld [vmem:[%s1940_s1 + $0x240] sm:$0xff]  }
  0x16   :  { %1343 = vmatprep.subr.bf16.mxu1 %v1480_v22  ;;  %v1521_v15 = vld [vmem:[%s1940_s1 + $0x1f8] sm:$0xff]   ;;  %v1525_v20 = vld [vmem:[%s1940_s1 + $0x2c0] sm:$0xff]   ;;  %v269_v22 = vcombine.high %v253_v17, %v253_v17  ;;  %v1533_v29 = vld [vmem:[%s1940_s1 + $0x2d0] sm:$0xff]  }
  0x17   :  { %1322 = vmatpush3.bf16.msra.mxu0 %v1479_v21  ;;  %v1520_v16 = vld [vmem:[%s1940_s1 + $0x138] sm:$0xff]   ;;  %v1524_v21 = vld [vmem:[%s1940_s1 + $0x200] sm:$0xff]   ;;  %v1543_v39 = vld [vmem:[%s1940_s1 + $0x268] sm:$0xff]  }
  0x18   :  { %1323 = vmatprep.subr.bf16.mxu0 %v1482_v24  ;;  %v1522_v19 = vld [vmem:[%s1940_s1 + $0x1b8] sm:$0xff]   ;;  %v1526_v24 = vld [vmem:[%s1940_s1 + $0x280] sm:$0xff]   ;;  %v1545_v42 = vld [vmem:[%s1940_s1 + $0x2e8] sm:$0xff]  }
  0x19   :  { %1344 = vmatpush3.bf16.msra.mxu1 %v1481_v23  ;;  %v1527_v23 = vld [vmem:[%s1940_s1 + $0x248] sm:$0xff]   ;;  %v1537_v33 = vld [vmem:[%s1940_s1 + $0x2d8] sm:$0xff]   ;;  %v1539_v35 = vld [vmem:[%s1940_s1 + $0x260] sm:$0xff]  }
  0x1a   :  { %1345 = vmatprep.subr.bf16.mxu1 %v1484_v26  ;;  %v1528_v26 = vld [vmem:[%s1940_s1 + $0x208] sm:$0xff]   ;;  %v1538_v36 = vld [vmem:[%s1940_s1 + $0x298] sm:$0xff]   ;;  %v1541_v37 = vld [vmem:[%s1940_s1 + $0x2e0] sm:$0xff]  }
  0x1b   :  { %1324 = vmatpush3.bf16.msra.mxu0 %v1483_v25  ;;  %v1529_v25 = vld [vmem:[%s1940_s1 + $0x2c8] sm:$0xff]   ;;  %v1540_v38 = vld [vmem:[%s1940_s1 + $0x220] sm:$0xff]   ;;  %v1547_v44 = vld [vmem:[%s1940_s1 + $0x270] sm:$0xff]  }
  0x1c   :  { %1325 = vmatprep.subr.bf16.mxu0 %v1486_v28  ;;  %v1530_v28 = vld [vmem:[%s1940_s1 + $0x288] sm:$0xff]  }
  0x1d   :  { %1346 = vmatpush3.bf16.msra.mxu1 %v1485_v27  ;;  %v1531_v27 = vld [vmem:[%s1940_s1 + $0x250] sm:$0xff]   ;;  %v1544_v43 = vld [vmem:[%s1940_s1 + $0x228] sm:$0xff]  }
  0x1e   :  { %1347 = vmatprep.subr.bf16.mxu1 %v1488_v31  ;;  %v1535_v31 = vld [vmem:[%s1940_s1 + $0x258] sm:$0xff]   ;;  %v1546_v46 = vld [vmem:[%s1940_s1 + $0x2a8] sm:$0xff]  }
  0x1f   :  { %1326 = vmatpush3.bf16.msra.mxu0 %v1487_v30  ;;  %v1532_v30 = vld [vmem:[%s1940_s1 + $0x210] sm:$0xff]  }
  0x20   :  { %1355 = vmatprep.subr.bf16.mxu0 %v1491_v34  ;;  %v1536_v34 = vld [vmem:[%s1940_s1 + $0x218] sm:$0xff]  }
  0x21   :  { %1348 = vmatpush3.bf16.msra.mxu1 %v1489_v32  ;;  %v1534_v32 = vld [vmem:[%s1940_s1 + $0x290] sm:$0xff]  }
  0x22   :  { %1377 = vmatprep.subr.bf16.mxu1 %v1493_v40  ;;  %948 = vmatmul.mubr.bf16.vlgmr.msra.gmra.mrb[0].mxu0 %v246_v45  ;;  %v1542_v40 = vld [vmem:[%s1940_s1 + $0x2a0] sm:$0xff]   ;;  %v17_v45 = vld [vmem:[%s1939_s0 + $0x8] sm:$0x1f] }
  0x23   :  { %1356 = vmatpush3.bf16.msra.mxu0 %v1492_v48  ;;  %1027 = vmatprep.mubr.bf16.mxu0 %v267_v49  ;;  %v279_v47 = vrot.slane %v17_v45, %v1711_v41  ;;  %v1549_v48 = vld [vmem:[%s1940_s1 + $0x2f0] sm:$0xff]  }
  0x24   :  { %988 = vmatmul.mubr.bf16.vlgmr.msra.gmra.mrb[0].mxu1 %v268_v50  ;;  %1357 = vmatprep.subr.bf16.mxu0 %v1495_v51 }
  0x25   :  { %1378 = vmatpush3.bf16.msra.mxu1 %v1494_v53  ;;  %1067 = vmatprep.mubr.bf16.mxu1 %v271_v55 }
  0x26   :  { %1379 = vmatprep.subr.bf16.mxu1 %v1497_v54 }
  0x27   :  { %1358 = vmatpush3.bf16.msra.mxu0 %v1496_v56 }
  0x28   :  { %1359 = vmatprep.subr.bf16.mxu0 %v1499_v57 }
  0x29   :  { %1380 = vmatpush3.bf16.msra.mxu1 %v1498_v58 }
  0x2a   :  { %1381 = vmatprep.subr.bf16.mxu1 %v1501_v59 }
  0x2b   :  { %1360 = vmatpush3.bf16.msra.mxu0 %v1500_v60 }
  0x2c   :  { %1361 = vmatprep.subr.bf16.mxu0 %v1503_v61 }
  0x2d   :  { %1382 = vmatpush3.bf16.msra.mxu1 %v1502_v62 }
  0x2e   :  { %1383 = vmatprep.subr.bf16.mxu1 %v1505_v63 }
  0x2f   :  { %1362 = vmatpush3.bf16.msra.mxu0 %v1504_v0 }
  0x30   :  { %1363 = vmatprep.subr.bf16.mxu0 %v1507_v1 }
  0x31   :  { %1384 = vmatpush3.bf16.msra.mxu1 %v1506_v2 }
  0x32   :  { %1385 = vmatprep.subr.bf16.mxu1 %v1509_v3 }
  0x33   :  { %1364 = vmatpush3.bf16.msra.mxu0 %v1508_v4 }
  0x34   :  { %1365 = vmatprep.subr.bf16.mxu0 %v1511_v5 }
  0x35   :  { %1386 = vmatpush3.bf16.msra.mxu1 %v1510_v6 }
  0x36   :  { %1387 = vmatprep.subr.bf16.mxu1 %v1513_v7 }
  0x37   :  { %1366 = vmatpush3.bf16.msra.mxu0 %v1512_v8 }
  0x38   :  { %1367 = vmatprep.subr.bf16.mxu0 %v1515_v9 }
  0x39   :  { %1388 = vmatpush3.bf16.msra.mxu1 %v1514_v10 }
  0x3a   :  { %1389 = vmatprep.subr.bf16.mxu1 %v1517_v11 }
  0x3b   :  { %1368 = vmatpush3.bf16.msra.mxu0 %v1516_v12 }
  0x3c   :  { %1369 = vmatprep.subr.bf16.mxu0 %v1519_v13 }
  0x3d   :  { %1390 = vmatpush3.bf16.msra.mxu1 %v1518_v14 }
  0x3e   :  { %1391 = vmatprep.subr.bf16.mxu1 %v1521_v15 }
  0x3f   :  { %1370 = vmatpush3.bf16.msra.mxu0 %v1520_v16 }
  0x40   :  { %1399 = vmatprep.subr.bf16.mxu0 %v1523_v18 }
  0x41   :  { %1392 = vmatpush3.bf16.msra.mxu1 %v1522_v19 }
  0x42   :  { %1028 = vmatmul.mubr.bf16.vlgmr.msra.gmra.mrb[4].mxu0 %v253_v17  ;;  %1421 = vmatprep.subr.bf16.mxu1 %v1525_v20 }
  0x43   :  { %1400 = vmatpush3.bf16.msra.mxu0 %v1524_v21 }
  0x44   :  { %1068 = vmatmul.mubr.bf16.vlgmr.msra.gmra.mrb[4].mxu1 %v269_v22  ;;  %1401 = vmatprep.subr.bf16.mxu0 %v1527_v23 }
  0x45   :  { %1422 = vmatpush3.bf16.msra.mxu1 %v1526_v24 }
  0x46   :  { %1423 = vmatprep.subr.bf16.mxu1 %v1529_v25 }
  0x47   :  { %1402 = vmatpush3.bf16.msra.mxu0 %v1528_v26 }
  0x48   :  { %1403 = vmatprep.subr.bf16.mxu0 %v1531_v27 }
  0x49   :  { %1424 = vmatpush3.bf16.msra.mxu1 %v1530_v28 }
  0x4a   :  { %1425 = vmatprep.subr.bf16.mxu1 %v1533_v29 }
  0x4b   :  { %1404 = vmatpush3.bf16.msra.mxu0 %v1532_v30 }
  0x4c   :  { %1405 = vmatprep.subr.bf16.mxu0 %v1535_v31 }
  0x4d   :  { %1426 = vmatpush3.bf16.msra.mxu1 %v1534_v32 }
  0x4e   :  { %1427 = vmatprep.subr.bf16.mxu1 %v1537_v33 }
  0x4f   :  { %1406 = vmatpush3.bf16.msra.mxu0 %v1536_v34 }
  0x50   :  { %1407 = vmatprep.subr.bf16.mxu0 %v1539_v35 }
  0x51   :  { %1428 = vmatpush3.bf16.msra.mxu1 %v1538_v36 }
  0x52   :  { %1429 = vmatprep.subr.bf16.mxu1 %v1541_v37 }
  0x53   :  { %1408 = vmatpush3.bf16.msra.mxu0 %v1540_v38 }
  0x54   :  { %1409 = vmatprep.subr.bf16.mxu0 %v1543_v39 }
  0x55   :  { %1430 = vmatpush3.bf16.msra.mxu1 %v1542_v40 }
  0x56   :  { %1431 = vmatprep.subr.bf16.mxu1 %v1545_v42 }
  0x57   :  { %8 = vsyncpa [#allocation3], 0  ;;  %1410 = vmatpush3.bf16.msra.mxu0 %v1544_v43  ;;  %v1548_v49 = vld [vmem:[%s1940_s1 + $0x230] sm:$0xff]   ;;  %v287_v50 = vcombine.high %v279_v47, %v279_v47  ;;  %v1551_v51 = vld [vmem:[%s1940_s1 + $0x278] sm:$0xff]   ;;  %v294_v57 = vrot.slane %v279_v47, %v1711_v41  ;;  %v272_v59 = vcombine.high %v17_v45, %v17_v45  ;;  %v1583_v61 = vmov 0.0  }
  0x58   :  { %1411 = vmatprep.subr.bf16.mxu0 %v1547_v44  ;;  %v1550_v52 = vld [vmem:[%s1940_s1 + $0x2b0] sm:$0xff]   ;;  %v1553_v54 = vld [vmem:[%s1940_s1 + $0x2f8] sm:$0xff]   ;;  %v1556_v60 = vld [vmem:[%s1940_s1 + $0x300] sm:$0xff]   ;;  %vm1584_vm0 = vmmov 0   ;;  %vm911_vm1 = vcmask 261120   ;;  %vm1195_vm2 = vcmask 74752  }
  0x59   :  { %1432 = vmatpush3.bf16.msra.mxu1 %v1546_v46  ;;  %v308_v53 = vrot.slane %v287_v50, %v1711_v41  ;;  %v1552_v55 = vld [vmem:[%s1940_s1 + $0x238] sm:$0xff]   ;;  %v309_v62 = vcombine.high %v294_v57, %v294_v57  ;;  %v286_v63 = vrot.slane %v272_v59, %v1711_v41  ;;  %v1557_v0 = vld [vmem:[%s1940_s1 + $0x308] sm:$0xff]   ;;  %v1211_v3 = vld [vmem:[%s1941_s2] ss:$0 sm:$0xff] }
  0x5a   :  { %1433 = vmatprep.subr.bf16.mxu1 %v1549_v48  ;;  %v1554_v58 = vld [vmem:[%s1940_s1 + $0x2b8] sm:$0xff]   ;;  %s1585_s1 = smov [#allocation2]  }
  0x5b   :  { %1412 = vmatpush3.bf16.msra.mxu0 %v1548_v49  ;;  %1107 = vmatprep.mubr.bf16.mxu0 %v308_v53  ;;  %v310_v56 = vcombine.high %v308_v53, %v308_v53  ;;  %v301_v1 = vrot.slane %v286_v63, %v1711_v41  ;;  %s1203_s2 = sshll.u32 %s1585_s1, 4  ;;  %s1204_s2 = int_to_ptr.vmem [resolvable:$true] %s1203_s2 }
  0x5c   :  { %1413 = vmatprep.subr.bf16.mxu0 %v1551_v51  ;;  %s1558_s24 = scalar_lea.vmem %s1204_s2, 32  ;;  %p1563_p1 = scmp.lt.s32.totalorder %s1204_s2, %s1204_s2 }
  0x5d   :  { %1434 = vmatpush3.bf16.msra.mxu1 %v1550_v52  ;;  %1147 = vmatprep.mubr.bf16.mxu1 %v310_v56  ;;  %p1559_p0 = scmp.ne.s32.totalorder %s1204_s2, %s1558_s24  ;;  %p1564_p2 = scmp.lt.s32.totalorder %s1558_s24, %s1558_s24 }
  0x5e   :  { %1435 = vmatprep.subr.bf16.mxu1 %v1553_v54 }
  0x5f   :  { %1414 = vmatpush3.bf16.msra.mxu0 %v1552_v55  ;;  %p1565_p3 = por %p1564_p2, %p1563_p1 }
  0x60   :  { %1446 = vmatprep.subr.bf16.mxu0 %v1583_v61 }
  0x61   :  { %1436 = vmatpush3.bf16.msra.mxu1 %v1554_v58  ;;  %p1566_p4 = pnand %p1565_p3, %p1559_p0 }
  0x62   :  { %1108 = vmatmul.mubr.bf16.vlgmr.msra.gmra.mrb[8].mxu0 %v294_v57 }
  0x63   :  { %1447 = vmatpush3.bf16.msra.mxu0 %v1556_v60  ;;  %1450 = vmatprep.mubr.msk.bf16.mxu0 %vm1584_vm0, %v1583_v61 }
  0x64   :  { %1148 = vmatmul.mubr.bf16.vlgmr.msra.gmra.mrb[8].mxu1 %v309_v62  ;;  %1448 = vmatprep.subr.bf16.mxu0 %v1583_v61 }
  0x67   :  { %1449 = vmatpush3.bf16.msra.mxu0 %v1557_v0 }
  0x6a   :  { %1451 = vmatmul.mubr.msk.bf16.vlgmr.msra.gmra.mrb[12].mxu0 %vm911_vm1, %v301_v1 }
  0xf5   :  { %v1327_v2 = vpop.f32.mrb[0].mxu0 }
  0xf6   :  { %v1328_v4 = vpop.f32.mrb[1].mxu0 }
  0xf7   :  { %v1329_v5 = vadd.f32 %v1328_v4, %v1327_v2  ;;  %v1330_v6 = vpop.f32.mrb[2].mxu0  ;;  %v1349_v7 = vpop.f32.mrb[0].mxu1 }
  0xf8   :  { %v1331_v8 = vpop.f32.mrb[3].mxu0  ;;  %v1350_v9 = vpop.f32.mrb[1].mxu1 }
  0xf9   :  { %v950_v10 = vadd.f32 %v1329_v5, %v1211_v3  ;;  %v1351_v11 = vadd.f32 %v1350_v9, %v1349_v7  ;;  %v1352_v12 = vpop.f32.mrb[2].mxu1 }
  0xfa   :  { %v1353_v13 = vpop.f32.mrb[3].mxu1 }
  0xfb   :  { %v990_v14 = vadd.f32 %v1351_v11, %v950_v10 }
 0x115   :  { %v1371_v41 = vpop.f32.mrb[4].mxu0 }
 0x116   :  { %v1372_v15 = vpop.f32.mrb[5].mxu0 }
 0x117   :  { %v1373_v16 = vadd.f32 %v1372_v15, %v1371_v41  ;;  %v1374_v17 = vpop.f32.mrb[6].mxu0  ;;  %v1393_v18 = vpop.f32.mrb[4].mxu1 }
 0x118   :  { %v1375_v19 = vpop.f32.mrb[7].mxu0  ;;  %v1394_v20 = vpop.f32.mrb[5].mxu1 }
 0x119   :  { %v1030_v21 = vadd.f32 %v1373_v16, %v990_v14  ;;  %v1395_v22 = vadd.f32 %v1394_v20, %v1393_v18  ;;  %v1396_v23 = vpop.f32.mrb[6].mxu1 }
 0x11a   :  { %v1397_v24 = vpop.f32.mrb[7].mxu1 }
 0x11b   :  { %v1070_v25 = vadd.f32 %v1395_v22, %v1030_v21 }
 0x135   :  { %v1415_v26 = vpop.f32.mrb[8].mxu0 }
 0x136   :  { %v1416_v27 = vpop.f32.mrb[9].mxu0 }
 0x137   :  { %v1417_v28 = vadd.f32 %v1416_v27, %v1415_v26  ;;  %v1437_v29 = vpop.f32.mrb[8].mxu1  ;;  %v1418_v30 = vpop.f32.mrb[10].mxu0 }
 0x138   :  { %v1438_v31 = vpop.f32.mrb[9].mxu1  ;;  %v1419_v32 = vpop.f32.mrb[11].mxu0 }
 0x139   :  { %v1110_v33 = vadd.f32 %v1417_v28, %v1070_v25  ;;  %v1439_v34 = vadd.f32 %v1438_v31, %v1437_v29  ;;  %v1440_v35 = vpop.f32.mrb[10].mxu1 }
 0x13a   :  { %v1441_v36 = vpop.f32.mrb[11].mxu1 }
 0x13b   :  { %v1150_v37 = vadd.f32 %v1439_v34, %v1110_v33 }
 0x13d   :  { %v1189_v38 = vpop.f32.mrb[12].mxu0 }
 0x13e   :  { %v1190_v39 = vadd.f32 %v1189_v38, %v1150_v37  ;;  %v1452_v40 = vpop.f32.mrb[13].mxu0 }
 0x13f   :  { %v1192_v42 = vpop.f32.mrb[14].mxu0 }
 0x140   :  { %v1453_v43 = vpop.f32.mrb[15].mxu0  ;;  %1196 = vst.msk [vmem:[#allocation2] sm:$0x3] %vm1195_vm2, %v1190_v39 }
 0x141   :  { %1569 = shalt.err (!%p1566_p4)
}
 0x142   :  { %s1570_s27 = scalar_lea.hbm %s1942_s3, 32 }
 0x143   :  { %p1571_p5 = scmp.ne.s32.totalorder %s1942_s3, %s1570_s27  ;;  %p1574_p6 = scmp.lt.u32.totalorder %s1570_s27, %s1942_s3 }
 0x145   :  { %p1576_p7 = pnand %p1574_p6, %p1571_p5 }
 0x147   :  { %1579 = shalt.err (!%p1576_p7)
}
 0x148   :  { %1206 = dma.vmem_to_hbm [thread:$0]  %s1204_s2, 32, %s1942_s3, [#allocation3]  }
 0x149   :  { %1580 = dma.done.wait [#allocation3], 32  }
 0x14a   :  { %1581 = vsyncadd [#allocation3], 4294967264 }
 0x14b   :  { %1210 = vsyncpa [#allocation3], 1 }

</bundles_post_ra>
